<compile_context>
chip_gen: v5e
topology: v5e:2x2
jax: 0.10.0
libtpu: 0.0.40
codegen_flags: <defaults>
</compile_context>

<pallas_src>
import math

import jax
import jax.numpy as jnp
from jax.experimental import pallas as pl
from jax.experimental.pallas import tpu as pltpu


def _round_up(x, m):
    return ((x + m - 1) // m) * m


def _pick_time_chunk(seq_len, target=16):
    """Largest divisor of seq_len that is <= target (amortizes step framing)."""
    for c in range(min(seq_len, target), 0, -1):
        if seq_len % c == 0:
            return c
    return 1


# ---------------------------------------------------------------------------
# Kernel 1: time-parallel fused-gate / fused-direction projections
# ---------------------------------------------------------------------------
def _proj_single_kernel(x_ref, w_ref, b_ref, o_ref):
    o_ref[...] = (
        jnp.dot(x_ref[...], w_ref[...], preferred_element_type=jnp.float32)
        + b_ref[...]
    ).astype(o_ref.dtype)


def _proj_dual_kernel(xf_ref, xb_ref, wf_ref, wb_ref, b_ref, o_ref):
    acc = jnp.dot(xf_ref[...], wf_ref[...], preferred_element_type=jnp.float32)
    acc = acc + jnp.dot(xb_ref[...], wb_ref[...],
                        preferred_element_type=jnp.float32)
    o_ref[...] = (acc + b_ref[...]).astype(o_ref.dtype)


def _row_tiling(m):
    """Row tile (cap 512 ~ HBM-roofline sweet spot) + padded row count."""
    bm = min(512, _round_up(m, 8))
    return bm, _round_up(m, bm)


def _input_projection_single(x2d, w, b):
    """x2d: (M, Din) @ w: (Din, N) + b: (1, N) -> (M, N)."""
    m, d_in = x2d.shape
    n = w.shape[1]
    bm, m_pad = _row_tiling(m)
    if m_pad != m:
        x2d = jnp.pad(x2d, ((0, m_pad - m), (0, 0)))
    out = pl.pallas_call(
        _proj_single_kernel,
        out_shape=jax.ShapeDtypeStruct((m_pad, n), jnp.float32),
        grid=(m_pad // bm,),
        in_specs=[
            pl.BlockSpec((bm, d_in), lambda i: (i, 0)),
            pl.BlockSpec((d_in, n), lambda i: (0, 0)),   # resident weight
            pl.BlockSpec((1, n), lambda i: (0, 0)),      # resident bias
        ],
        out_specs=pl.BlockSpec((bm, n), lambda i: (i, 0)),
        compiler_params=pltpu.CompilerParams(dimension_semantics=("parallel",)),
    )(x2d, w, b)
    return out[:m] if m_pad != m else out


def _input_projection_dual(xf2d, xb2d, wf, wb, b):
    """Split-feature projection: xf @ wf + xb @ wb + b (no HBM concat of x)."""
    m, h = xf2d.shape
    n = wf.shape[1]
    bm, m_pad = _row_tiling(m)
    if m_pad != m:
        pad = ((0, m_pad - m), (0, 0))
        xf2d = jnp.pad(xf2d, pad)
        xb2d = jnp.pad(xb2d, pad)
    out = pl.pallas_call(
        _proj_dual_kernel,
        out_shape=jax.ShapeDtypeStruct((m_pad, n), jnp.float32),
        grid=(m_pad // bm,),
        in_specs=[
            pl.BlockSpec((bm, h), lambda i: (i, 0)),
            pl.BlockSpec((bm, h), lambda i: (i, 0)),
            pl.BlockSpec((h, n), lambda i: (0, 0)),
            pl.BlockSpec((h, n), lambda i: (0, 0)),
            pl.BlockSpec((1, n), lambda i: (0, 0)),
        ],
        out_specs=pl.BlockSpec((bm, n), lambda i: (i, 0)),
        compiler_params=pltpu.CompilerParams(dimension_semantics=("parallel",)),
    )(xf2d, xb2d, wf, wb, b)
    return out[:m] if m_pad != m else out


# ---------------------------------------------------------------------------
# Kernel 2: time-chunked bidirectional LSTM recurrence
# ---------------------------------------------------------------------------
def _make_bilstm_kernel(hidden, t_chunk):
    h = hidden
    unroll = t_chunk <= 16

    def kernel(pre_f_ref, pre_b_ref, whh_f_ref, whh_b_ref,
               out_f_ref, out_b_ref, h_f_s, c_f_s, h_b_s, c_b_s):
        tc = pl.program_id(1)

        @pl.when(tc == 0)
        def _init():
            # h/c carried across the sequential chunk axis in f32 VMEM scratch.
            h_f_s[...] = jnp.zeros_like(h_f_s)
            c_f_s[...] = jnp.zeros_like(c_f_s)
            h_b_s[...] = jnp.zeros_like(h_b_s)
            c_b_s[...] = jnp.zeros_like(c_b_s)

        # Hoist the recurrent weights out of the time loop.
        # TODO(synk): for large H, copy W_hh into VMEM scratch once (or
        #             single-buffer the spec) to avoid dead double-buffer VMEM.
        whh_f = whh_f_ref[...]
        whh_b = whh_b_ref[...]

        def cell(pre, h_prev, c_prev, whh):
            # One fused (B_tile, H) @ (H, 4H) MXU call; torch gate order i|f|g|o.
            gates = pre + jnp.dot(h_prev, whh, preferred_element_type=jnp.float32)
            i_g = jax.nn.sigmoid(gates[:, 0 * h:1 * h])
            f_g = jax.nn.sigmoid(gates[:, 1 * h:2 * h])
            g_g = jnp.tanh(gates[:, 2 * h:3 * h])
            o_g = jax.nn.sigmoid(gates[:, 3 * h:4 * h])
            c_new = f_g * c_prev + i_g * g_g        # cell state kept in f32
            h_new = o_g * jnp.tanh(c_new)
            return h_new, c_new

        def body(i, carry):
            h_f, c_f, h_b, c_b = carry
            # Forward direction: local time index i (natural order).
            h_f, c_f = cell(pre_f_ref[i], h_f, c_f, whh_f)
            out_f_ref[i] = h_f.astype(out_f_ref.dtype)
            # Backward direction: local time index runs in reverse.
            j = t_chunk - 1 - i
            h_b, c_b = cell(pre_b_ref[j], h_b, c_b, whh_b)
            out_b_ref[j] = h_b.astype(out_b_ref.dtype)
            return (h_f, c_f, h_b, c_b)

        carry = (h_f_s[...], c_f_s[...], h_b_s[...], c_b_s[...])
        carry = jax.lax.fori_loop(0, t_chunk, body, carry, unroll=unroll)
        h_f_s[...], c_f_s[...], h_b_s[...], c_b_s[...] = carry

    return kernel


def _bilstm_layer(pre, w_hh_f, w_hh_b, hidden, t_chunk):
    """pre: (T, B, 8H) fused-gate pre-activations (fwd lanes [:4H], bwd after).

    Returns (out_fwd, out_bwd), each (T, B, H), time-major, natural time order.
    """
    seq_len, batch, _ = pre.shape
    four_h = 4 * hidden
    assert four_h % 128 == 0, "hidden must be a multiple of 32 (f32 lane tiling)"
    assert seq_len % t_chunk == 0
    num_chunks = seq_len // t_chunk

    b_tile = batch                      # one block; see v7x TODO in header
    grid = (batch // b_tile, num_chunks)

    pre_fwd_spec = pl.BlockSpec((t_chunk, b_tile, four_h),
                                lambda b, tc: (tc, b, 0))
    pre_bwd_spec = pl.BlockSpec((t_chunk, b_tile, four_h),
                                lambda b, tc: (num_chunks - 1 - tc, b, 1))
    whh_spec = pl.BlockSpec((hidden, four_h), lambda b, tc: (0, 0))  # resident

    out_shape = (jax.ShapeDtypeStruct((seq_len, batch, hidden), jnp.float32),
                 jax.ShapeDtypeStruct((seq_len, batch, hidden), jnp.float32))
    out_f_spec = pl.BlockSpec((t_chunk, b_tile, hidden),
                              lambda b, tc: (tc, b, 0))
    out_b_spec = pl.BlockSpec((t_chunk, b_tile, hidden),
                              lambda b, tc: (num_chunks - 1 - tc, b, 0))

    return pl.pallas_call(
        _make_bilstm_kernel(hidden, t_chunk),
        out_shape=out_shape,
        grid=grid,
        in_specs=[pre_fwd_spec, pre_bwd_spec, whh_spec, whh_spec],
        out_specs=(out_f_spec, out_b_spec),
        scratch_shapes=[
            pltpu.VMEM((b_tile, hidden), jnp.float32),   # h_fwd
            pltpu.VMEM((b_tile, hidden), jnp.float32),   # c_fwd
            pltpu.VMEM((b_tile, hidden), jnp.float32),   # h_bwd
            pltpu.VMEM((b_tile, hidden), jnp.float32),   # c_bwd
        ],
        compiler_params=pltpu.CompilerParams(
            dimension_semantics=("parallel", "arbitrary")),
    )(pre, pre, w_hh_f, w_hh_b)


# ---------------------------------------------------------------------------
# Kernel 3: time softmax + attention pooling (heads computed by kernel 1)
# ---------------------------------------------------------------------------
def _make_pool_kernel(out_dim):
    def kernel(fused_ref, pooled_ref):
        fused = fused_ref[...]                    # (T, B, 2O) = [out | logits]
        out = fused[:, :, :out_dim]
        logits = fused[:, :, out_dim:]
        m = jnp.max(logits, axis=0, keepdims=True)
        e = jnp.exp(logits - m)
        denom = jnp.sum(e, axis=0, keepdims=True)
        attn = e / denom                          # exact softmax (strict parity)
        pooled_ref[...] = jnp.sum(attn * out, axis=0).astype(pooled_ref.dtype)
    return kernel


def _attention_pool(fused_heads, out_dim):
    """fused_heads: (T, B, 2O) time-major -> pooled (B, O), lane-packed 2-D."""
    seq_len, batch, two_o = fused_heads.shape
    return pl.pallas_call(
        _make_pool_kernel(out_dim),
        out_shape=jax.ShapeDtypeStruct((batch, out_dim), jnp.float32),
        grid=(1,),
        in_specs=[pl.BlockSpec((seq_len, batch, two_o), lambda i: (0, 0, 0))],
        out_specs=pl.BlockSpec((batch, out_dim), lambda i: (0, 0)),
    )(fused_heads)


# ---------------------------------------------------------------------------
# Full forward pass (eval mode)
# ---------------------------------------------------------------------------
def lstm_dual_attn_forward(x, params):
    """x: (B, T, D) -> pooled (B, 1, O). Matches LSTMDualAttn.forward (eval)."""
    x = x.astype(jnp.float32)
    batch, seq_len, _ = x.shape
    hidden = params["lstm"][0]["w_hh_f"].shape[0]
    out_dim = params["w_out"].shape[1]
    t_chunk = _pick_time_chunk(seq_len)

    seq_f = jnp.transpose(x, (1, 0, 2))          # time-major (T, B, Din)
    seq_b = None
    for li, layer in enumerate(params["lstm"]):
        # Fused-gate, fused-direction projection weights: (Din or 2H, 8H).
        w_cat = jnp.concatenate([layer["w_ih_f"], layer["w_ih_b"]], axis=1)
        b_cat = jnp.concatenate(
            [layer["b_ih_f"] + layer["b_hh_f"],
             layer["b_ih_b"] + layer["b_hh_b"]], axis=0).reshape(1, 8 * hidden)
        if li == 0:
            pre = _input_projection_single(
                seq_f.reshape(seq_len * batch, -1), w_cat, b_cat)
        else:
            # Previous layer's fwd/bwd outputs stay separate (no HBM concat):
            # x @ W == x_f @ W[:H] + x_b @ W[H:]
            pre = _input_projection_dual(
                seq_f.reshape(seq_len * batch, hidden),
                seq_b.reshape(seq_len * batch, hidden),
                w_cat[:hidden], w_cat[hidden:], b_cat)
        pre = pre.reshape(seq_len, batch, 8 * hidden)
        seq_f, seq_b = _bilstm_layer(pre, layer["w_hh_f"], layer["w_hh_b"],
                                     hidden, t_chunk)
        # TODO(synk): nn.LSTM inter-layer dropout (p=0.2) is identity in eval
        # mode and is intentionally omitted.
        # TODO(synk): fuse the next layer's projection into the recurrence's
        # time-chunk loop to avoid the pre (T,B,8H) HBM round-trip per layer.

    # Both heads fused into one (2H, 2O) weight, split per direction; single
    # time-parallel MXU pass produces [out | logits] without any transpose.
    w_heads = jnp.concatenate([params["w_out"], params["w_attn"]], axis=1)
    b_heads = jnp.concatenate([params["b_out"], params["b_attn"]],
                              axis=0).reshape(1, 2 * out_dim)
    fused2d = _input_projection_dual(
        seq_f.reshape(seq_len * batch, hidden),
        seq_b.reshape(seq_len * batch, hidden),
        w_heads[:hidden], w_heads[hidden:], b_heads)
    fused_heads = fused2d.reshape(seq_len, batch, 2 * out_dim)

    pooled = _attention_pool(fused_heads, out_dim)        # (B, O)
    return pooled[:, None, :]                             # (B, 1, O)


# ---------------------------------------------------------------------------
# Pure-JAX reference (same math, no Pallas) + parameter construction
# ---------------------------------------------------------------------------
def reference_forward(x, params):
    x = x.astype(jnp.float32)
    batch, seq_len, _ = x.shape
    hidden = params["lstm"][0]["w_hh_f"].shape[0]
    seq = jnp.transpose(x, (1, 0, 2))
    for layer in params["lstm"]:
        outs = []
        for d in ("f", "b"):
            w_ih = layer["w_ih_" + d]
            w_hh = layer["w_hh_" + d]
            bias = layer["b_ih_" + d] + layer["b_hh_" + d]
            h = jnp.zeros((batch, hidden), jnp.float32)
            c = jnp.zeros((batch, hidden), jnp.float32)
            hs = [None] * seq_len
            order = range(seq_len) if d == "f" else range(seq_len - 1, -1, -1)
            for t in order:
                gates = seq[t] @ w_ih + bias + h @ w_hh
                i_g = jax.nn.sigmoid(gates[:, :hidden])
                f_g = jax.nn.sigmoid(gates[:, hidden:2 * hidden])
                g_g = jnp.tanh(gates[:, 2 * hidden:3 * hidden])
                o_g = jax.nn.sigmoid(gates[:, 3 * hidden:])
                c = f_g * c + i_g * g_g
                h = o_g * jnp.tanh(c)
                hs[t] = h
            outs.append(jnp.stack(hs, axis=0))
        seq = jnp.concatenate(outs, axis=-1)
    lstm_out = jnp.transpose(seq, (1, 0, 2))
    out = lstm_out @ params["w_out"] + params["b_out"]
    logits = lstm_out @ params["w_attn"] + params["b_attn"]
    attn = jax.nn.softmax(logits, axis=1)
    return jnp.sum(attn * out, axis=1, keepdims=True)


def init_params(key, inputdim, hidden, output_size, num_layers):
    def xavier(k, shape):
        bound = math.sqrt(6.0 / (shape[0] + shape[1]))
        return jax.random.uniform(k, shape, jnp.float32, -bound, bound)

    params = {"lstm": []}
    d_in = inputdim
    for _ in range(num_layers):
        key, k1, k2, k3, k4, k5, k6 = jax.random.split(key, 7)
        params["lstm"].append({
            "w_ih_f": xavier(k1, (d_in, 4 * hidden)),
            "w_hh_f": xavier(k2, (hidden, 4 * hidden)),
            "w_ih_b": xavier(k3, (d_in, 4 * hidden)),
            "w_hh_b": xavier(k4, (hidden, 4 * hidden)),
            "b_ih_f": 0.01 * jax.random.normal(k5, (4 * hidden,), jnp.float32),
            "b_hh_f": jnp.zeros((4 * hidden,), jnp.float32),
            "b_ih_b": 0.01 * jax.random.normal(k6, (4 * hidden,), jnp.float32),
            "b_hh_b": jnp.zeros((4 * hidden,), jnp.float32),
        })
        d_in = 2 * hidden
    key, ko, kob, ka, kab = jax.random.split(key, 5)
    scale = math.sqrt(2.0 / (2 * hidden))
    params["w_out"] = scale * jax.random.normal(
        ko, (2 * hidden, output_size), jnp.float32)
    params["b_out"] = 0.01 * jax.random.normal(kob, (output_size,), jnp.float32)
    params["w_attn"] = scale * jax.random.normal(
        ka, (2 * hidden, output_size), jnp.float32)
    params["b_attn"] = 0.01 * jax.random.normal(kab, (output_size,), jnp.float32)
    return params


if __name__ == "__main__":
    BATCH, SEQ, INPUTDIM, HIDDEN, OUTDIM, LAYERS = 2, 8, 16, 32, 4, 3
    key = jax.random.PRNGKey(0)
    k_params, k_x = jax.random.split(key)
    params = init_params(k_params, INPUTDIM, HIDDEN, OUTDIM, LAYERS)
    x = jax.random.normal(k_x, (BATCH, SEQ, INPUTDIM), jnp.float32)

    fwd = jax.jit(lstm_dual_attn_forward)
    pooled = jax.block_until_ready(fwd(x, params))
    assert pooled.shape == (BATCH, 1, OUTDIM), pooled.shape

    ref = jax.block_until_ready(jax.jit(reference_forward)(x, params))
    max_err = float(jnp.max(jnp.abs(pooled - ref)))
    assert max_err < 5e-2, f"max abs error vs reference: {max_err}"
    print("KERNEL_OK")
</pallas_src>

<mosaic_0001>
module attributes {stable_mosaic.version = 11 : i64} {
  func.func @_proj_single_kernel(%arg0: i32, %arg1: memref<16x16xf32, #tpu.memory_space<vmem>>, %arg2: memref<16x256xf32, #tpu.memory_space<vmem>>, %arg3: memref<1x256xf32, #tpu.memory_space<vmem>>, %arg4: memref<16x256xf32, #tpu.memory_space<vmem>>) attributes {dimension_semantics = [#tpu.dimension_semantics<parallel>], iteration_bounds = array<i64: 1>, scalar_prefetch = 0 : i64, scratch_operands = 0 : i64, tpu.core_type = #tpu.core_type<tc>, window_params = [{transform_indices = @transform_0, window_bounds = array<i64: 16, 16>}, {pipeline_mode = #tpu.pipeline_mode<synchronous>, transform_indices = @transform_1, window_bounds = array<i64: 16, 256>}, {pipeline_mode = #tpu.pipeline_mode<synchronous>, transform_indices = @transform_2, window_bounds = array<i64: 1, 256>}, {transform_indices = @transform_3, window_bounds = array<i64: 16, 256>}]} {
    %c0 = arith.constant 0 : index
    %c0_0 = arith.constant 0 : index
    %0 = vector.load %arg1[%c0, %c0_0] : memref<16x16xf32, #tpu.memory_space<vmem>>, vector<16x16xf32>
    %c0_1 = arith.constant 0 : index
    %c0_2 = arith.constant 0 : index
    %1 = vector.load %arg2[%c0_1, %c0_2] : memref<16x256xf32, #tpu.memory_space<vmem>>, vector<16x256xf32>
    %cst = arith.constant dense<0.000000e+00> : vector<16x256xf32>
    %2 = tpu.matmul %0, %1, %cst {dimension_numbers = #tpu.dot_dimension_numbers<[1], [0], [0], [1], [0, 0, 1, 1], [], []>} : vector<16x16xf32>, vector<16x256xf32>, vector<16x256xf32> -> vector<16x256xf32>
    %c0_3 = arith.constant 0 : index
    %c0_4 = arith.constant 0 : index
    %3 = vector.load %arg3[%c0_3, %c0_4] : memref<1x256xf32, #tpu.memory_space<vmem>>, vector<1x256xf32>
    %4 = vector.broadcast %3 : vector<1x256xf32> to vector<16x256xf32>
    %5 = arith.addf %2, %4 : vector<16x256xf32>
    %c0_5 = arith.constant 0 : index
    %c0_6 = arith.constant 0 : index
    %6 = vector.load %arg4[%c0_5, %c0_6] : memref<16x256xf32, #tpu.memory_space<vmem>>, vector<16x256xf32>
    tpu.vector_store %arg4[%c0_5, %c0_6], %5 {strides = array<i32>} : memref<16x256xf32, #tpu.memory_space<vmem>>, vector<16x256xf32>,
    return
  }
  func.func @transform_0(%arg0: i32) -> (i32, i32) {
    %c0_i32 = arith.constant 0 : i32
    %c0_i32_0 = arith.constant 0 : i32
    return %arg0, %c0_i32 : i32, i32
  }
  func.func @transform_1(%arg0: i32) -> (i32, i32) {
    %c0_i32 = arith.constant 0 : i32
    %c0_i32_0 = arith.constant 0 : i32
    %c0_i32_1 = arith.constant 0 : i32
    return %c0_i32, %c0_i32_0 : i32, i32
  }
  func.func @transform_2(%arg0: i32) -> (i32, i32) {
    %c0_i32 = arith.constant 0 : i32
    %c0_i32_0 = arith.constant 0 : i32
    %c0_i32_1 = arith.constant 0 : i32
    return %c0_i32, %c0_i32_0 : i32, i32
  }
  func.func @transform_3(%arg0: i32) -> (i32, i32) {
    %c0_i32 = arith.constant 0 : i32
    %c0_i32_0 = arith.constant 0 : i32
    return %arg0, %c0_i32 : i32, i32
  }
}

module attributes {stable_mosaic.version = 11 : i64} {
  func.func @_proj_dual_kernel(%arg0: i32, %arg1: memref<16x32xf32, #tpu.memory_space<vmem>>, %arg2: memref<16x32xf32, #tpu.memory_space<vmem>>, %arg3: memref<32x256xf32, #tpu.memory_space<vmem>>, %arg4: memref<32x256xf32, #tpu.memory_space<vmem>>, %arg5: memref<1x256xf32, #tpu.memory_space<vmem>>, %arg6: memref<16x256xf32, #tpu.memory_space<vmem>>) attributes {dimension_semantics = [#tpu.dimension_semantics<parallel>], iteration_bounds = array<i64: 1>, scalar_prefetch = 0 : i64, scratch_operands = 0 : i64, tpu.core_type = #tpu.core_type<tc>, window_params = [{transform_indices = @transform_0, window_bounds = array<i64: 16, 32>}, {transform_indices = @transform_1, window_bounds = array<i64: 16, 32>}, {pipeline_mode = #tpu.pipeline_mode<synchronous>, transform_indices = @transform_2, window_bounds = array<i64: 32, 256>}, {pipeline_mode = #tpu.pipeline_mode<synchronous>, transform_indices = @transform_3, window_bounds = array<i64: 32, 256>}, {pipeline_mode = #tpu.pipeline_mode<synchronous>, transform_indices = @transform_4, window_bounds = array<i64: 1, 256>}, {transform_indices = @transform_5, window_bounds = array<i64: 16, 256>}]} {
    %c0 = arith.constant 0 : index
    %c0_0 = arith.constant 0 : index
    %0 = vector.load %arg1[%c0, %c0_0] : memref<16x32xf32, #tpu.memory_space<vmem>>, vector<16x32xf32>
    %c0_1 = arith.constant 0 : index
    %c0_2 = arith.constant 0 : index
    %1 = vector.load %arg3[%c0_1, %c0_2] : memref<32x256xf32, #tpu.memory_space<vmem>>, vector<32x256xf32>
    %cst = arith.constant dense<0.000000e+00> : vector<16x256xf32>
    %2 = tpu.matmul %0, %1, %cst {dimension_numbers = #tpu.dot_dimension_numbers<[1], [0], [0], [1], [0, 0, 1, 1], [], []>} : vector<16x32xf32>, vector<32x256xf32>, vector<16x256xf32> -> vector<16x256xf32>
    %c0_3 = arith.constant 0 : index
    %c0_4 = arith.constant 0 : index
    %3 = vector.load %arg2[%c0_3, %c0_4] : memref<16x32xf32, #tpu.memory_space<vmem>>, vector<16x32xf32>
    %c0_5 = arith.constant 0 : index
    %c0_6 = arith.constant 0 : index
    %4 = vector.load %arg4[%c0_5, %c0_6] : memref<32x256xf32, #tpu.memory_space<vmem>>, vector<32x256xf32>
    %cst_7 = arith.constant dense<0.000000e+00> : vector<16x256xf32>
    %5 = tpu.matmul %3, %4, %cst_7 {dimension_numbers = #tpu.dot_dimension_numbers<[1], [0], [0], [1], [0, 0, 1, 1], [], []>} : vector<16x32xf32>, vector<32x256xf32>, vector<16x256xf32> -> vector<16x256xf32>
    %6 = arith.addf %2, %5 : vector<16x256xf32>
    %c0_8 = arith.constant 0 : index
    %c0_9 = arith.constant 0 : index
    %7 = vector.load %arg5[%c0_8, %c0_9] : memref<1x256xf32, #tpu.memory_space<vmem>>, vector<1x256xf32>
    %8 = vector.broadcast %7 : vector<1x256xf32> to vector<16x256xf32>
    %9 = arith.addf %6, %8 : vector<16x256xf32>
    %c0_10 = arith.constant 0 : index
    %c0_11 = arith.constant 0 : index
    %10 = vector.load %arg6[%c0_10, %c0_11] : memref<16x256xf32, #tpu.memory_space<vmem>>, vector<16x256xf32>
    tpu.vector_store %arg6[%c0_10, %c0_11], %9 {strides = array<i32>} : memref<16x256xf32, #tpu.memory_space<vmem>>, vector<16x256xf32>,
    return
  }
  func.func @transform_0(%arg0: i32) -> (i32, i32) {
    %c0_i32 = arith.constant 0 : i32
    %c0_i32_0 = arith.constant 0 : i32
    return %arg0, %c0_i32 : i32, i32
  }
  func.func @transform_1(%arg0: i32) -> (i32, i32) {
    %c0_i32 = arith.constant 0 : i32
    %c0_i32_0 = arith.constant 0 : i32
    return %arg0, %c0_i32 : i32, i32
  }
  func.func @transform_2(%arg0: i32) -> (i32, i32) {
    %c0_i32 = arith.constant 0 : i32
    %c0_i32_0 = arith.constant 0 : i32
    %c0_i32_1 = arith.constant 0 : i32
    return %c0_i32, %c0_i32_0 : i32, i32
  }
  func.func @transform_3(%arg0: i32) -> (i32, i32) {
    %c0_i32 = arith.constant 0 : i32
    %c0_i32_0 = arith.constant 0 : i32
    %c0_i32_1 = arith.constant 0 : i32
    return %c0_i32, %c0_i32_0 : i32, i32
  }
  func.func @transform_4(%arg0: i32) -> (i32, i32) {
    %c0_i32 = arith.constant 0 : i32
    %c0_i32_0 = arith.constant 0 : i32
    %c0_i32_1 = arith.constant 0 : i32
    return %c0_i32, %c0_i32_0 : i32, i32
  }
  func.func @transform_5(%arg0: i32) -> (i32, i32) {
    %c0_i32 = arith.constant 0 : i32
    %c0_i32_0 = arith.constant 0 : i32
    return %arg0, %c0_i32 : i32, i32
  }
}

module attributes {stable_mosaic.version = 11 : i64} {
  func.func @kernel(%arg0: i32, %arg1: i32, %arg2: memref<8x2x128xf32, #tpu.memory_space<vmem>>, %arg3: memref<8x2x128xf32, #tpu.memory_space<vmem>>, %arg4: memref<32x128xf32, #tpu.memory_space<vmem>>, %arg5: memref<32x128xf32, #tpu.memory_space<vmem>>, %arg6: memref<8x2x32xf32, #tpu.memory_space<vmem>>, %arg7: memref<8x2x32xf32, #tpu.memory_space<vmem>>, %arg8: memref<2x32xf32, #tpu.memory_space<vmem>>, %arg9: memref<2x32xf32, #tpu.memory_space<vmem>>, %arg10: memref<2x32xf32, #tpu.memory_space<vmem>>, %arg11: memref<2x32xf32, #tpu.memory_space<vmem>>) attributes {dimension_semantics = [#tpu.dimension_semantics<parallel>, #tpu.dimension_semantics<arbitrary>], iteration_bounds = array<i64: 1, 1>, scalar_prefetch = 0 : i64, scratch_operands = 4 : i64, tpu.core_type = #tpu.core_type<tc>, window_params = [{transform_indices = @transform_0, window_bounds = array<i64: 8, 2, 128>}, {transform_indices = @transform_1, window_bounds = array<i64: 8, 2, 128>}, {pipeline_mode = #tpu.pipeline_mode<synchronous>, transform_indices = @transform_2, window_bounds = array<i64: 32, 128>}, {pipeline_mode = #tpu.pipeline_mode<synchronous>, transform_indices = @transform_3, window_bounds = array<i64: 32, 128>}, {transform_indices = @transform_4, window_bounds = array<i64: 8, 2, 32>}, {transform_indices = @transform_5, window_bounds = array<i64: 8, 2, 32>}]} {
    %c0_i32 = arith.constant 0 : i32
    %0 = arith.cmpi eq, %arg1, %c0_i32 : i32
    %1 = arith.extui %0 : i1 to i32
    %c0_i32_0 = arith.constant 0 : i32
    %2 = arith.cmpi ne, %1, %c0_i32_0 : i32
    scf.if %2 {
      %cst_156 = arith.constant 0.000000e+00 : f32
      %565 = vector.broadcast %cst_156 : f32 to vector<2x32xf32>
      %c0_157 = arith.constant 0 : index
      %c0_158 = arith.constant 0 : index
      %566 = vector.load %arg8[%c0_157, %c0_158] : memref<2x32xf32, #tpu.memory_space<vmem>>, vector<2x32xf32>
      tpu.vector_store %arg8[%c0_157, %c0_158], %565 {strides = array<i32>} : memref<2x32xf32, #tpu.memory_space<vmem>>, vector<2x32xf32>,
      %cst_159 = arith.constant 0.000000e+00 : f32
      %567 = vector.broadcast %cst_159 : f32 to vector<2x32xf32>
      %c0_160 = arith.constant 0 : index
      %c0_161 = arith.constant 0 : index
      %568 = vector.load %arg9[%c0_160, %c0_161] : memref<2x32xf32, #tpu.memory_space<vmem>>, vector<2x32xf32>
      tpu.vector_store %arg9[%c0_160, %c0_161], %567 {strides = array<i32>} : memref<2x32xf32, #tpu.memory_space<vmem>>, vector<2x32xf32>,
      %cst_162 = arith.constant 0.000000e+00 : f32
      %569 = vector.broadcast %cst_162 : f32 to vector<2x32xf32>
      %c0_163 = arith.constant 0 : index
      %c0_164 = arith.constant 0 : index
      %570 = vector.load %arg10[%c0_163, %c0_164] : memref<2x32xf32, #tpu.memory_space<vmem>>, vector<2x32xf32>
      tpu.vector_store %arg10[%c0_163, %c0_164], %569 {strides = array<i32>} : memref<2x32xf32, #tpu.memory_space<vmem>>, vector<2x32xf32>,
      %cst_165 = arith.constant 0.000000e+00 : f32
      %571 = vector.broadcast %cst_165 : f32 to vector<2x32xf32>
      %c0_166 = arith.constant 0 : index
      %c0_167 = arith.constant 0 : index
      %572 = vector.load %arg11[%c0_166, %c0_167] : memref<2x32xf32, #tpu.memory_space<vmem>>, vector<2x32xf32>
      tpu.vector_store %arg11[%c0_166, %c0_167], %571 {strides = array<i32>} : memref<2x32xf32, #tpu.memory_space<vmem>>, vector<2x32xf32>,
    } else {
    }
    %c0 = arith.constant 0 : index
    %c0_1 = arith.constant 0 : index
    %3 = vector.load %arg4[%c0, %c0_1] : memref<32x128xf32, #tpu.memory_space<vmem>>, vector<32x128xf32>
    %c0_2 = arith.constant 0 : index
    %c0_3 = arith.constant 0 : index
    %4 = vector.load %arg5[%c0_2, %c0_3] : memref<32x128xf32, #tpu.memory_space<vmem>>, vector<32x128xf32>
    %c0_4 = arith.constant 0 : index
    %c0_5 = arith.constant 0 : index
    %5 = vector.load %arg8[%c0_4, %c0_5] : memref<2x32xf32, #tpu.memory_space<vmem>>, vector<2x32xf32>
    %c0_6 = arith.constant 0 : index
    %c0_7 = arith.constant 0 : index
    %6 = vector.load %arg9[%c0_6, %c0_7] : memref<2x32xf32, #tpu.memory_space<vmem>>, vector<2x32xf32>
    %c0_8 = arith.constant 0 : index
    %c0_9 = arith.constant 0 : index
    %7 = vector.load %arg10[%c0_8, %c0_9] : memref<2x32xf32, #tpu.memory_space<vmem>>, vector<2x32xf32>
    %c0_10 = arith.constant 0 : index
    %c0_11 = arith.constant 0 : index
    %8 = vector.load %arg11[%c0_10, %c0_11] : memref<2x32xf32, #tpu.memory_space<vmem>>, vector<2x32xf32>
    %c0_i32_12 = arith.constant 0 : i32
    %9 = arith.index_cast %c0_i32_12 : i32 to index
    %c0_13 = arith.constant 0 : index
    %c0_14 = arith.constant 0 : index
    %10 = vector.load %arg2[%9, %c0_13, %c0_14] : memref<8x2x128xf32, #tpu.memory_space<vmem>>, vector<1x2x128xf32>
    %11 = vector.shape_cast %10 : vector<1x2x128xf32> to vector<2x128xf32>
    %cst = arith.constant dense<0.000000e+00> : vector<2x128xf32>
    %12 = tpu.matmul %5, %3, %cst {dimension_numbers = #tpu.dot_dimension_numbers<[1], [0], [0], [1], [0, 0, 1, 1], [], []>} : vector<2x32xf32>, vector<32x128xf32>, vector<2x128xf32> -> vector<2x128xf32>
    %13 = arith.addf %11, %12 : vector<2x128xf32>
    %14 = vector.extract_strided_slice %13 {offsets = [0, 0], sizes = [2, 32], strides = [1, 1]} : vector<2x128xf32> to vector<2x32xf32>
    %15 = arith.negf %14 : vector<2x32xf32>
    %16 = math.exp %15 : vector<2x32xf32>
    %cst_15 = arith.constant 1.000000e+00 : f32
    %17 = vector.broadcast %cst_15 : f32 to vector<2x32xf32>
    %18 = arith.addf %17, %16 : vector<2x32xf32>
    %19 = arith.divf %17, %18 : vector<2x32xf32>
    %20 = vector.extract_strided_slice %13 {offsets = [0, 32], sizes = [2, 32], strides = [1, 1]} : vector<2x128xf32> to vector<2x32xf32>
    %21 = arith.negf %20 : vector<2x32xf32>
    %22 = math.exp %21 : vector<2x32xf32>
    %cst_16 = arith.constant 1.000000e+00 : f32
    %23 = vector.broadcast %cst_16 : f32 to vector<2x32xf32>
    %24 = arith.addf %23, %22 : vector<2x32xf32>
    %25 = arith.divf %23, %24 : vector<2x32xf32>
    %26 = vector.extract_strided_slice %13 {offsets = [0, 64], sizes = [2, 32], strides = [1, 1]} : vector<2x128xf32> to vector<2x32xf32>
    %27 = math.tanh %26 : vector<2x32xf32>
    %28 = vector.extract_strided_slice %13 {offsets = [0, 96], sizes = [2, 32], strides = [1, 1]} : vector<2x128xf32> to vector<2x32xf32>
    %29 = arith.negf %28 : vector<2x32xf32>
    %30 = math.exp %29 : vector<2x32xf32>
    %cst_17 = arith.constant 1.000000e+00 : f32
    %31 = vector.broadcast %cst_17 : f32 to vector<2x32xf32>
    %32 = arith.addf %31, %30 : vector<2x32xf32>
    %33 = arith.divf %31, %32 : vector<2x32xf32>
    %34 = arith.mulf %25, %6 : vector<2x32xf32>
    %35 = arith.mulf %19, %27 : vector<2x32xf32>
    %36 = arith.addf %34, %35 : vector<2x32xf32>
    %37 = math.tanh %36 : vector<2x32xf32>
    %38 = arith.mulf %33, %37 : vector<2x32xf32>
    %39 = arith.index_cast %c0_i32_12 : i32 to index
    %c0_18 = arith.constant 0 : index
    %c0_19 = arith.constant 0 : index
    %40 = vector.load %arg6[%39, %c0_18, %c0_19] : memref<8x2x32xf32, #tpu.memory_space<vmem>>, vector<1x2x32xf32>
    %41 = vector.shape_cast %40 : vector<1x2x32xf32> to vector<2x32xf32>
    %42 = vector.shape_cast %38 : vector<2x32xf32> to vector<1x2x32xf32>
    tpu.vector_store %arg6[%39, %c0_18, %c0_19], %42 {strides = array<i32>} : memref<8x2x32xf32, #tpu.memory_space<vmem>>, vector<1x2x32xf32>,
    %c7_i32 = arith.constant 7 : i32
    %43 = arith.subi %c7_i32, %c0_i32_12 : i32
    %44 = arith.index_cast %43 : i32 to index
    %c0_20 = arith.constant 0 : index
    %c0_21 = arith.constant 0 : index
    %45 = vector.load %arg3[%44, %c0_20, %c0_21] : memref<8x2x128xf32, #tpu.memory_space<vmem>>, vector<1x2x128xf32>
    %46 = vector.shape_cast %45 : vector<1x2x128xf32> to vector<2x128xf32>
    %cst_22 = arith.constant dense<0.000000e+00> : vector<2x128xf32>
    %47 = tpu.matmul %7, %4, %cst_22 {dimension_numbers = #tpu.dot_dimension_numbers<[1], [0], [0], [1], [0, 0, 1, 1], [], []>} : vector<2x32xf32>, vector<32x128xf32>, vector<2x128xf32> -> vector<2x128xf32>
    %48 = arith.addf %46, %47 : vector<2x128xf32>
    %49 = vector.extract_strided_slice %48 {offsets = [0, 0], sizes = [2, 32], strides = [1, 1]} : vector<2x128xf32> to vector<2x32xf32>
    %50 = arith.negf %49 : vector<2x32xf32>
    %51 = math.exp %50 : vector<2x32xf32>
    %cst_23 = arith.constant 1.000000e+00 : f32
    %52 = vector.broadcast %cst_23 : f32 to vector<2x32xf32>
    %53 = arith.addf %52, %51 : vector<2x32xf32>
    %54 = arith.divf %52, %53 : vector<2x32xf32>
    %55 = vector.extract_strided_slice %48 {offsets = [0, 32], sizes = [2, 32], strides = [1, 1]} : vector<2x128xf32> to vector<2x32xf32>
    %56 = arith.negf %55 : vector<2x32xf32>
    %57 = math.exp %56 : vector<2x32xf32>
    %cst_24 = arith.constant 1.000000e+00 : f32
    %58 = vector.broadcast %cst_24 : f32 to vector<2x32xf32>
    %59 = arith.addf %58, %57 : vector<2x32xf32>
    %60 = arith.divf %58, %59 : vector<2x32xf32>
    %61 = vector.extract_strided_slice %48 {offsets = [0, 64], sizes = [2, 32], strides = [1, 1]} : vector<2x128xf32> to vector<2x32xf32>
    %62 = math.tanh %61 : vector<2x32xf32>
    %63 = vector.extract_strided_slice %48 {offsets = [0, 96], sizes = [2, 32], strides = [1, 1]} : vector<2x128xf32> to vector<2x32xf32>
    %64 = arith.negf %63 : vector<2x32xf32>
    %65 = math.exp %64 : vector<2x32xf32>
    %cst_25 = arith.constant 1.000000e+00 : f32
    %66 = vector.broadcast %cst_25 : f32 to vector<2x32xf32>
    %67 = arith.addf %66, %65 : vector<2x32xf32>
    %68 = arith.divf %66, %67 : vector<2x32xf32>
    %69 = arith.mulf %60, %8 : vector<2x32xf32>
    %70 = arith.mulf %54, %62 : vector<2x32xf32>
    %71 = arith.addf %69, %70 : vector<2x32xf32>
    %72 = math.tanh %71 : vector<2x32xf32>
    %73 = arith.mulf %68, %72 : vector<2x32xf32>
    %74 = arith.index_cast %43 : i32 to index
    %c0_26 = arith.constant 0 : index
    %c0_27 = arith.constant 0 : index
    %75 = vector.load %arg7[%74, %c0_26, %c0_27] : memref<8x2x32xf32, #tpu.memory_space<vmem>>, vector<1x2x32xf32>
    %76 = vector.shape_cast %75 : vector<1x2x32xf32> to vector<2x32xf32>
    %77 = vector.shape_cast %73 : vector<2x32xf32> to vector<1x2x32xf32>
    tpu.vector_store %arg7[%74, %c0_26, %c0_27], %77 {strides = array<i32>} : memref<8x2x32xf32, #tpu.memory_space<vmem>>, vector<1x2x32xf32>,
    %c1_i32 = arith.constant 1 : i32
    %78 = arith.index_cast %c1_i32 : i32 to index
    %c0_28 = arith.constant 0 : index
    %c0_29 = arith.constant 0 : index
    %79 = vector.load %arg2[%78, %c0_28, %c0_29] : memref<8x2x128xf32, #tpu.memory_space<vmem>>, vector<1x2x128xf32>
    %80 = vector.shape_cast %79 : vector<1x2x128xf32> to vector<2x128xf32>
    %cst_30 = arith.constant dense<0.000000e+00> : vector<2x128xf32>
    %81 = tpu.matmul %38, %3, %cst_30 {dimension_numbers = #tpu.dot_dimension_numbers<[1], [0], [0], [1], [0, 0, 1, 1], [], []>} : vector<2x32xf32>, vector<32x128xf32>, vector<2x128xf32> -> vector<2x128xf32>
    %82 = arith.addf %80, %81 : vector<2x128xf32>
    %83 = vector.extract_strided_slice %82 {offsets = [0, 0], sizes = [2, 32], strides = [1, 1]} : vector<2x128xf32> to vector<2x32xf32>
    %84 = arith.negf %83 : vector<2x32xf32>
    %85 = math.exp %84 : vector<2x32xf32>
    %cst_31 = arith.constant 1.000000e+00 : f32
    %86 = vector.broadcast %cst_31 : f32 to vector<2x32xf32>
    %87 = arith.addf %86, %85 : vector<2x32xf32>
    %88 = arith.divf %86, %87 : vector<2x32xf32>
    %89 = vector.extract_strided_slice %82 {offsets = [0, 32], sizes = [2, 32], strides = [1, 1]} : vector<2x128xf32> to vector<2x32xf32>
    %90 = arith.negf %89 : vector<2x32xf32>
    %91 = math.exp %90 : vector<2x32xf32>
    %cst_32 = arith.constant 1.000000e+00 : f32
    %92 = vector.broadcast %cst_32 : f32 to vector<2x32xf32>
    %93 = arith.addf %92, %91 : vector<2x32xf32>
    %94 = arith.divf %92, %93 : vector<2x32xf32>
    %95 = vector.extract_strided_slice %82 {offsets = [0, 64], sizes = [2, 32], strides = [1, 1]} : vector<2x128xf32> to vector<2x32xf32>
    %96 = math.tanh %95 : vector<2x32xf32>
    %97 = vector.extract_strided_slice %82 {offsets = [0, 96], sizes = [2, 32], strides = [1, 1]} : vector<2x128xf32> to vector<2x32xf32>
    %98 = arith.negf %97 : vector<2x32xf32>
    %99 = math.exp %98 : vector<2x32xf32>
    %cst_33 = arith.constant 1.000000e+00 : f32
    %100 = vector.broadcast %cst_33 : f32 to vector<2x32xf32>
    %101 = arith.addf %100, %99 : vector<2x32xf32>
    %102 = arith.divf %100, %101 : vector<2x32xf32>
    %103 = arith.mulf %94, %36 : vector<2x32xf32>
    %104 = arith.mulf %88, %96 : vector<2x32xf32>
    %105 = arith.addf %103, %104 : vector<2x32xf32>
    %106 = math.tanh %105 : vector<2x32xf32>
    %107 = arith.mulf %102, %106 : vector<2x32xf32>
    %108 = arith.index_cast %c1_i32 : i32 to index
    %c0_34 = arith.constant 0 : index
    %c0_35 = arith.constant 0 : index
    %109 = vector.load %arg6[%108, %c0_34, %c0_35] : memref<8x2x32xf32, #tpu.memory_space<vmem>>, vector<1x2x32xf32>
    %110 = vector.shape_cast %109 : vector<1x2x32xf32> to vector<2x32xf32>
    %111 = vector.shape_cast %107 : vector<2x32xf32> to vector<1x2x32xf32>
    tpu.vector_store %arg6[%108, %c0_34, %c0_35], %111 {strides = array<i32>} : memref<8x2x32xf32, #tpu.memory_space<vmem>>, vector<1x2x32xf32>,
    %c7_i32_36 = arith.constant 7 : i32
    %112 = arith.subi %c7_i32_36, %c1_i32 : i32
    %113 = arith.index_cast %112 : i32 to index
    %c0_37 = arith.constant 0 : index
    %c0_38 = arith.constant 0 : index
    %114 = vector.load %arg3[%113, %c0_37, %c0_38] : memref<8x2x128xf32, #tpu.memory_space<vmem>>, vector<1x2x128xf32>
    %115 = vector.shape_cast %114 : vector<1x2x128xf32> to vector<2x128xf32>
    %cst_39 = arith.constant dense<0.000000e+00> : vector<2x128xf32>
    %116 = tpu.matmul %73, %4, %cst_39 {dimension_numbers = #tpu.dot_dimension_numbers<[1], [0], [0], [1], [0, 0, 1, 1], [], []>} : vector<2x32xf32>, vector<32x128xf32>, vector<2x128xf32> -> vector<2x128xf32>
    %117 = arith.addf %115, %116 : vector<2x128xf32>
    %118 = vector.extract_strided_slice %117 {offsets = [0, 0], sizes = [2, 32], strides = [1, 1]} : vector<2x128xf32> to vector<2x32xf32>
    %119 = arith.negf %118 : vector<2x32xf32>
    %120 = math.exp %119 : vector<2x32xf32>
    %cst_40 = arith.constant 1.000000e+00 : f32
    %121 = vector.broadcast %cst_40 : f32 to vector<2x32xf32>
    %122 = arith.addf %121, %120 : vector<2x32xf32>
    %123 = arith.divf %121, %122 : vector<2x32xf32>
    %124 = vector.extract_strided_slice %117 {offsets = [0, 32], sizes = [2, 32], strides = [1, 1]} : vector<2x128xf32> to vector<2x32xf32>
    %125 = arith.negf %124 : vector<2x32xf32>
    %126 = math.exp %125 : vector<2x32xf32>
    %cst_41 = arith.constant 1.000000e+00 : f32
    %127 = vector.broadcast %cst_41 : f32 to vector<2x32xf32>
    %128 = arith.addf %127, %126 : vector<2x32xf32>
    %129 = arith.divf %127, %128 : vector<2x32xf32>
    %130 = vector.extract_strided_slice %117 {offsets = [0, 64], sizes = [2, 32], strides = [1, 1]} : vector<2x128xf32> to vector<2x32xf32>
    %131 = math.tanh %130 : vector<2x32xf32>
    %132 = vector.extract_strided_slice %117 {offsets = [0, 96], sizes = [2, 32], strides = [1, 1]} : vector<2x128xf32> to vector<2x32xf32>
    %133 = arith.negf %132 : vector<2x32xf32>
    %134 = math.exp %133 : vector<2x32xf32>
    %cst_42 = arith.constant 1.000000e+00 : f32
    %135 = vector.broadcast %cst_42 : f32 to vector<2x32xf32>
    %136 = arith.addf %135, %134 : vector<2x32xf32>
    %137 = arith.divf %135, %136 : vector<2x32xf32>
    %138 = arith.mulf %129, %71 : vector<2x32xf32>
    %139 = arith.mulf %123, %131 : vector<2x32xf32>
    %140 = arith.addf %138, %139 : vector<2x32xf32>
    %141 = math.tanh %140 : vector<2x32xf32>
    %142 = arith.mulf %137, %141 : vector<2x32xf32>
    %143 = arith.index_cast %112 : i32 to index
    %c0_43 = arith.constant 0 : index
    %c0_44 = arith.constant 0 : index
    %144 = vector.load %arg7[%143, %c0_43, %c0_44] : memref<8x2x32xf32, #tpu.memory_space<vmem>>, vector<1x2x32xf32>
    %145 = vector.shape_cast %144 : vector<1x2x32xf32> to vector<2x32xf32>
    %146 = vector.shape_cast %142 : vector<2x32xf32> to vector<1x2x32xf32>
    tpu.vector_store %arg7[%143, %c0_43, %c0_44], %146 {strides = array<i32>} : memref<8x2x32xf32, #tpu.memory_space<vmem>>, vector<1x2x32xf32>,
    %c2_i32 = arith.constant 2 : i32
    %147 = arith.index_cast %c2_i32 : i32 to index
    %c0_45 = arith.constant 0 : index
    %c0_46 = arith.constant 0 : index
    %148 = vector.load %arg2[%147, %c0_45, %c0_46] : memref<8x2x128xf32, #tpu.memory_space<vmem>>, vector<1x2x128xf32>
    %149 = vector.shape_cast %148 : vector<1x2x128xf32> to vector<2x128xf32>
    %cst_47 = arith.constant dense<0.000000e+00> : vector<2x128xf32>
    %150 = tpu.matmul %107, %3, %cst_47 {dimension_numbers = #tpu.dot_dimension_numbers<[1], [0], [0], [1], [0, 0, 1, 1], [], []>} : vector<2x32xf32>, vector<32x128xf32>, vector<2x128xf32> -> vector<2x128xf32>
    %151 = arith.addf %149, %150 : vector<2x128xf32>
    %152 = vector.extract_strided_slice %151 {offsets = [0, 0], sizes = [2, 32], strides = [1, 1]} : vector<2x128xf32> to vector<2x32xf32>
    %153 = arith.negf %152 : vector<2x32xf32>
    %154 = math.exp %153 : vector<2x32xf32>
    %cst_48 = arith.constant 1.000000e+00 : f32
    %155 = vector.broadcast %cst_48 : f32 to vector<2x32xf32>
    %156 = arith.addf %155, %154 : vector<2x32xf32>
    %157 = arith.divf %155, %156 : vector<2x32xf32>
    %158 = vector.extract_strided_slice %151 {offsets = [0, 32], sizes = [2, 32], strides = [1, 1]} : vector<2x128xf32> to vector<2x32xf32>
    %159 = arith.negf %158 : vector<2x32xf32>
    %160 = math.exp %159 : vector<2x32xf32>
    %cst_49 = arith.constant 1.000000e+00 : f32
    %161 = vector.broadcast %cst_49 : f32 to vector<2x32xf32>
    %162 = arith.addf %161, %160 : vector<2x32xf32>
    %163 = arith.divf %161, %162 : vector<2x32xf32>
    %164 = vector.extract_strided_slice %151 {offsets = [0, 64], sizes = [2, 32], strides = [1, 1]} : vector<2x128xf32> to vector<2x32xf32>
    %165 = math.tanh %164 : vector<2x32xf32>
    %166 = vector.extract_strided_slice %151 {offsets = [0, 96], sizes = [2, 32], strides = [1, 1]} : vector<2x128xf32> to vector<2x32xf32>
    %167 = arith.negf %166 : vector<2x32xf32>
    %168 = math.exp %167 : vector<2x32xf32>
    %cst_50 = arith.constant 1.000000e+00 : f32
    %169 = vector.broadcast %cst_50 : f32 to vector<2x32xf32>
    %170 = arith.addf %169, %168 : vector<2x32xf32>
    %171 = arith.divf %169, %170 : vector<2x32xf32>
    %172 = arith.mulf %163, %105 : vector<2x32xf32>
    %173 = arith.mulf %157, %165 : vector<2x32xf32>
    %174 = arith.addf %172, %173 : vector<2x32xf32>
    %175 = math.tanh %174 : vector<2x32xf32>
    %176 = arith.mulf %171, %175 : vector<2x32xf32>
    %177 = arith.index_cast %c2_i32 : i32 to index
    %c0_51 = arith.constant 0 : index
    %c0_52 = arith.constant 0 : index
    %178 = vector.load %arg6[%177, %c0_51, %c0_52] : memref<8x2x32xf32, #tpu.memory_space<vmem>>, vector<1x2x32xf32>
    %179 = vector.shape_cast %178 : vector<1x2x32xf32> to vector<2x32xf32>
    %180 = vector.shape_cast %176 : vector<2x32xf32> to vector<1x2x32xf32>
    tpu.vector_store %arg6[%177, %c0_51, %c0_52], %180 {strides = array<i32>} : memref<8x2x32xf32, #tpu.memory_space<vmem>>, vector<1x2x32xf32>,
    %c7_i32_53 = arith.constant 7 : i32
    %181 = arith.subi %c7_i32_53, %c2_i32 : i32
    %182 = arith.index_cast %181 : i32 to index
    %c0_54 = arith.constant 0 : index
    %c0_55 = arith.constant 0 : index
    %183 = vector.load %arg3[%182, %c0_54, %c0_55] : memref<8x2x128xf32, #tpu.memory_space<vmem>>, vector<1x2x128xf32>
    %184 = vector.shape_cast %183 : vector<1x2x128xf32> to vector<2x128xf32>
    %cst_56 = arith.constant dense<0.000000e+00> : vector<2x128xf32>
    %185 = tpu.matmul %142, %4, %cst_56 {dimension_numbers = #tpu.dot_dimension_numbers<[1], [0], [0], [1], [0, 0, 1, 1], [], []>} : vector<2x32xf32>, vector<32x128xf32>, vector<2x128xf32> -> vector<2x128xf32>
    %186 = arith.addf %184, %185 : vector<2x128xf32>
    %187 = vector.extract_strided_slice %186 {offsets = [0, 0], sizes = [2, 32], strides = [1, 1]} : vector<2x128xf32> to vector<2x32xf32>
    %188 = arith.negf %187 : vector<2x32xf32>
    %189 = math.exp %188 : vector<2x32xf32>
    %cst_57 = arith.constant 1.000000e+00 : f32
    %190 = vector.broadcast %cst_57 : f32 to vector<2x32xf32>
    %191 = arith.addf %190, %189 : vector<2x32xf32>
    %192 = arith.divf %190, %191 : vector<2x32xf32>
    %193 = vector.extract_strided_slice %186 {offsets = [0, 32], sizes = [2, 32], strides = [1, 1]} : vector<2x128xf32> to vector<2x32xf32>
    %194 = arith.negf %193 : vector<2x32xf32>
    %195 = math.exp %194 : vector<2x32xf32>
    %cst_58 = arith.constant 1.000000e+00 : f32
    %196 = vector.broadcast %cst_58 : f32 to vector<2x32xf32>
    %197 = arith.addf %196, %195 : vector<2x32xf32>
    %198 = arith.divf %196, %197 : vector<2x32xf32>
    %199 = vector.extract_strided_slice %186 {offsets = [0, 64], sizes = [2, 32], strides = [1, 1]} : vector<2x128xf32> to vector<2x32xf32>
    %200 = math.tanh %199 : vector<2x32xf32>
    %201 = vector.extract_strided_slice %186 {offsets = [0, 96], sizes = [2, 32], strides = [1, 1]} : vector<2x128xf32> to vector<2x32xf32>
    %202 = arith.negf %201 : vector<2x32xf32>
    %203 = math.exp %202 : vector<2x32xf32>
    %cst_59 = arith.constant 1.000000e+00 : f32
    %204 = vector.broadcast %cst_59 : f32 to vector<2x32xf32>
    %205 = arith.addf %204, %203 : vector<2x32xf32>
    %206 = arith.divf %204, %205 : vector<2x32xf32>
    %207 = arith.mulf %198, %140 : vector<2x32xf32>
    %208 = arith.mulf %192, %200 : vector<2x32xf32>
    %209 = arith.addf %207, %208 : vector<2x32xf32>
    %210 = math.tanh %209 : vector<2x32xf32>
    %211 = arith.mulf %206, %210 : vector<2x32xf32>
    %212 = arith.index_cast %181 : i32 to index
    %c0_60 = arith.constant 0 : index
    %c0_61 = arith.constant 0 : index
    %213 = vector.load %arg7[%212, %c0_60, %c0_61] : memref<8x2x32xf32, #tpu.memory_space<vmem>>, vector<1x2x32xf32>
    %214 = vector.shape_cast %213 : vector<1x2x32xf32> to vector<2x32xf32>
    %215 = vector.shape_cast %211 : vector<2x32xf32> to vector<1x2x32xf32>
    tpu.vector_store %arg7[%212, %c0_60, %c0_61], %215 {strides = array<i32>} : memref<8x2x32xf32, #tpu.memory_space<vmem>>, vector<1x2x32xf32>,
    %c3_i32 = arith.constant 3 : i32
    %216 = arith.index_cast %c3_i32 : i32 to index
    %c0_62 = arith.constant 0 : index
    %c0_63 = arith.constant 0 : index
    %217 = vector.load %arg2[%216, %c0_62, %c0_63] : memref<8x2x128xf32, #tpu.memory_space<vmem>>, vector<1x2x128xf32>
    %218 = vector.shape_cast %217 : vector<1x2x128xf32> to vector<2x128xf32>
    %cst_64 = arith.constant dense<0.000000e+00> : vector<2x128xf32>
    %219 = tpu.matmul %176, %3, %cst_64 {dimension_numbers = #tpu.dot_dimension_numbers<[1], [0], [0], [1], [0, 0, 1, 1], [], []>} : vector<2x32xf32>, vector<32x128xf32>, vector<2x128xf32> -> vector<2x128xf32>
    %220 = arith.addf %218, %219 : vector<2x128xf32>
    %221 = vector.extract_strided_slice %220 {offsets = [0, 0], sizes = [2, 32], strides = [1, 1]} : vector<2x128xf32> to vector<2x32xf32>
    %222 = arith.negf %221 : vector<2x32xf32>
    %223 = math.exp %222 : vector<2x32xf32>
    %cst_65 = arith.constant 1.000000e+00 : f32
    %224 = vector.broadcast %cst_65 : f32 to vector<2x32xf32>
    %225 = arith.addf %224, %223 : vector<2x32xf32>
    %226 = arith.divf %224, %225 : vector<2x32xf32>
    %227 = vector.extract_strided_slice %220 {offsets = [0, 32], sizes = [2, 32], strides = [1, 1]} : vector<2x128xf32> to vector<2x32xf32>
    %228 = arith.negf %227 : vector<2x32xf32>
    %229 = math.exp %228 : vector<2x32xf32>
    %cst_66 = arith.constant 1.000000e+00 : f32
    %230 = vector.broadcast %cst_66 : f32 to vector<2x32xf32>
    %231 = arith.addf %230, %229 : vector<2x32xf32>
    %232 = arith.divf %230, %231 : vector<2x32xf32>
    %233 = vector.extract_strided_slice %220 {offsets = [0, 64], sizes = [2, 32], strides = [1, 1]} : vector<2x128xf32> to vector<2x32xf32>
    %234 = math.tanh %233 : vector<2x32xf32>
    %235 = vector.extract_strided_slice %220 {offsets = [0, 96], sizes = [2, 32], strides = [1, 1]} : vector<2x128xf32> to vector<2x32xf32>
    %236 = arith.negf %235 : vector<2x32xf32>
    %237 = math.exp %236 : vector<2x32xf32>
    %cst_67 = arith.constant 1.000000e+00 : f32
    %238 = vector.broadcast %cst_67 : f32 to vector<2x32xf32>
    %239 = arith.addf %238, %237 : vector<2x32xf32>
    %240 = arith.divf %238, %239 : vector<2x32xf32>
    %241 = arith.mulf %232, %174 : vector<2x32xf32>
    %242 = arith.mulf %226, %234 : vector<2x32xf32>
    %243 = arith.addf %241, %242 : vector<2x32xf32>
    %244 = math.tanh %243 : vector<2x32xf32>
    %245 = arith.mulf %240, %244 : vector<2x32xf32>
    %246 = arith.index_cast %c3_i32 : i32 to index
    %c0_68 = arith.constant 0 : index
    %c0_69 = arith.constant 0 : index
    %247 = vector.load %arg6[%246, %c0_68, %c0_69] : memref<8x2x32xf32, #tpu.memory_space<vmem>>, vector<1x2x32xf32>
    %248 = vector.shape_cast %247 : vector<1x2x32xf32> to vector<2x32xf32>
    %249 = vector.shape_cast %245 : vector<2x32xf32> to vector<1x2x32xf32>
    tpu.vector_store %arg6[%246, %c0_68, %c0_69], %249 {strides = array<i32>} : memref<8x2x32xf32, #tpu.memory_space<vmem>>, vector<1x2x32xf32>,
    %c7_i32_70 = arith.constant 7 : i32
    %250 = arith.subi %c7_i32_70, %c3_i32 : i32
    %251 = arith.index_cast %250 : i32 to index
    %c0_71 = arith.constant 0 : index
    %c0_72 = arith.constant 0 : index
    %252 = vector.load %arg3[%251, %c0_71, %c0_72] : memref<8x2x128xf32, #tpu.memory_space<vmem>>, vector<1x2x128xf32>
    %253 = vector.shape_cast %252 : vector<1x2x128xf32> to vector<2x128xf32>
    %cst_73 = arith.constant dense<0.000000e+00> : vector<2x128xf32>
    %254 = tpu.matmul %211, %4, %cst_73 {dimension_numbers = #tpu.dot_dimension_numbers<[1], [0], [0], [1], [0, 0, 1, 1], [], []>} : vector<2x32xf32>, vector<32x128xf32>, vector<2x128xf32> -> vector<2x128xf32>
    %255 = arith.addf %253, %254 : vector<2x128xf32>
    %256 = vector.extract_strided_slice %255 {offsets = [0, 0], sizes = [2, 32], strides = [1, 1]} : vector<2x128xf32> to vector<2x32xf32>
    %257 = arith.negf %256 : vector<2x32xf32>
    %258 = math.exp %257 : vector<2x32xf32>
    %cst_74 = arith.constant 1.000000e+00 : f32
    %259 = vector.broadcast %cst_74 : f32 to vector<2x32xf32>
    %260 = arith.addf %259, %258 : vector<2x32xf32>
    %261 = arith.divf %259, %260 : vector<2x32xf32>
    %262 = vector.extract_strided_slice %255 {offsets = [0, 32], sizes = [2, 32], strides = [1, 1]} : vector<2x128xf32> to vector<2x32xf32>
    %263 = arith.negf %262 : vector<2x32xf32>
    %264 = math.exp %263 : vector<2x32xf32>
    %cst_75 = arith.constant 1.000000e+00 : f32
    %265 = vector.broadcast %cst_75 : f32 to vector<2x32xf32>
    %266 = arith.addf %265, %264 : vector<2x32xf32>
    %267 = arith.divf %265, %266 : vector<2x32xf32>
    %268 = vector.extract_strided_slice %255 {offsets = [0, 64], sizes = [2, 32], strides = [1, 1]} : vector<2x128xf32> to vector<2x32xf32>
    %269 = math.tanh %268 : vector<2x32xf32>
    %270 = vector.extract_strided_slice %255 {offsets = [0, 96], sizes = [2, 32], strides = [1, 1]} : vector<2x128xf32> to vector<2x32xf32>
    %271 = arith.negf %270 : vector<2x32xf32>
    %272 = math.exp %271 : vector<2x32xf32>
    %cst_76 = arith.constant 1.000000e+00 : f32
    %273 = vector.broadcast %cst_76 : f32 to vector<2x32xf32>
    %274 = arith.addf %273, %272 : vector<2x32xf32>
    %275 = arith.divf %273, %274 : vector<2x32xf32>
    %276 = arith.mulf %267, %209 : vector<2x32xf32>
    %277 = arith.mulf %261, %269 : vector<2x32xf32>
    %278 = arith.addf %276, %277 : vector<2x32xf32>
    %279 = math.tanh %278 : vector<2x32xf32>
    %280 = arith.mulf %275, %279 : vector<2x32xf32>
    %281 = arith.index_cast %250 : i32 to index
    %c0_77 = arith.constant 0 : index
    %c0_78 = arith.constant 0 : index
    %282 = vector.load %arg7[%281, %c0_77, %c0_78] : memref<8x2x32xf32, #tpu.memory_space<vmem>>, vector<1x2x32xf32>
    %283 = vector.shape_cast %282 : vector<1x2x32xf32> to vector<2x32xf32>
    %284 = vector.shape_cast %280 : vector<2x32xf32> to vector<1x2x32xf32>
    tpu.vector_store %arg7[%281, %c0_77, %c0_78], %284 {strides = array<i32>} : memref<8x2x32xf32, #tpu.memory_space<vmem>>, vector<1x2x32xf32>,
    %c4_i32 = arith.constant 4 : i32
    %285 = arith.index_cast %c4_i32 : i32 to index
    %c0_79 = arith.constant 0 : index
    %c0_80 = arith.constant 0 : index
    %286 = vector.load %arg2[%285, %c0_79, %c0_80] : memref<8x2x128xf32, #tpu.memory_space<vmem>>, vector<1x2x128xf32>
    %287 = vector.shape_cast %286 : vector<1x2x128xf32> to vector<2x128xf32>
    %cst_81 = arith.constant dense<0.000000e+00> : vector<2x128xf32>
    %288 = tpu.matmul %245, %3, %cst_81 {dimension_numbers = #tpu.dot_dimension_numbers<[1], [0], [0], [1], [0, 0, 1, 1], [], []>} : vector<2x32xf32>, vector<32x128xf32>, vector<2x128xf32> -> vector<2x128xf32>
    %289 = arith.addf %287, %288 : vector<2x128xf32>
    %290 = vector.extract_strided_slice %289 {offsets = [0, 0], sizes = [2, 32], strides = [1, 1]} : vector<2x128xf32> to vector<2x32xf32>
    %291 = arith.negf %290 : vector<2x32xf32>
    %292 = math.exp %291 : vector<2x32xf32>
    %cst_82 = arith.constant 1.000000e+00 : f32
    %293 = vector.broadcast %cst_82 : f32 to vector<2x32xf32>
    %294 = arith.addf %293, %292 : vector<2x32xf32>
    %295 = arith.divf %293, %294 : vector<2x32xf32>
    %296 = vector.extract_strided_slice %289 {offsets = [0, 32], sizes = [2, 32], strides = [1, 1]} : vector<2x128xf32> to vector<2x32xf32>
    %297 = arith.negf %296 : vector<2x32xf32>
    %298 = math.exp %297 : vector<2x32xf32>
    %cst_83 = arith.constant 1.000000e+00 : f32
    %299 = vector.broadcast %cst_83 : f32 to vector<2x32xf32>
    %300 = arith.addf %299, %298 : vector<2x32xf32>
    %301 = arith.divf %299, %300 : vector<2x32xf32>
    %302 = vector.extract_strided_slice %289 {offsets = [0, 64], sizes = [2, 32], strides = [1, 1]} : vector<2x128xf32> to vector<2x32xf32>
    %303 = math.tanh %302 : vector<2x32xf32>
    %304 = vector.extract_strided_slice %289 {offsets = [0, 96], sizes = [2, 32], strides = [1, 1]} : vector<2x128xf32> to vector<2x32xf32>
    %305 = arith.negf %304 : vector<2x32xf32>
    %306 = math.exp %305 : vector<2x32xf32>
    %cst_84 = arith.constant 1.000000e+00 : f32
    %307 = vector.broadcast %cst_84 : f32 to vector<2x32xf32>
    %308 = arith.addf %307, %306 : vector<2x32xf32>
    %309 = arith.divf %307, %308 : vector<2x32xf32>
    %310 = arith.mulf %301, %243 : vector<2x32xf32>
    %311 = arith.mulf %295, %303 : vector<2x32xf32>
    %312 = arith.addf %310, %311 : vector<2x32xf32>
    %313 = math.tanh %312 : vector<2x32xf32>
    %314 = arith.mulf %309, %313 : vector<2x32xf32>
    %315 = arith.index_cast %c4_i32 : i32 to index
    %c0_85 = arith.constant 0 : index
    %c0_86 = arith.constant 0 : index
    %316 = vector.load %arg6[%315, %c0_85, %c0_86] : memref<8x2x32xf32, #tpu.memory_space<vmem>>, vector<1x2x32xf32>
    %317 = vector.shape_cast %316 : vector<1x2x32xf32> to vector<2x32xf32>
    %318 = vector.shape_cast %314 : vector<2x32xf32> to vector<1x2x32xf32>
    tpu.vector_store %arg6[%315, %c0_85, %c0_86], %318 {strides = array<i32>} : memref<8x2x32xf32, #tpu.memory_space<vmem>>, vector<1x2x32xf32>,
    %c7_i32_87 = arith.constant 7 : i32
    %319 = arith.subi %c7_i32_87, %c4_i32 : i32
    %320 = arith.index_cast %319 : i32 to index
    %c0_88 = arith.constant 0 : index
    %c0_89 = arith.constant 0 : index
    %321 = vector.load %arg3[%320, %c0_88, %c0_89] : memref<8x2x128xf32, #tpu.memory_space<vmem>>, vector<1x2x128xf32>
    %322 = vector.shape_cast %321 : vector<1x2x128xf32> to vector<2x128xf32>
    %cst_90 = arith.constant dense<0.000000e+00> : vector<2x128xf32>
    %323 = tpu.matmul %280, %4, %cst_90 {dimension_numbers = #tpu.dot_dimension_numbers<[1], [0], [0], [1], [0, 0, 1, 1], [], []>} : vector<2x32xf32>, vector<32x128xf32>, vector<2x128xf32> -> vector<2x128xf32>
    %324 = arith.addf %322, %323 : vector<2x128xf32>
    %325 = vector.extract_strided_slice %324 {offsets = [0, 0], sizes = [2, 32], strides = [1, 1]} : vector<2x128xf32> to vector<2x32xf32>
    %326 = arith.negf %325 : vector<2x32xf32>
    %327 = math.exp %326 : vector<2x32xf32>
    %cst_91 = arith.constant 1.000000e+00 : f32
    %328 = vector.broadcast %cst_91 : f32 to vector<2x32xf32>
    %329 = arith.addf %328, %327 : vector<2x32xf32>
    %330 = arith.divf %328, %329 : vector<2x32xf32>
    %331 = vector.extract_strided_slice %324 {offsets = [0, 32], sizes = [2, 32], strides = [1, 1]} : vector<2x128xf32> to vector<2x32xf32>
    %332 = arith.negf %331 : vector<2x32xf32>
    %333 = math.exp %332 : vector<2x32xf32>
    %cst_92 = arith.constant 1.000000e+00 : f32
    %334 = vector.broadcast %cst_92 : f32 to vector<2x32xf32>
    %335 = arith.addf %334, %333 : vector<2x32xf32>
    %336 = arith.divf %334, %335 : vector<2x32xf32>
    %337 = vector.extract_strided_slice %324 {offsets = [0, 64], sizes = [2, 32], strides = [1, 1]} : vector<2x128xf32> to vector<2x32xf32>
    %338 = math.tanh %337 : vector<2x32xf32>
    %339 = vector.extract_strided_slice %324 {offsets = [0, 96], sizes = [2, 32], strides = [1, 1]} : vector<2x128xf32> to vector<2x32xf32>
    %340 = arith.negf %339 : vector<2x32xf32>
    %341 = math.exp %340 : vector<2x32xf32>
    %cst_93 = arith.constant 1.000000e+00 : f32
    %342 = vector.broadcast %cst_93 : f32 to vector<2x32xf32>
    %343 = arith.addf %342, %341 : vector<2x32xf32>
    %344 = arith.divf %342, %343 : vector<2x32xf32>
    %345 = arith.mulf %336, %278 : vector<2x32xf32>
    %346 = arith.mulf %330, %338 : vector<2x32xf32>
    %347 = arith.addf %345, %346 : vector<2x32xf32>
    %348 = math.tanh %347 : vector<2x32xf32>
    %349 = arith.mulf %344, %348 : vector<2x32xf32>
    %350 = arith.index_cast %319 : i32 to index
    %c0_94 = arith.constant 0 : index
    %c0_95 = arith.constant 0 : index
    %351 = vector.load %arg7[%350, %c0_94, %c0_95] : memref<8x2x32xf32, #tpu.memory_space<vmem>>, vector<1x2x32xf32>
    %352 = vector.shape_cast %351 : vector<1x2x32xf32> to vector<2x32xf32>
    %353 = vector.shape_cast %349 : vector<2x32xf32> to vector<1x2x32xf32>
    tpu.vector_store %arg7[%350, %c0_94, %c0_95], %353 {strides = array<i32>} : memref<8x2x32xf32, #tpu.memory_space<vmem>>, vector<1x2x32xf32>,
    %c5_i32 = arith.constant 5 : i32
    %354 = arith.index_cast %c5_i32 : i32 to index
    %c0_96 = arith.constant 0 : index
    %c0_97 = arith.constant 0 : index
    %355 = vector.load %arg2[%354, %c0_96, %c0_97] : memref<8x2x128xf32, #tpu.memory_space<vmem>>, vector<1x2x128xf32>
    %356 = vector.shape_cast %355 : vector<1x2x128xf32> to vector<2x128xf32>
    %cst_98 = arith.constant dense<0.000000e+00> : vector<2x128xf32>
    %357 = tpu.matmul %314, %3, %cst_98 {dimension_numbers = #tpu.dot_dimension_numbers<[1], [0], [0], [1], [0, 0, 1, 1], [], []>} : vector<2x32xf32>, vector<32x128xf32>, vector<2x128xf32> -> vector<2x128xf32>
    %358 = arith.addf %356, %357 : vector<2x128xf32>
    %359 = vector.extract_strided_slice %358 {offsets = [0, 0], sizes = [2, 32], strides = [1, 1]} : vector<2x128xf32> to vector<2x32xf32>
    %360 = arith.negf %359 : vector<2x32xf32>
    %361 = math.exp %360 : vector<2x32xf32>
    %cst_99 = arith.constant 1.000000e+00 : f32
    %362 = vector.broadcast %cst_99 : f32 to vector<2x32xf32>
    %363 = arith.addf %362, %361 : vector<2x32xf32>
    %364 = arith.divf %362, %363 : vector<2x32xf32>
    %365 = vector.extract_strided_slice %358 {offsets = [0, 32], sizes = [2, 32], strides = [1, 1]} : vector<2x128xf32> to vector<2x32xf32>
    %366 = arith.negf %365 : vector<2x32xf32>
    %367 = math.exp %366 : vector<2x32xf32>
    %cst_100 = arith.constant 1.000000e+00 : f32
    %368 = vector.broadcast %cst_100 : f32 to vector<2x32xf32>
    %369 = arith.addf %368, %367 : vector<2x32xf32>
    %370 = arith.divf %368, %369 : vector<2x32xf32>
    %371 = vector.extract_strided_slice %358 {offsets = [0, 64], sizes = [2, 32], strides = [1, 1]} : vector<2x128xf32> to vector<2x32xf32>
    %372 = math.tanh %371 : vector<2x32xf32>
    %373 = vector.extract_strided_slice %358 {offsets = [0, 96], sizes = [2, 32], strides = [1, 1]} : vector<2x128xf32> to vector<2x32xf32>
    %374 = arith.negf %373 : vector<2x32xf32>
    %375 = math.exp %374 : vector<2x32xf32>
    %cst_101 = arith.constant 1.000000e+00 : f32
    %376 = vector.broadcast %cst_101 : f32 to vector<2x32xf32>
    %377 = arith.addf %376, %375 : vector<2x32xf32>
    %378 = arith.divf %376, %377 : vector<2x32xf32>
    %379 = arith.mulf %370, %312 : vector<2x32xf32>
    %380 = arith.mulf %364, %372 : vector<2x32xf32>
    %381 = arith.addf %379, %380 : vector<2x32xf32>
    %382 = math.tanh %381 : vector<2x32xf32>
    %383 = arith.mulf %378, %382 : vector<2x32xf32>
    %384 = arith.index_cast %c5_i32 : i32 to index
    %c0_102 = arith.constant 0 : index
    %c0_103 = arith.constant 0 : index
    %385 = vector.load %arg6[%384, %c0_102, %c0_103] : memref<8x2x32xf32, #tpu.memory_space<vmem>>, vector<1x2x32xf32>
    %386 = vector.shape_cast %385 : vector<1x2x32xf32> to vector<2x32xf32>
    %387 = vector.shape_cast %383 : vector<2x32xf32> to vector<1x2x32xf32>
    tpu.vector_store %arg6[%384, %c0_102, %c0_103], %387 {strides = array<i32>} : memref<8x2x32xf32, #tpu.memory_space<vmem>>, vector<1x2x32xf32>,
    %c7_i32_104 = arith.constant 7 : i32
    %388 = arith.subi %c7_i32_104, %c5_i32 : i32
    %389 = arith.index_cast %388 : i32 to index
    %c0_105 = arith.constant 0 : index
    %c0_106 = arith.constant 0 : index
    %390 = vector.load %arg3[%389, %c0_105, %c0_106] : memref<8x2x128xf32, #tpu.memory_space<vmem>>, vector<1x2x128xf32>
    %391 = vector.shape_cast %390 : vector<1x2x128xf32> to vector<2x128xf32>
    %cst_107 = arith.constant dense<0.000000e+00> : vector<2x128xf32>
    %392 = tpu.matmul %349, %4, %cst_107 {dimension_numbers = #tpu.dot_dimension_numbers<[1], [0], [0], [1], [0, 0, 1, 1], [], []>} : vector<2x32xf32>, vector<32x128xf32>, vector<2x128xf32> -> vector<2x128xf32>
    %393 = arith.addf %391, %392 : vector<2x128xf32>
    %394 = vector.extract_strided_slice %393 {offsets = [0, 0], sizes = [2, 32], strides = [1, 1]} : vector<2x128xf32> to vector<2x32xf32>
    %395 = arith.negf %394 : vector<2x32xf32>
    %396 = math.exp %395 : vector<2x32xf32>
    %cst_108 = arith.constant 1.000000e+00 : f32
    %397 = vector.broadcast %cst_108 : f32 to vector<2x32xf32>
    %398 = arith.addf %397, %396 : vector<2x32xf32>
    %399 = arith.divf %397, %398 : vector<2x32xf32>
    %400 = vector.extract_strided_slice %393 {offsets = [0, 32], sizes = [2, 32], strides = [1, 1]} : vector<2x128xf32> to vector<2x32xf32>
    %401 = arith.negf %400 : vector<2x32xf32>
    %402 = math.exp %401 : vector<2x32xf32>
    %cst_109 = arith.constant 1.000000e+00 : f32
    %403 = vector.broadcast %cst_109 : f32 to vector<2x32xf32>
    %404 = arith.addf %403, %402 : vector<2x32xf32>
    %405 = arith.divf %403, %404 : vector<2x32xf32>
    %406 = vector.extract_strided_slice %393 {offsets = [0, 64], sizes = [2, 32], strides = [1, 1]} : vector<2x128xf32> to vector<2x32xf32>
    %407 = math.tanh %406 : vector<2x32xf32>
    %408 = vector.extract_strided_slice %393 {offsets = [0, 96], sizes = [2, 32], strides = [1, 1]} : vector<2x128xf32> to vector<2x32xf32>
    %409 = arith.negf %408 : vector<2x32xf32>
    %410 = math.exp %409 : vector<2x32xf32>
    %cst_110 = arith.constant 1.000000e+00 : f32
    %411 = vector.broadcast %cst_110 : f32 to vector<2x32xf32>
    %412 = arith.addf %411, %410 : vector<2x32xf32>
    %413 = arith.divf %411, %412 : vector<2x32xf32>
    %414 = arith.mulf %405, %347 : vector<2x32xf32>
    %415 = arith.mulf %399, %407 : vector<2x32xf32>
    %416 = arith.addf %414, %415 : vector<2x32xf32>
    %417 = math.tanh %416 : vector<2x32xf32>
    %418 = arith.mulf %413, %417 : vector<2x32xf32>
    %419 = arith.index_cast %388 : i32 to index
    %c0_111 = arith.constant 0 : index
    %c0_112 = arith.constant 0 : index
    %420 = vector.load %arg7[%419, %c0_111, %c0_112] : memref<8x2x32xf32, #tpu.memory_space<vmem>>, vector<1x2x32xf32>
    %421 = vector.shape_cast %420 : vector<1x2x32xf32> to vector<2x32xf32>
    %422 = vector.shape_cast %418 : vector<2x32xf32> to vector<1x2x32xf32>
    tpu.vector_store %arg7[%419, %c0_111, %c0_112], %422 {strides = array<i32>} : memref<8x2x32xf32, #tpu.memory_space<vmem>>, vector<1x2x32xf32>,
    %c6_i32 = arith.constant 6 : i32
    %423 = arith.index_cast %c6_i32 : i32 to index
    %c0_113 = arith.constant 0 : index
    %c0_114 = arith.constant 0 : index
    %424 = vector.load %arg2[%423, %c0_113, %c0_114] : memref<8x2x128xf32, #tpu.memory_space<vmem>>, vector<1x2x128xf32>
    %425 = vector.shape_cast %424 : vector<1x2x128xf32> to vector<2x128xf32>
    %cst_115 = arith.constant dense<0.000000e+00> : vector<2x128xf32>
    %426 = tpu.matmul %383, %3, %cst_115 {dimension_numbers = #tpu.dot_dimension_numbers<[1], [0], [0], [1], [0, 0, 1, 1], [], []>} : vector<2x32xf32>, vector<32x128xf32>, vector<2x128xf32> -> vector<2x128xf32>
    %427 = arith.addf %425, %426 : vector<2x128xf32>
    %428 = vector.extract_strided_slice %427 {offsets = [0, 0], sizes = [2, 32], strides = [1, 1]} : vector<2x128xf32> to vector<2x32xf32>
    %429 = arith.negf %428 : vector<2x32xf32>
    %430 = math.exp %429 : vector<2x32xf32>
    %cst_116 = arith.constant 1.000000e+00 : f32
    %431 = vector.broadcast %cst_116 : f32 to vector<2x32xf32>
    %432 = arith.addf %431, %430 : vector<2x32xf32>
    %433 = arith.divf %431, %432 : vector<2x32xf32>
    %434 = vector.extract_strided_slice %427 {offsets = [0, 32], sizes = [2, 32], strides = [1, 1]} : vector<2x128xf32> to vector<2x32xf32>
    %435 = arith.negf %434 : vector<2x32xf32>
    %436 = math.exp %435 : vector<2x32xf32>
    %cst_117 = arith.constant 1.000000e+00 : f32
    %437 = vector.broadcast %cst_117 : f32 to vector<2x32xf32>
    %438 = arith.addf %437, %436 : vector<2x32xf32>
    %439 = arith.divf %437, %438 : vector<2x32xf32>
    %440 = vector.extract_strided_slice %427 {offsets = [0, 64], sizes = [2, 32], strides = [1, 1]} : vector<2x128xf32> to vector<2x32xf32>
    %441 = math.tanh %440 : vector<2x32xf32>
    %442 = vector.extract_strided_slice %427 {offsets = [0, 96], sizes = [2, 32], strides = [1, 1]} : vector<2x128xf32> to vector<2x32xf32>
    %443 = arith.negf %442 : vector<2x32xf32>
    %444 = math.exp %443 : vector<2x32xf32>
    %cst_118 = arith.constant 1.000000e+00 : f32
    %445 = vector.broadcast %cst_118 : f32 to vector<2x32xf32>
    %446 = arith.addf %445, %444 : vector<2x32xf32>
    %447 = arith.divf %445, %446 : vector<2x32xf32>
    %448 = arith.mulf %439, %381 : vector<2x32xf32>
    %449 = arith.mulf %433, %441 : vector<2x32xf32>
    %450 = arith.addf %448, %449 : vector<2x32xf32>
    %451 = math.tanh %450 : vector<2x32xf32>
    %452 = arith.mulf %447, %451 : vector<2x32xf32>
    %453 = arith.index_cast %c6_i32 : i32 to index
    %c0_119 = arith.constant 0 : index
    %c0_120 = arith.constant 0 : index
    %454 = vector.load %arg6[%453, %c0_119, %c0_120] : memref<8x2x32xf32, #tpu.memory_space<vmem>>, vector<1x2x32xf32>
    %455 = vector.shape_cast %454 : vector<1x2x32xf32> to vector<2x32xf32>
    %456 = vector.shape_cast %452 : vector<2x32xf32> to vector<1x2x32xf32>
    tpu.vector_store %arg6[%453, %c0_119, %c0_120], %456 {strides = array<i32>} : memref<8x2x32xf32, #tpu.memory_space<vmem>>, vector<1x2x32xf32>,
    %c7_i32_121 = arith.constant 7 : i32
    %457 = arith.subi %c7_i32_121, %c6_i32 : i32
    %458 = arith.index_cast %457 : i32 to index
    %c0_122 = arith.constant 0 : index
    %c0_123 = arith.constant 0 : index
    %459 = vector.load %arg3[%458, %c0_122, %c0_123] : memref<8x2x128xf32, #tpu.memory_space<vmem>>, vector<1x2x128xf32>
    %460 = vector.shape_cast %459 : vector<1x2x128xf32> to vector<2x128xf32>
    %cst_124 = arith.constant dense<0.000000e+00> : vector<2x128xf32>
    %461 = tpu.matmul %418, %4, %cst_124 {dimension_numbers = #tpu.dot_dimension_numbers<[1], [0], [0], [1], [0, 0, 1, 1], [], []>} : vector<2x32xf32>, vector<32x128xf32>, vector<2x128xf32> -> vector<2x128xf32>
    %462 = arith.addf %460, %461 : vector<2x128xf32>
    %463 = vector.extract_strided_slice %462 {offsets = [0, 0], sizes = [2, 32], strides = [1, 1]} : vector<2x128xf32> to vector<2x32xf32>
    %464 = arith.negf %463 : vector<2x32xf32>
    %465 = math.exp %464 : vector<2x32xf32>
    %cst_125 = arith.constant 1.000000e+00 : f32
    %466 = vector.broadcast %cst_125 : f32 to vector<2x32xf32>
    %467 = arith.addf %466, %465 : vector<2x32xf32>
    %468 = arith.divf %466, %467 : vector<2x32xf32>
    %469 = vector.extract_strided_slice %462 {offsets = [0, 32], sizes = [2, 32], strides = [1, 1]} : vector<2x128xf32> to vector<2x32xf32>
    %470 = arith.negf %469 : vector<2x32xf32>
    %471 = math.exp %470 : vector<2x32xf32>
    %cst_126 = arith.constant 1.000000e+00 : f32
    %472 = vector.broadcast %cst_126 : f32 to vector<2x32xf32>
    %473 = arith.addf %472, %471 : vector<2x32xf32>
    %474 = arith.divf %472, %473 : vector<2x32xf32>
    %475 = vector.extract_strided_slice %462 {offsets = [0, 64], sizes = [2, 32], strides = [1, 1]} : vector<2x128xf32> to vector<2x32xf32>
    %476 = math.tanh %475 : vector<2x32xf32>
    %477 = vector.extract_strided_slice %462 {offsets = [0, 96], sizes = [2, 32], strides = [1, 1]} : vector<2x128xf32> to vector<2x32xf32>
    %478 = arith.negf %477 : vector<2x32xf32>
    %479 = math.exp %478 : vector<2x32xf32>
    %cst_127 = arith.constant 1.000000e+00 : f32
    %480 = vector.broadcast %cst_127 : f32 to vector<2x32xf32>
    %481 = arith.addf %480, %479 : vector<2x32xf32>
    %482 = arith.divf %480, %481 : vector<2x32xf32>
    %483 = arith.mulf %474, %416 : vector<2x32xf32>
    %484 = arith.mulf %468, %476 : vector<2x32xf32>
    %485 = arith.addf %483, %484 : vector<2x32xf32>
    %486 = math.tanh %485 : vector<2x32xf32>
    %487 = arith.mulf %482, %486 : vector<2x32xf32>
    %488 = arith.index_cast %457 : i32 to index
    %c0_128 = arith.constant 0 : index
    %c0_129 = arith.constant 0 : index
    %489 = vector.load %arg7[%488, %c0_128, %c0_129] : memref<8x2x32xf32, #tpu.memory_space<vmem>>, vector<1x2x32xf32>
    %490 = vector.shape_cast %489 : vector<1x2x32xf32> to vector<2x32xf32>
    %491 = vector.shape_cast %487 : vector<2x32xf32> to vector<1x2x32xf32>
    tpu.vector_store %arg7[%488, %c0_128, %c0_129], %491 {strides = array<i32>} : memref<8x2x32xf32, #tpu.memory_space<vmem>>, vector<1x2x32xf32>,
    %c7_i32_130 = arith.constant 7 : i32
    %492 = arith.index_cast %c7_i32_130 : i32 to index
    %c0_131 = arith.constant 0 : index
    %c0_132 = arith.constant 0 : index
    %493 = vector.load %arg2[%492, %c0_131, %c0_132] : memref<8x2x128xf32, #tpu.memory_space<vmem>>, vector<1x2x128xf32>
    %494 = vector.shape_cast %493 : vector<1x2x128xf32> to vector<2x128xf32>
    %cst_133 = arith.constant dense<0.000000e+00> : vector<2x128xf32>
    %495 = tpu.matmul %452, %3, %cst_133 {dimension_numbers = #tpu.dot_dimension_numbers<[1], [0], [0], [1], [0, 0, 1, 1], [], []>} : vector<2x32xf32>, vector<32x128xf32>, vector<2x128xf32> -> vector<2x128xf32>
    %496 = arith.addf %494, %495 : vector<2x128xf32>
    %497 = vector.extract_strided_slice %496 {offsets = [0, 0], sizes = [2, 32], strides = [1, 1]} : vector<2x128xf32> to vector<2x32xf32>
    %498 = arith.negf %497 : vector<2x32xf32>
    %499 = math.exp %498 : vector<2x32xf32>
    %cst_134 = arith.constant 1.000000e+00 : f32
    %500 = vector.broadcast %cst_134 : f32 to vector<2x32xf32>
    %501 = arith.addf %500, %499 : vector<2x32xf32>
    %502 = arith.divf %500, %501 : vector<2x32xf32>
    %503 = vector.extract_strided_slice %496 {offsets = [0, 32], sizes = [2, 32], strides = [1, 1]} : vector<2x128xf32> to vector<2x32xf32>
    %504 = arith.negf %503 : vector<2x32xf32>
    %505 = math.exp %504 : vector<2x32xf32>
    %cst_135 = arith.constant 1.000000e+00 : f32
    %506 = vector.broadcast %cst_135 : f32 to vector<2x32xf32>
    %507 = arith.addf %506, %505 : vector<2x32xf32>
    %508 = arith.divf %506, %507 : vector<2x32xf32>
    %509 = vector.extract_strided_slice %496 {offsets = [0, 64], sizes = [2, 32], strides = [1, 1]} : vector<2x128xf32> to vector<2x32xf32>
    %510 = math.tanh %509 : vector<2x32xf32>
    %511 = vector.extract_strided_slice %496 {offsets = [0, 96], sizes = [2, 32], strides = [1, 1]} : vector<2x128xf32> to vector<2x32xf32>
    %512 = arith.negf %511 : vector<2x32xf32>
    %513 = math.exp %512 : vector<2x32xf32>
    %cst_136 = arith.constant 1.000000e+00 : f32
    %514 = vector.broadcast %cst_136 : f32 to vector<2x32xf32>
    %515 = arith.addf %514, %513 : vector<2x32xf32>
    %516 = arith.divf %514, %515 : vector<2x32xf32>
    %517 = arith.mulf %508, %450 : vector<2x32xf32>
    %518 = arith.mulf %502, %510 : vector<2x32xf32>
    %519 = arith.addf %517, %518 : vector<2x32xf32>
    %520 = math.tanh %519 : vector<2x32xf32>
    %521 = arith.mulf %516, %520 : vector<2x32xf32>
    %522 = arith.index_cast %c7_i32_130 : i32 to index
    %c0_137 = arith.constant 0 : index
    %c0_138 = arith.constant 0 : index
    %523 = vector.load %arg6[%522, %c0_137, %c0_138] : memref<8x2x32xf32, #tpu.memory_space<vmem>>, vector<1x2x32xf32>
    %524 = vector.shape_cast %523 : vector<1x2x32xf32> to vector<2x32xf32>
    %525 = vector.shape_cast %521 : vector<2x32xf32> to vector<1x2x32xf32>
    tpu.vector_store %arg6[%522, %c0_137, %c0_138], %525 {strides = array<i32>} : memref<8x2x32xf32, #tpu.memory_space<vmem>>, vector<1x2x32xf32>,
    %c7_i32_139 = arith.constant 7 : i32
    %526 = arith.subi %c7_i32_139, %c7_i32_130 : i32
    %527 = arith.index_cast %526 : i32 to index
    %c0_140 = arith.constant 0 : index
    %c0_141 = arith.constant 0 : index
    %528 = vector.load %arg3[%527, %c0_140, %c0_141] : memref<8x2x128xf32, #tpu.memory_space<vmem>>, vector<1x2x128xf32>
    %529 = vector.shape_cast %528 : vector<1x2x128xf32> to vector<2x128xf32>
    %cst_142 = arith.constant dense<0.000000e+00> : vector<2x128xf32>
    %530 = tpu.matmul %487, %4, %cst_142 {dimension_numbers = #tpu.dot_dimension_numbers<[1], [0], [0], [1], [0, 0, 1, 1], [], []>} : vector<2x32xf32>, vector<32x128xf32>, vector<2x128xf32> -> vector<2x128xf32>
    %531 = arith.addf %529, %530 : vector<2x128xf32>
    %532 = vector.extract_strided_slice %531 {offsets = [0, 0], sizes = [2, 32], strides = [1, 1]} : vector<2x128xf32> to vector<2x32xf32>
    %533 = arith.negf %532 : vector<2x32xf32>
    %534 = math.exp %533 : vector<2x32xf32>
    %cst_143 = arith.constant 1.000000e+00 : f32
    %535 = vector.broadcast %cst_143 : f32 to vector<2x32xf32>
    %536 = arith.addf %535, %534 : vector<2x32xf32>
    %537 = arith.divf %535, %536 : vector<2x32xf32>
    %538 = vector.extract_strided_slice %531 {offsets = [0, 32], sizes = [2, 32], strides = [1, 1]} : vector<2x128xf32> to vector<2x32xf32>
    %539 = arith.negf %538 : vector<2x32xf32>
    %540 = math.exp %539 : vector<2x32xf32>
    %cst_144 = arith.constant 1.000000e+00 : f32
    %541 = vector.broadcast %cst_144 : f32 to vector<2x32xf32>
    %542 = arith.addf %541, %540 : vector<2x32xf32>
    %543 = arith.divf %541, %542 : vector<2x32xf32>
    %544 = vector.extract_strided_slice %531 {offsets = [0, 64], sizes = [2, 32], strides = [1, 1]} : vector<2x128xf32> to vector<2x32xf32>
    %545 = math.tanh %544 : vector<2x32xf32>
    %546 = vector.extract_strided_slice %531 {offsets = [0, 96], sizes = [2, 32], strides = [1, 1]} : vector<2x128xf32> to vector<2x32xf32>
    %547 = arith.negf %546 : vector<2x32xf32>
    %548 = math.exp %547 : vector<2x32xf32>
    %cst_145 = arith.constant 1.000000e+00 : f32
    %549 = vector.broadcast %cst_145 : f32 to vector<2x32xf32>
    %550 = arith.addf %549, %548 : vector<2x32xf32>
    %551 = arith.divf %549, %550 : vector<2x32xf32>
    %552 = arith.mulf %543, %485 : vector<2x32xf32>
    %553 = arith.mulf %537, %545 : vector<2x32xf32>
    %554 = arith.addf %552, %553 : vector<2x32xf32>
    %555 = math.tanh %554 : vector<2x32xf32>
    %556 = arith.mulf %551, %555 : vector<2x32xf32>
    %557 = arith.index_cast %526 : i32 to index
    %c0_146 = arith.constant 0 : index
    %c0_147 = arith.constant 0 : index
    %558 = vector.load %arg7[%557, %c0_146, %c0_147] : memref<8x2x32xf32, #tpu.memory_space<vmem>>, vector<1x2x32xf32>
    %559 = vector.shape_cast %558 : vector<1x2x32xf32> to vector<2x32xf32>
    %560 = vector.shape_cast %556 : vector<2x32xf32> to vector<1x2x32xf32>
    tpu.vector_store %arg7[%557, %c0_146, %c0_147], %560 {strides = array<i32>} : memref<8x2x32xf32, #tpu.memory_space<vmem>>, vector<1x2x32xf32>,
    %c8_i32 = arith.constant 8 : i32
    %c0_148 = arith.constant 0 : index
    %c0_149 = arith.constant 0 : index
    %561 = vector.load %arg8[%c0_148, %c0_149] : memref<2x32xf32, #tpu.memory_space<vmem>>, vector<2x32xf32>
    tpu.vector_store %arg8[%c0_148, %c0_149], %521 {strides = array<i32>} : memref<2x32xf32, #tpu.memory_space<vmem>>, vector<2x32xf32>,
    %c0_150 = arith.constant 0 : index
    %c0_151 = arith.constant 0 : index
    %562 = vector.load %arg9[%c0_150, %c0_151] : memref<2x32xf32, #tpu.memory_space<vmem>>, vector<2x32xf32>
    tpu.vector_store %arg9[%c0_150, %c0_151], %519 {strides = array<i32>} : memref<2x32xf32, #tpu.memory_space<vmem>>, vector<2x32xf32>,
    %c0_152 = arith.constant 0 : index
    %c0_153 = arith.constant 0 : index
    %563 = vector.load %arg10[%c0_152, %c0_153] : memref<2x32xf32, #tpu.memory_space<vmem>>, vector<2x32xf32>
    tpu.vector_store %arg10[%c0_152, %c0_153], %556 {strides = array<i32>} : memref<2x32xf32, #tpu.memory_space<vmem>>, vector<2x32xf32>,
    %c0_154 = arith.constant 0 : index
    %c0_155 = arith.constant 0 : index
    %564 = vector.load %arg11[%c0_154, %c0_155] : memref<2x32xf32, #tpu.memory_space<vmem>>, vector<2x32xf32>
    tpu.vector_store %arg11[%c0_154, %c0_155], %554 {strides = array<i32>} : memref<2x32xf32, #tpu.memory_space<vmem>>, vector<2x32xf32>,
    return
  }
  func.func @transform_0(%arg0: i32, %arg1: i32) -> (i32, i32, i32) {
    %c0_i32 = arith.constant 0 : i32
    %c0_i32_0 = arith.constant 0 : i32
    return %arg1, %arg0, %c0_i32 : i32, i32, i32
  }
  func.func @transform_1(%arg0: i32, %arg1: i32) -> (i32, i32, i32) {
    %c0_i32 = arith.constant 0 : i32
    %0 = arith.subi %c0_i32, %arg1 : i32
    %c1_i32 = arith.constant 1 : i32
    %c0_i32_0 = arith.constant 0 : i32
    return %0, %arg0, %c1_i32 : i32, i32, i32
  }
  func.func @transform_2(%arg0: i32, %arg1: i32) -> (i32, i32) {
    %c0_i32 = arith.constant 0 : i32
    %c0_i32_0 = arith.constant 0 : i32
    %c0_i32_1 = arith.constant 0 : i32
    return %c0_i32, %c0_i32_0 : i32, i32
  }
  func.func @transform_3(%arg0: i32, %arg1: i32) -> (i32, i32) {
    %c0_i32 = arith.constant 0 : i32
    %c0_i32_0 = arith.constant 0 : i32
    %c0_i32_1 = arith.constant 0 : i32
    return %c0_i32, %c0_i32_0 : i32, i32
  }
  func.func @transform_4(%arg0: i32, %arg1: i32) -> (i32, i32, i32) {
    %c0_i32 = arith.constant 0 : i32
    %c0_i32_0 = arith.constant 0 : i32
    return %arg1, %arg0, %c0_i32 : i32, i32, i32
  }
  func.func @transform_5(%arg0: i32, %arg1: i32) -> (i32, i32, i32) {
    %c0_i32 = arith.constant 0 : i32
    %0 = arith.subi %c0_i32, %arg1 : i32
    %c0_i32_0 = arith.constant 0 : i32
    %c0_i32_1 = arith.constant 0 : i32
    return %0, %arg0, %c0_i32_0 : i32, i32, i32
  }
}

module attributes {stable_mosaic.version = 11 : i64} {
  func.func @_proj_dual_kernel(%arg0: i32, %arg1: memref<16x32xf32, #tpu.memory_space<vmem>>, %arg2: memref<16x32xf32, #tpu.memory_space<vmem>>, %arg3: memref<32x8xf32, #tpu.memory_space<vmem>>, %arg4: memref<32x8xf32, #tpu.memory_space<vmem>>, %arg5: memref<1x8xf32, #tpu.memory_space<vmem>>, %arg6: memref<16x8xf32, #tpu.memory_space<vmem>>) attributes {dimension_semantics = [#tpu.dimension_semantics<parallel>], iteration_bounds = array<i64: 1>, scalar_prefetch = 0 : i64, scratch_operands = 0 : i64, tpu.core_type = #tpu.core_type<tc>, window_params = [{transform_indices = @transform_0, window_bounds = array<i64: 16, 32>}, {transform_indices = @transform_1, window_bounds = array<i64: 16, 32>}, {pipeline_mode = #tpu.pipeline_mode<synchronous>, transform_indices = @transform_2, window_bounds = array<i64: 32, 8>}, {pipeline_mode = #tpu.pipeline_mode<synchronous>, transform_indices = @transform_3, window_bounds = array<i64: 32, 8>}, {pipeline_mode = #tpu.pipeline_mode<synchronous>, transform_indices = @transform_4, window_bounds = array<i64: 1, 8>}, {transform_indices = @transform_5, window_bounds = array<i64: 16, 8>}]} {
    %c0 = arith.constant 0 : index
    %c0_0 = arith.constant 0 : index
    %0 = vector.load %arg1[%c0, %c0_0] : memref<16x32xf32, #tpu.memory_space<vmem>>, vector<16x32xf32>
    %c0_1 = arith.constant 0 : index
    %c0_2 = arith.constant 0 : index
    %1 = vector.load %arg3[%c0_1, %c0_2] : memref<32x8xf32, #tpu.memory_space<vmem>>, vector<32x8xf32>
    %cst = arith.constant dense<0.000000e+00> : vector<16x8xf32>
    %2 = tpu.matmul %0, %1, %cst {dimension_numbers = #tpu.dot_dimension_numbers<[1], [0], [0], [1], [0, 0, 1, 1], [], []>} : vector<16x32xf32>, vector<32x8xf32>, vector<16x8xf32> -> vector<16x8xf32>
    %c0_3 = arith.constant 0 : index
    %c0_4 = arith.constant 0 : index
    %3 = vector.load %arg2[%c0_3, %c0_4] : memref<16x32xf32, #tpu.memory_space<vmem>>, vector<16x32xf32>
    %c0_5 = arith.constant 0 : index
    %c0_6 = arith.constant 0 : index
    %4 = vector.load %arg4[%c0_5, %c0_6] : memref<32x8xf32, #tpu.memory_space<vmem>>, vector<32x8xf32>
    %cst_7 = arith.constant dense<0.000000e+00> : vector<16x8xf32>
    %5 = tpu.matmul %3, %4, %cst_7 {dimension_numbers = #tpu.dot_dimension_numbers<[1], [0], [0], [1], [0, 0, 1, 1], [], []>} : vector<16x32xf32>, vector<32x8xf32>, vector<16x8xf32> -> vector<16x8xf32>
    %6 = arith.addf %2, %5 : vector<16x8xf32>
    %c0_8 = arith.constant 0 : index
    %c0_9 = arith.constant 0 : index
    %7 = vector.load %arg5[%c0_8, %c0_9] : memref<1x8xf32, #tpu.memory_space<vmem>>, vector<1x8xf32>
    %8 = vector.broadcast %7 : vector<1x8xf32> to vector<16x8xf32>
    %9 = arith.addf %6, %8 : vector<16x8xf32>
    %c0_10 = arith.constant 0 : index
    %c0_11 = arith.constant 0 : index
    %10 = vector.load %arg6[%c0_10, %c0_11] : memref<16x8xf32, #tpu.memory_space<vmem>>, vector<16x8xf32>
    tpu.vector_store %arg6[%c0_10, %c0_11], %9 {strides = array<i32>} : memref<16x8xf32, #tpu.memory_space<vmem>>, vector<16x8xf32>,
    return
  }
  func.func @transform_0(%arg0: i32) -> (i32, i32) {
    %c0_i32 = arith.constant 0 : i32
    %c0_i32_0 = arith.constant 0 : i32
    return %arg0, %c0_i32 : i32, i32
  }
  func.func @transform_1(%arg0: i32) -> (i32, i32) {
    %c0_i32 = arith.constant 0 : i32
    %c0_i32_0 = arith.constant 0 : i32
    return %arg0, %c0_i32 : i32, i32
  }
  func.func @transform_2(%arg0: i32) -> (i32, i32) {
    %c0_i32 = arith.constant 0 : i32
    %c0_i32_0 = arith.constant 0 : i32
    %c0_i32_1 = arith.constant 0 : i32
    return %c0_i32, %c0_i32_0 : i32, i32
  }
  func.func @transform_3(%arg0: i32) -> (i32, i32) {
    %c0_i32 = arith.constant 0 : i32
    %c0_i32_0 = arith.constant 0 : i32
    %c0_i32_1 = arith.constant 0 : i32
    return %c0_i32, %c0_i32_0 : i32, i32
  }
  func.func @transform_4(%arg0: i32) -> (i32, i32) {
    %c0_i32 = arith.constant 0 : i32
    %c0_i32_0 = arith.constant 0 : i32
    %c0_i32_1 = arith.constant 0 : i32
    return %c0_i32, %c0_i32_0 : i32, i32
  }
  func.func @transform_5(%arg0: i32) -> (i32, i32) {
    %c0_i32 = arith.constant 0 : i32
    %c0_i32_0 = arith.constant 0 : i32
    return %arg0, %c0_i32 : i32, i32
  }
}

module attributes {stable_mosaic.version = 11 : i64} {
  func.func @kernel(%arg0: i32, %arg1: memref<8x2x8xf32, #tpu.memory_space<vmem>>, %arg2: memref<2x4xf32, #tpu.memory_space<vmem>>) attributes {dimension_semantics = [#tpu.dimension_semantics<arbitrary>], iteration_bounds = array<i64: 1>, scalar_prefetch = 0 : i64, scratch_operands = 0 : i64, tpu.core_type = #tpu.core_type<tc>, window_params = [{pipeline_mode = #tpu.pipeline_mode<synchronous>, transform_indices = @transform_0, window_bounds = array<i64: 8, 2, 8>}, {pipeline_mode = #tpu.pipeline_mode<synchronous>, transform_indices = @transform_1, window_bounds = array<i64: 2, 4>}]} {
    %c0 = arith.constant 0 : index
    %c0_0 = arith.constant 0 : index
    %c0_1 = arith.constant 0 : index
    %0 = vector.load %arg1[%c0, %c0_0, %c0_1] : memref<8x2x8xf32, #tpu.memory_space<vmem>>, vector<8x2x8xf32>
    %1 = vector.extract_strided_slice %0 {offsets = [0, 0, 0], sizes = [8, 2, 4], strides = [1, 1, 1]} : vector<8x2x8xf32> to vector<8x2x4xf32>
    %2 = vector.extract_strided_slice %0 {offsets = [0, 0, 4], sizes = [8, 2, 4], strides = [1, 1, 1]} : vector<8x2x8xf32> to vector<8x2x4xf32>
    %cst = arith.constant dense<0xFF800000> : vector<2x4xf32>
    %3 = vector.multi_reduction <maximumf>, %2, %cst [0] : vector<8x2x4xf32> to vector<2x4xf32>
    %4 = vector.shape_cast %3 : vector<2x4xf32> to vector<1x2x4xf32>
    %5 = vector.broadcast %4 : vector<1x2x4xf32> to vector<8x2x4xf32>
    %6 = arith.subf %2, %5 : vector<8x2x4xf32>
    %7 = math.exp %6 : vector<8x2x4xf32>
    %cst_2 = arith.constant dense<0.000000e+00> : vector<2x4xf32>
    %8 = vector.multi_reduction <add>, %7, %cst_2 [0] : vector<8x2x4xf32> to vector<2x4xf32>
    %9 = vector.shape_cast %8 : vector<2x4xf32> to vector<1x2x4xf32>
    %10 = vector.broadcast %9 : vector<1x2x4xf32> to vector<8x2x4xf32>
    %11 = arith.divf %7, %10 : vector<8x2x4xf32>
    %12 = arith.mulf %11, %1 : vector<8x2x4xf32>
    %cst_3 = arith.constant dense<0.000000e+00> : vector<2x4xf32>
    %13 = vector.multi_reduction <add>, %12, %cst_3 [0] : vector<8x2x4xf32> to vector<2x4xf32>
    %c0_4 = arith.constant 0 : index
    %c0_5 = arith.constant 0 : index
    %14 = vector.load %arg2[%c0_4, %c0_5] : memref<2x4xf32, #tpu.memory_space<vmem>>, vector<2x4xf32>
    tpu.vector_store %arg2[%c0_4, %c0_5], %13 {strides = array<i32>} : memref<2x4xf32, #tpu.memory_space<vmem>>, vector<2x4xf32>,
    return
  }
  func.func @transform_0(%arg0: i32) -> (i32, i32, i32) {
    %c0_i32 = arith.constant 0 : i32
    %c0_i32_0 = arith.constant 0 : i32
    %c0_i32_1 = arith.constant 0 : i32
    %c0_i32_2 = arith.constant 0 : i32
    return %c0_i32, %c0_i32_0, %c0_i32_1 : i32, i32, i32
  }
  func.func @transform_1(%arg0: i32) -> (i32, i32) {
    %c0_i32 = arith.constant 0 : i32
    %c0_i32_0 = arith.constant 0 : i32
    %c0_i32_1 = arith.constant 0 : i32
    return %c0_i32, %c0_i32_0 : i32, i32
  }
}

</mosaic_0001>

<bundles_post_ra>
// kernel: lstm_dual_attn_forward.10
= control target key start
LH: loop header
LB: loop body
LE: loop exit
PB: predicated region body
PF: predicated region fallthrough
CT: control target
= control target key end

     0   :  { %vm40_vm0 = vcmask 261120   ;;  %s284_s2 = inlined_call_operand.vmem [shape: f32[32,256], index: 2, kind: input, shape index: {}]   ;;  %s285_s3 = inlined_call_operand.vmem [shape: f32[32,256], index: 3, kind: input, shape index: {}]   ;;  %s286_s0 = inlined_call_operand.vmem [shape: f32[16,32], index: 0, kind: input, shape index: {}]   ;;  %s287_s1 = inlined_call_operand.vmem [shape: f32[16,32], index: 1, kind: input, shape index: {}]   ;;  %s288_s4 = inlined_call_operand.vmem [shape: f32[1,256], index: 4, kind: input, shape index: {}]   ;;  %s289_s5 = inlined_call_operand.vmem [shape: f32[16,256], index: 5, kind: output, shape index: {}]  }
   0x1   :  { %v28_v0 = vld [vmem:[%s284_s2 + $0x30] sm:$0xff]  ;;  %v29_v1 = vld [vmem:[%s284_s2 + $0x38] sm:$0xff]  ;;  %v26_v2 = vld [vmem:[%s284_s2 + $0x20] sm:$0xff] }
   0x2   :  { %111 = vmatpush.msra.mxu2 %v28_v0  ;;  %134 = vmatpush.msra.mxu3 %v29_v1  ;;  %v27_v3 = vld [vmem:[%s284_s2 + $0x28] sm:$0xff]  ;;  %v24_v4 = vld [vmem:[%s284_s2 + $0x10] sm:$0xff]  ;;  %v25_v5 = vld [vmem:[%s284_s2 + $0x18] sm:$0xff] }
   0x3   :  { %v38_v6 = vld [vmem:[%s285_s3 + $0x30] sm:$0xff]  ;;  %v39_v7 = vld [vmem:[%s285_s3 + $0x38] sm:$0xff]  ;;  %v36_v8 = vld [vmem:[%s285_s3 + $0x20] sm:$0xff] }
   0x4   :  { %112 = vmatpush.msra.mxu2 %v26_v2  ;;  %135 = vmatpush.msra.mxu3 %v27_v3  ;;  %v22_v9 = vld [vmem:[%s284_s2] sm:$0xff]  ;;  %v23_v10 = vld [vmem:[%s284_s2 + $0x8] sm:$0xff]  ;;  %v34_v13 = vld [vmem:[%s285_s3 + $0x10] sm:$0xff] }
   0x5   :  { %59 = vmatpush.msra.mxu0 %v38_v6  ;;  %82 = vmatpush.msra.mxu1 %v39_v7  ;;  %v37_v11 = vld [vmem:[%s285_s3 + $0x28] sm:$0xff]  ;;  %v20_v12 = vld [vmem:[%s286_s0] sm:$0xff]  ;;  %v35_v14 = vld [vmem:[%s285_s3 + $0x18] sm:$0xff] }
   0x6   :  { %113 = vmatpush.msra.mxu2 %v24_v4  ;;  %136 = vmatpush.msra.mxu3 %v25_v5  ;;  %v32_v15 = vld [vmem:[%s285_s3] sm:$0xff]  ;;  %v33_v16 = vld [vmem:[%s285_s3 + $0x8] sm:$0xff] }
   0x7   :  { %60 = vmatpush.msra.mxu0 %v36_v8  ;;  %83 = vmatpush.msra.mxu1 %v37_v11  ;;  %v30_v17 = vld [vmem:[%s287_s1] sm:$0xff]  ;;  %v21_v18 = vld [vmem:[%s286_s0 + $0x8] sm:$0xff] }
   0x8   :  { %114 = vmatpush.msra.mxu2 %v22_v9  ;;  %137 = vmatpush.msra.mxu3 %v23_v10  ;;  %v31_v19 = vld [vmem:[%s287_s1 + $0x8] sm:$0xff]  ;;  %v145_v20 = vld [vmem:[%s288_s4] sm:$0x3] }
   0x9   :  { %167 = vmatmul.msk.f32.vlgmr.msra.gmra.mxu2 %vm40_vm0, %v20_v12  ;;  %169 = vmatmul.msk.f32.vlgmr.msra.gmra.mxu3 %vm40_vm0, %v20_v12  ;;  %v147_v23 = vperm.slane %v145_v20, 0  ;;  %v148_v24 = vperm.slane %v145_v20, 1 }
   0xa   :  { %61 = vmatpush.msra.mxu0 %v34_v13  ;;  %84 = vmatpush.msra.mxu1 %v35_v14 }
   0xc   :  { %62 = vmatpush.msra.mxu0 %v32_v15  ;;  %85 = vmatpush.msra.mxu1 %v33_v16 }
   0xd   :  { %163 = vmatmul.msk.f32.vlgmr.msra.gmra.mxu0 %vm40_vm0, %v30_v17  ;;  %165 = vmatmul.msk.f32.vlgmr.msra.gmra.mxu1 %vm40_vm0, %v30_v17 }
  0x11   :  { %168 = vmatmul.msk.f32.gmra.mxu2 %vm40_vm0, %v21_v18  ;;  %170 = vmatmul.msk.f32.gmra.mxu3 %vm40_vm0, %v21_v18 }
  0x15   :  { %164 = vmatmul.msk.f32.gmra.mxu0 %vm40_vm0, %v31_v19  ;;  %166 = vmatmul.msk.f32.gmra.mxu1 %vm40_vm0, %v31_v19 }
  0x8a   :  { %v64_v21 = vpop.f32.mrf.mxu0  ;;  %v87_v22 = vpop.f32.mrf.mxu1 }
  0x8c   :  { %v116_v25 = vpop.f32.mrf.mxu2  ;;  %v139_v26 = vpop.f32.mrf.mxu3 }
  0x8d   :  { %v117_v27 = vadd.f32 %v116_v25, %v64_v21  ;;  %v140_v28 = vadd.f32 %v139_v26, %v87_v22 }
  0x8f   :  { %v151_v29 = vadd.f32 %v147_v23, %v117_v27  ;;  %v152_v30 = vadd.f32 %v148_v24, %v140_v28 }
  0x91   :  { %155 = vst [vmem:[%s289_s5] sm:$0xff] %v151_v29 }
  0x92   :  { %156 = vst [vmem:[%s289_s5 + $0x8] sm:$0xff] %v152_v30  ;;  %v67_v31 = vpop.f32.mrf.mxu0  ;;  %v90_v32 = vpop.f32.mrf.mxu1 }
  0x94   :  { %v119_v33 = vpop.f32.mrf.mxu2  ;;  %v142_v34 = vpop.f32.mrf.mxu3 }
  0x95   :  { %v120_v35 = vadd.f32 %v119_v33, %v67_v31  ;;  %v143_v36 = vadd.f32 %v142_v34, %v90_v32 }
  0x97   :  { %v153_v37 = vadd.f32 %v147_v23, %v120_v35  ;;  %v154_v38 = vadd.f32 %v148_v24, %v143_v36 }
  0x99   :  { %157 = vst [vmem:[%s289_s5 + $0x10] sm:$0xff] %v153_v37 }
  0x9a   :  { %158 = vst [vmem:[%s289_s5 + $0x18] sm:$0xff] %v154_v38 }

// kernel: lstm_dual_attn_forward.8
= control target key start
LH: loop header
LB: loop body
LE: loop exit
PB: predicated region body
PF: predicated region fallthrough
CT: control target
= control target key end

     0   :  { %vm26_vm0 = vcmask 130048   ;;  %s148_s1 = inlined_call_operand.vmem [shape: f32[16,256], index: 1, kind: input, shape index: {}]   ;;  %s149_s0 = inlined_call_operand.vmem [shape: f32[16,16], index: 0, kind: input, shape index: {}]   ;;  %s150_s2 = inlined_call_operand.vmem [shape: f32[1,256], index: 2, kind: input, shape index: {}]   ;;  %s151_s3 = inlined_call_operand.vmem [shape: f32[16,256], index: 3, kind: output, shape index: {}]  }
   0x1   :  { %v18_v0 = vld [vmem:[%s148_s1 + $0x10] sm:$0xff]  ;;  %v19_v1 = vld [vmem:[%s148_s1 + $0x18] sm:$0xff]  ;;  %v16_v2 = vld [vmem:[%s148_s1] sm:$0xff] }
   0x2   :  { %91 = vmatpush.msra.mxu2 %v18_v0  ;;  %93 = vmatpush.msra.mxu3 %v19_v1  ;;  %v17_v3 = vld [vmem:[%s148_s1 + $0x8] sm:$0xff]  ;;  %v14_v5 = vld [vmem:[%s149_s0] sm:$0xff] }
   0x3   :  { %v15_v4 = vld [vmem:[%s149_s0 + $0x8] sm:$0xff]  ;;  %47 = vmatpush.msra.mxu0 %v18_v0  ;;  %70 = vmatpush.msra.mxu1 %v19_v1  ;;  %v20_v6 = vld [vmem:[%s150_s2] sm:$0x3] }
   0x4   :  { %92 = vmatpush.msra.mxu2 %v16_v2  ;;  %94 = vmatpush.msra.mxu3 %v17_v3  ;;  %v22_v7 = vperm.slane %v20_v6, 0  ;;  %v23_v8 = vperm.slane %v20_v6, 1 }
   0x5   :  { %88 = vmatmul.msk.f32.vlgmr.msra.gmra.mxu2 %vm26_vm0, %v15_v4  ;;  %90 = vmatmul.msk.f32.vlgmr.msra.gmra.mxu3 %vm26_vm0, %v15_v4 }
   0x6   :  { %48 = vmatpush.msra.mxu0 %v16_v2  ;;  %71 = vmatpush.msra.mxu1 %v17_v3 }
   0x7   :  { %87 = vmatmul.msk.f32.vlgmr.msra.gmra.mxu0 %vm26_vm0, %v14_v5  ;;  %89 = vmatmul.msk.f32.vlgmr.msra.gmra.mxu1 %vm26_vm0, %v14_v5 }
  0x84   :  { %v50_v9 = vpop.f32.mrf.mxu0  ;;  %v73_v10 = vpop.f32.mrf.mxu1 }
  0x85   :  { %v51_v11 = vadd.f32 %v50_v9, %v22_v7  ;;  %v74_v12 = vadd.f32 %v73_v10, %v23_v8 }
  0x87   :  { %79 = vst [vmem:[%s151_s3] sm:$0xff] %v51_v11 }
  0x88   :  { %v53_v13 = vpop.f32.mrf.mxu2  ;;  %80 = vst [vmem:[%s151_s3 + $0x8] sm:$0xff] %v74_v12  ;;  %v76_v14 = vpop.f32.mrf.mxu3 }
  0x89   :  { %v54_v15 = vadd.f32 %v53_v13, %v22_v7  ;;  %v77_v16 = vadd.f32 %v76_v14, %v23_v8 }
  0x8b   :  { %81 = vst [vmem:[%s151_s3 + $0x10] sm:$0xff] %v54_v15 }
  0x8c   :  { %82 = vst [vmem:[%s151_s3 + $0x18] sm:$0xff] %v77_v16 }

// kernel: lstm_dual_attn_forward.14
= control target key start
LH: loop header
LB: loop body
LE: loop exit
PB: predicated region body
PF: predicated region fallthrough
CT: control target
= control target key end

     0   :  { %vm32_vm0 = vcmask 261120   ;;  %vm97_vm1 = vcmask 64512   ;;  %s192_s3 = inlined_call_operand.vmem [shape: f32[32,8], index: 3, kind: input, shape index: {}]   ;;  %s193_s2 = inlined_call_operand.vmem [shape: f32[32,8], index: 2, kind: input, shape index: {}]   ;;  %s194_s1 = inlined_call_operand.vmem [shape: f32[16,32], index: 1, kind: input, shape index: {}]   ;;  %s195_s0 = inlined_call_operand.vmem [shape: f32[16,32], index: 0, kind: input, shape index: {}]   ;;  %s196_s4 = inlined_call_operand.vmem [shape: f32[1,8], index: 4, kind: input, shape index: {}]   ;;  %s197_s5 = inlined_call_operand.vmem [shape: f32[16,8], index: 5, kind: output, shape index: {}]  }
   0x1   :  { %v31_v0 = vld [vmem:[%s192_s3 + $0x18] sm:$0xff]  ;;  %v30_v2 = vld [vmem:[%s192_s3 + $0x10] sm:$0xff]  ;;  %v29_v4 = vld [vmem:[%s192_s3 + $0x8] sm:$0xff] }
   0x2   :  { %v25_v1 = vld [vmem:[%s193_s2 + $0x18] sm:$0xff]  ;;  %108 = vmatpush.msra.mxu2 %v31_v0  ;;  %v24_v3 = vld [vmem:[%s193_s2 + $0x10] sm:$0xff]  ;;  %v23_v5 = vld [vmem:[%s193_s2 + $0x8] sm:$0xff]  ;;  %51 = vmatpush.msra.mxu0 %v31_v0 }
   0x3   :  { %112 = vmatpush.msra.mxu3 %v25_v1  ;;  %80 = vmatpush.msra.mxu1 %v25_v1  ;;  %v28_v6 = vld [vmem:[%s192_s3] sm:$0xff]  ;;  %v27_v8 = vld [vmem:[%s194_s1 + $0x8] sm:$0xff] }
   0x4   :  { %109 = vmatpush.msra.mxu2 %v30_v2  ;;  %v22_v7 = vld [vmem:[%s193_s2] sm:$0xff]  ;;  %52 = vmatpush.msra.mxu0 %v30_v2  ;;  %v21_v9 = vld [vmem:[%s195_s0 + $0x8] sm:$0xff] }
   0x5   :  { %113 = vmatpush.msra.mxu3 %v24_v3  ;;  %81 = vmatpush.msra.mxu1 %v24_v3  ;;  %v26_v10 = vld [vmem:[%s194_s1] sm:$0xff] }
   0x6   :  { %110 = vmatpush.msra.mxu2 %v29_v4  ;;  %53 = vmatpush.msra.mxu0 %v29_v4  ;;  %v20_v11 = vld [vmem:[%s195_s0] sm:$0xff] }
   0x7   :  { %114 = vmatpush.msra.mxu3 %v23_v5  ;;  %82 = vmatpush.msra.mxu1 %v23_v5  ;;  %v116_v12 = vld [vmem:[%s196_s4] ss:$0 sm:$0xff] }
   0x8   :  { %111 = vmatpush.msra.mxu2 %v28_v6  ;;  %54 = vmatpush.msra.mxu0 %v28_v6 }
   0x9   :  { %115 = vmatpush.msra.mxu3 %v22_v7  ;;  %105 = vmatmul.msk.f32.vlgmr.msra.gmra.mxu2 %vm32_vm0, %v27_v8 }
   0xa   :  { %107 = vmatmul.msk.f32.vlgmr.msra.gmra.mxu3 %vm32_vm0, %v21_v9  ;;  %83 = vmatpush.msra.mxu1 %v22_v7 }
   0xb   :  { %104 = vmatmul.msk.f32.vlgmr.msra.gmra.mxu0 %vm32_vm0, %v26_v10  ;;  %106 = vmatmul.msk.f32.vlgmr.msra.gmra.mxu1 %vm32_vm0, %v20_v11 }
  0x88   :  { %v56_v13 = vpop.f32.mrf.mxu0  ;;  %v85_v14 = vpop.f32.mrf.mxu1 }
  0x89   :  { %v86_v15 = vadd.f32 %v85_v14, %v56_v13 }
  0x8b   :  { %v95_v16 = vadd.f32 %v116_v12, %v86_v15 }
  0x8c   :  { %v59_v17 = vpop.f32.mrf.mxu2 }
  0x8d   :  { %v88_v18 = vpop.f32.mrf.mxu3  ;;  %98 = vst.msk [vmem:[%s197_s5] sm:$0xff] %vm97_vm1, %v95_v16 }
  0x8e   :  { %v89_v19 = vadd.f32 %v88_v18, %v59_v17 }
  0x90   :  { %v96_v20 = vadd.f32 %v116_v12, %v89_v19 }
  0x92   :  { %99 = vst.msk [vmem:[%s197_s5 + $0x8] sm:$0xff] %vm97_vm1, %v96_v20 }

// kernel: lstm_dual_attn_forward.15
= control target key start
LH: loop header
LB: loop body
LE: loop exit
PB: predicated region body
PF: predicated region fallthrough
CT: control target
= control target key end

     0   :  { %vm17_vm0 = vcmask 58400   ;;  %s218_s22 = smov 4   ;;  %s290_s0 = inlined_call_operand.vmem [shape: f32[8,2,8], index: 0, kind: input, shape index: {}]   ;;  %s291_s1 = inlined_call_operand.hbm [shape: f32[2,4], index: 1, kind: output, shape index: {}]  }
   0x1   :  { %v9_v0 = vld [vmem:[%s290_s0] sm:$0x3]  ;;  %v10_v1 = vld [vmem:[%s290_s0 + $0x2] sm:$0x3]  ;;  %v11_v2 = vld [vmem:[%s290_s0 + $0x4] sm:$0x3] }
   0x2   :  { %v12_v3 = vld [vmem:[%s290_s0 + $0x6] sm:$0x3]  ;;  %v13_v4 = vld [vmem:[%s290_s0 + $0x8] sm:$0x3]  ;;  %v14_v5 = vld [vmem:[%s290_s0 + $0xa] sm:$0x3]  ;;  %102 = vrot.lane.b32.xlu0 %v9_v0, %s218_s22 }
   0x3   :  { %v15_v6 = vld [vmem:[%s290_s0 + $0xc] sm:$0x3]  ;;  %v16_v7 = vld [vmem:[%s290_s0 + $0xe] sm:$0x3]  ;;  %v19_v8 = vsel %vm17_vm0, %v10_v1, -inf  ;;  %v20_v9 = vsel %vm17_vm0, %v11_v2, -inf  ;;  %106 = vrot.lane.b32.xlu1 %v11_v2, %s218_s22 }
   0x4   :  { %v21_v10 = vsel %vm17_vm0, %v12_v3, -inf  ;;  %v22_v11 = vsel %vm17_vm0, %v13_v4, -inf }
   0x5   :  { %6 = vsyncpa [#allocation3], 0  ;;  %v24_v12 = vsel %vm17_vm0, %v14_v5, -inf  ;;  %v26_v13 = vsel %vm17_vm0, %v15_v6, -inf  ;;  %v28_v14 = vsel %vm17_vm0, %v16_v7, -inf  ;;  %v18_v15 = vsel %vm17_vm0, %v9_v0, -inf  ;;  %110 = vrot.lane.b32.xlu2 %v13_v4, %s218_s22 }
   0x6   :  { %v25_v16 = vmax.f32 %v19_v8, %v24_v12  ;;  %v27_v17 = vmax.f32 %v20_v9, %v26_v13  ;;  %v29_v18 = vmax.f32 %v21_v10, %v28_v14  ;;  %v23_v19 = vmax.f32 %v18_v15, %v22_v11  ;;  %s219_s0 = smov 124   ;;  %s220_s23 = smov [#allocation2]  }
   0x7   :  { %s160_s24 = sshll.u32 %s220_s23, 4  ;;  %s162_s27 = sshll.u32 %s291_s1, 4  ;;  %vm153_vm5 = vcmask 25600   ;;  %s161_s24 = int_to_ptr.vmem [resolvable:$true] %s160_s24  ;;  %s163_s27 = int_to_ptr.hbm [resolvable:$true] %s162_s27 }
   0x8   :  { %v31_v20 = vmax.f32 %v27_v17, %v29_v18  ;;  %v30_v21 = vmax.f32 %v23_v19, %v25_v16 }
   0xa   :  { %v32_v22 = vmax.f32 %v30_v21, %v31_v20  ;;  %104 = vrot.lane.b32.xlu0 %v10_v1, %s218_s22 }
   0xb   :  { %108 = vrot.lane.b32.xlu1 %v12_v3, %s218_s22 }
   0xc   :  { %v33_v23 = vsub.f32 %v9_v0, %v32_v22  ;;  %v35_v24 = vsub.f32 %v11_v2, %v32_v22  ;;  %v34_v25 = vsub.f32 %v10_v1, %v32_v22  ;;  %v36_v26 = vsub.f32 %v12_v3, %v32_v22 }
   0xd   :  { %v39_v27 = vsub.f32 %v15_v6, %v32_v22  ;;  %v40_v28 = vsub.f32 %v16_v7, %v32_v22  ;;  %v37_v29 = vsub.f32 %v13_v4, %v32_v22  ;;  %112 = vrot.lane.b32.xlu2 %v14_v5, %s218_s22  ;;  %v38_v33 = vsub.f32 %v14_v5, %v32_v22 }
   0xe   :  { %v41_v30 = vmul.f32 1.442695, %v33_v23  ;;  %v45_v31 = vmul.f32 1.442695, %v35_v24  ;;  %v43_v32 = vmul.f32 1.442695, %v34_v25 }
   0xf   :  { %v47_v34 = vmul.f32 1.442695, %v36_v26  ;;  %v49_v35 = vmul.f32 1.442695, %v37_v29  ;;  %v51_v36 = vmul.f32 1.442695, %v38_v33 }
  0x10   :  { %174 = vpow2.f32 %v41_v30  ;;  %v53_v37 = vmul.f32 1.442695, %v39_v27  ;;  %v55_v39 = vmul.f32 1.442695, %v40_v28 }
  0x11   :  { %176 = vpow2.f32 %v45_v31 }
  0x12   :  { %178 = vpow2.f32 %v43_v32  ;;  %114 = vrot.lane.b32.xlu0 %v15_v6, %s218_s22 }
  0x13   :  { %180 = vpow2.f32 %v47_v34  ;;  %116 = vrot.lane.b32.xlu1 %v16_v7, %s218_s22 }
  0x14   :  { %182 = vpow2.f32 %v49_v35 }
  0x15   :  { %184 = vpow2.f32 %v51_v36 }
  0x16   :  { %v175_v38 = vpop.eup %174  ;;  %186 = vpow2.f32 %v53_v37 }
  0x17   :  { %v177_v40 = vpop.eup %176  ;;  %v57_v41 = vsel %vm17_vm0, %v175_v38, 0.0  ;;  %188 = vpow2.f32 %v55_v39 }
  0x18   :  { %v179_v42 = vpop.eup %178  ;;  %v60_v44 = vsel %vm17_vm0, %v177_v40, 0.0 }
  0x19   :  { %v181_v43 = vpop.eup %180  ;;  %v58_v45 = vsel %vm17_vm0, %v179_v42, 0.0 }
  0x1a   :  { %v59_v46 = vadd.f32 %v58_v45, %v57_v41  ;;  %v62_v47 = vsel %vm17_vm0, %v181_v43, 0.0  ;;  %v183_v48 = vpop.eup %182 }
  0x1b   :  { %v185_v50 = vpop.eup %184  ;;  %v64_v51 = vsel %vm17_vm0, %v183_v48, 0.0 }
  0x1c   :  { %v61_v49 = vadd.f32 %v60_v44, %v59_v46  ;;  %v187_v52 = vpop.eup %186  ;;  %v66_v54 = vsel %vm17_vm0, %v185_v50, 0.0 }
  0x1d   :  { %v189_v55 = vpop.eup %188  ;;  %v68_v57 = vsel %vm17_vm0, %v187_v52, 0.0 }
  0x1e   :  { %v63_v53 = vadd.f32 %v62_v47, %v61_v49  ;;  %v70_v59 = vsel %vm17_vm0, %v189_v55, 0.0 }
  0x20   :  { %v65_v56 = vadd.f32 %v64_v51, %v63_v53 }
  0x22   :  { %v67_v58 = vadd.f32 %v66_v54, %v65_v56 }
  0x24   :  { %v69_v60 = vadd.f32 %v68_v57, %v67_v58 }
  0x26   :  { %v71_v61 = vadd.f32 %v70_v59, %v69_v60 }
  0x28   :  { %190 = vrcp.f32 %v71_v61  ;;  %v83_v2 = vand.u32 2147483648, %v71_v61  ;;  %vm77_vm1 = vweird.f32 %v71_v61  ;;  %v81_v4 = vand.u32 2147483647, %v71_v61 }
  0x2a   :  { %v84_v5 = vor.u32 1.1754944e-38, %v83_v2  ;;  %vm82_vm4 = vcmp.eq.f32.partialorder %v81_v4, 8.507059e+37 }
  0x2e   :  { %v191_v62 = vpop.eup %190 }
  0x2f   :  { %v73_v63 = vmul.f32 %v191_v62, %v71_v61  ;;  %vm78_vm2 = vweird.f32 %v191_v62 }
  0x30   :  { %vm79_vm3 = vmor %vm77_vm1, %vm78_vm2 }
  0x31   :  { %v74_v0 = vsub.f32 1.0, %v73_v63 }
  0x33   :  { %v75_v1 = vmul.f32 %v191_v62, %v74_v0 }
  0x35   :  { %v76_v3 = vadd.f32 %v191_v62, %v75_v1 }
  0x37   :  { %v80_v6 = vsel %vm79_vm3, %v191_v62, %v76_v3 }
  0x38   :  { %v85_v7 = vsel %vm82_vm4, %v84_v5, %v80_v6 }
  0x39   :  { %v86_v8 = vmul.f32 %v175_v38, %v85_v7  ;;  %v88_v9 = vmul.f32 %v177_v40, %v85_v7  ;;  %v90_v10 = vmul.f32 %v183_v48, %v85_v7  ;;  %v87_v11 = vmul.f32 %v179_v42, %v85_v7 }
  0x3a   :  { %v89_v12 = vmul.f32 %v181_v43, %v85_v7  ;;  %v91_v13 = vmul.f32 %v185_v50, %v85_v7  ;;  %v92_v14 = vmul.f32 %v187_v52, %v85_v7  ;;  %v93_v15 = vmul.f32 %v189_v55, %v85_v7 }
  0x5f   :  { %v111_v16 = vpop.permute.xlu2 %110 }
  0x60   :  { %v130_v30 = vmul.f32 %v111_v16, %v90_v10 }
  0x62   :  { %v141_v37 = vsel %vm17_vm0, %v130_v30, 0.0 }
  0x67   :  { %v113_v25 = vpop.permute.xlu2 %112 }
  0x68   :  { %v131_v32 = vmul.f32 %v113_v25, %v91_v13 }
  0x6a   :  { %v143_v38 = vsel %vm17_vm0, %v131_v32, 0.0 }
  0x74   :  { %v103_v17 = vpop.permute.xlu0 %102 }
  0x75   :  { %v107_v18 = vpop.permute.xlu1 %106  ;;  %v126_v19 = vmul.f32 %v103_v17, %v86_v8 }
  0x76   :  { %v128_v22 = vmul.f32 %v107_v18, %v88_v9 }
  0x77   :  { %v134_v26 = vsel %vm17_vm0, %v126_v19, 0.0 }
  0x78   :  { %v137_v29 = vsel %vm17_vm0, %v128_v22, 0.0 }
  0x7c   :  { %v105_v20 = vpop.permute.xlu0 %104 }
  0x7d   :  { %v109_v21 = vpop.permute.xlu1 %108  ;;  %v127_v23 = vmul.f32 %v105_v20, %v87_v11 }
  0x7e   :  { %v129_v24 = vmul.f32 %v109_v21, %v89_v12 }
  0x7f   :  { %v135_v27 = vsel %vm17_vm0, %v127_v23, 0.0 }
  0x80   :  { %v136_v28 = vadd.f32 %v135_v27, %v134_v26  ;;  %v139_v31 = vsel %vm17_vm0, %v129_v24, 0.0 }
  0x82   :  { %v138_v33 = vadd.f32 %v137_v29, %v136_v28 }
  0x84   :  { %v140_v34 = vadd.f32 %v139_v31, %v138_v33  ;;  %v115_v35 = vpop.permute.xlu0 %114 }
  0x85   :  { %v117_v36 = vpop.permute.xlu1 %116  ;;  %v132_v39 = vmul.f32 %v115_v35, %v92_v14 }
  0x86   :  { %v133_v40 = vmul.f32 %v117_v36, %v93_v15  ;;  %v142_v41 = vadd.f32 %v141_v37, %v140_v34 }
  0x87   :  { %v145_v42 = vsel %vm17_vm0, %v132_v39, 0.0 }
  0x88   :  { %v144_v43 = vadd.f32 %v143_v38, %v142_v41  ;;  %v147_v44 = vsel %vm17_vm0, %v133_v40, 0.0 }
  0x8a   :  { %v146_v45 = vadd.f32 %v145_v42, %v144_v43 }
  0x8c   :  { %v148_v46 = vadd.f32 %v147_v44, %v146_v45 }
  0x8e   :  { %150 = vrot.lane.b32.xlu2 %v148_v46, %s219_s0 }
  0xe8   :  { %v151_v47 = vpop.permute.xlu2 %150 }
  0xe9   :  { %154 = vst.msk [vmem:[#allocation2] sm:$0x3] %vm153_vm5, %v151_v47 }
  0xea   :  { %165 = dma.vmem_to_hbm [thread:$0]  %s161_s24, 32, %s163_s27, [#allocation3]  }
  0xeb   :  { %216 = dma.done.wait [#allocation3], 32  }
  0xec   :  { %217 = vsyncadd [#allocation3], 4294967264 }
  0xed   :  { %170 = vsyncpa [#allocation3], 1 }

// kernel: lstm_dual_attn_forward.9
= control target key start
LH: loop header
LB: loop body
LE: loop exit
PB: predicated region body
PF: predicated region fallthrough
CT: control target
= control target key end

     0   :  { %vm187_vm0 = vcmask 254976   ;;  %v1540_v4 = vmov 0.0   ;;  %vm205_vm1 = vcmask 261120   ;;  %s1542_s12 = smov 64   ;;  %s1936_s0 = inlined_call_operand.vmem [shape: f32[8,2,256], index: 0, kind: input, shape index: {}, may-alias: {0,1}]   ;;  %s1937_s1 = inlined_call_operand.vmem [shape: f32[8,2,256], index: 1, kind: input, shape index: {}, may-alias: {0,1}]   ;;  %s1938_s2 = inlined_call_operand.vmem [shape: f32[32,128], index: 2, kind: input, shape index: {}]   ;;  %s1939_s3 = inlined_call_operand.vmem [shape: f32[32,128], index: 3, kind: input, shape index: {}]   ;;  %s1940_s4 = inlined_call_operand.vmem [shape: f32[8,2,32], index: 4, kind: output, shape index: {0}]   ;;  %s1941_s5 = inlined_call_operand.vmem [shape: f32[8,2,32], index: 5, kind: output, shape index: {1}]  }
   0x1   :  { %v1577_v0 = vld [vmem:[%s1938_s2 + $0x18] sm:$0xff]  ;;  %v1587_v2 = vld [vmem:[%s1938_s2 + $0x10] sm:$0xff]  ;;  %188 = vst.msk [vmem:[#allocation2] sm:$0x3] %vm187_vm0, %v1540_v4  ;;  %v1600_v5 = vld [vmem:[%s1938_s2 + $0x8] sm:$0xff] }
   0x2   :  { %v1582_v1 = vld [vmem:[%s1939_s3 + $0x18] sm:$0xff]  ;;  %221 = vmatpush.msra.mxu0 %v1577_v0  ;;  %v1594_v3 = vld [vmem:[%s1939_s3 + $0x10] sm:$0xff]  ;;  %v1605_v6 = vld [vmem:[%s1939_s3 + $0x8] sm:$0xff]  ;;  %189 = vst.msk [vmem:[#allocation3] sm:$0x3] %vm187_vm0, %v1540_v4  ;;  %366 = vmatpush.msra.mxu2 %v1577_v0 }
   0x3   :  { %294 = vmatpush.msra.mxu1 %v1582_v1  ;;  %v29_v7 = vld [vmem:[%s1936_s0] sm:$0x3]  ;;  %434 = vmatpush.msra.mxu3 %v1582_v1  ;;  %190 = vst.msk [vmem:[#allocation4] sm:$0x3] %vm187_vm0, %v1540_v4  ;;  %v1361_v14 = vld [vmem:[%s1937_s1 + $0x1e] sm:$0x3] }
   0x4   :  { %222 = vmatpush.msra.mxu0 %v1587_v2  ;;  %v1619_v8 = vld [vmem:[%s1938_s2] sm:$0xff]  ;;  %191 = vst.msk [vmem:[#allocation5] sm:$0x3] %vm187_vm0, %v1540_v4  ;;  %367 = vmatpush.msra.mxu2 %v1587_v2  ;;  %s1541_s2 = smov 32  }
   0x5   :  { %295 = vmatpush.msra.mxu1 %v1594_v3  ;;  %v1624_v9 = vld [vmem:[%s1939_s3] sm:$0xff]  ;;  %435 = vmatpush.msra.mxu3 %v1594_v3  ;;  %30 = vst [vmem:[#allocation6] sm:$0x3] %v29_v7 }
   0x6   :  { %223 = vmatpush.msra.mxu0 %v1600_v5  ;;  %368 = vmatpush.msra.mxu2 %v1600_v5  ;;  %121 = vst [vmem:[#allocation7 + $0xe] sm:$0x3] %v1361_v14  ;;  %v1360_v14 = vld [vmem:[%s1937_s1 + $0x1a] sm:$0x3] }
   0x7   :  { %296 = vmatpush.msra.mxu1 %v1605_v6  ;;  %436 = vmatpush.msra.mxu3 %v1605_v6  ;;  %119 = vst [vmem:[#allocation7 + $0xc] sm:$0x3] %v1360_v14 }
   0x8   :  { %224 = vmatpush.msra.mxu0 %v1619_v8  ;;  %v200_v10 = vld [vmem:[#allocation2] sm:$0x3]  ;;  %369 = vmatpush.msra.mxu2 %v1619_v8 }
   0x9   :  { %297 = vmatpush.msra.mxu1 %v1624_v9  ;;  %437 = vmatpush.msra.mxu3 %v1624_v9  ;;  %v201_v11 = vld [vmem:[#allocation3] sm:$0x3] }
   0xa   :  { %1362 = vmatmul.msk.f32.vlgmr.msra.gmra.mxu0 %vm205_vm1, %v200_v10  ;;  %v202_v12 = vld [vmem:[#allocation4] sm:$0x3]  ;;  %251 = vrot.lane.b32.xlu1 %v201_v11, %s1541_s2 }
   0xb   :  { %570 = vmatpush.msrb.mxu1 %v1582_v1  ;;  %502 = vmatpush.msrb.mxu0 %v1577_v0  ;;  %v203_v13 = vld [vmem:[#allocation5] sm:$0x3] }
   0xc   :  { %1364 = vmatmul.msk.f32.vlgmr.msra.gmra.mxu1 %vm205_vm1, %v202_v12  ;;  %638 = vmatpush.msrb.mxu2 %v1577_v0  ;;  %v204_v15 = vld [vmem:[#allocation6] sm:$0x3]  ;;  %v31_v12 = vld [vmem:[%s1936_s0 + $0x4] sm:$0x3] }
   0xd   :  { %503 = vmatpush.msrb.mxu0 %v1587_v2  ;;  %571 = vmatpush.msrb.mxu1 %v1594_v3  ;;  %v278_v18 = vld [vmem:[#allocation7 + $0xe] sm:$0x3]  ;;  %32 = vst [vmem:[#allocation6 + $0x2] sm:$0x3] %v31_v12  ;;  %v1359_v12 = vld [vmem:[%s1937_s1 + $0x16] sm:$0x3] }
   0xe   :  { %639 = vmatpush.msrb.mxu2 %v1587_v2  ;;  %706 = vmatpush.msrb.mxu3 %v1582_v1  ;;  %117 = vst [vmem:[#allocation7 + $0xa] sm:$0x3] %v1359_v12 }
   0xf   :  { %504 = vmatpush.msrb.mxu0 %v1600_v5  ;;  %572 = vmatpush.msrb.mxu1 %v1605_v6 }
  0x10   :  { %640 = vmatpush.msrb.mxu2 %v1600_v5  ;;  %707 = vmatpush.msrb.mxu3 %v1594_v3 }
  0x11   :  { %505 = vmatpush.msrb.mxu0 %v1619_v8  ;;  %573 = vmatpush.msrb.mxu1 %v1624_v9 }
  0x12   :  { %641 = vmatpush.msrb.mxu2 %v1619_v8  ;;  %708 = vmatpush.msrb.mxu3 %v1605_v6 }
  0x13   :  { %324 = vrot.lane.b32.xlu1 %v203_v13, %s1541_s2  ;;  %774 = vmatpush.msra.mxu0 %v1577_v0 }
  0x14   :  { %709 = vmatpush.msrb.mxu3 %v1624_v9  ;;  %842 = vmatpush.msra.mxu1 %v1582_v1 }
  0x15   :  { %775 = vmatpush.msra.mxu0 %v1587_v2 }
  0x16   :  { %843 = vmatpush.msra.mxu1 %v1594_v3 }
  0x17   :  { %776 = vmatpush.msra.mxu0 %v1600_v5 }
  0x18   :  { %844 = vmatpush.msra.mxu1 %v1605_v6 }
  0x19   :  { %777 = vmatpush.msra.mxu0 %v1619_v8 }
  0x1a   :  { %845 = vmatpush.msra.mxu1 %v1624_v9 }
  0x7c   :  { %v252_v53 = vpop.permute.xlu1 %251 }
  0x85   :  { %v325_v57 = vpop.permute.xlu1 %324 }
  0x87   :  { %v226_v16 = vpop.f32.mrf.mxu0 }
  0x88   :  { %v229_v17 = vadd.f32 %v226_v16, %v204_v15  ;;  %v351_v15 = vld [vmem:[#allocation6 + $0x2] sm:$0x3] }
  0x89   :  { %v299_v19 = vpop.f32.mrf.mxu1 }
  0x8a   :  { %1412 = vtanh.f32 %v229_v17  ;;  %v302_v20 = vadd.f32 %v299_v19, %v278_v18  ;;  %v1363_v23 = vmul.f32 -1.442695, %v229_v17  ;;  %v419_v19 = vld [vmem:[#allocation7 + $0xc] sm:$0x3] }
  0x8c   :  { %1414 = vtanh.f32 %v302_v20  ;;  %v1365_v24 = vmul.f32 -1.442695, %v302_v20 }
  0x8d   :  { %1416 = vpow2.f32 %v1363_v23 }
  0x8e   :  { %1418 = vpow2.f32 %v1365_v24 }
  0x90   :  { %v1413_v21 = vpop.eup %1412 }
  0x91   :  { %256 = vrot.lane.b32.xlu0 %v1413_v21, %s1542_s12 }
  0x92   :  { %v1415_v22 = vpop.eup %1414 }
  0x93   :  { %v1417_v25 = vpop.eup %1416 }
  0x94   :  { %v233_v26 = vadd.f32 1.0, %v1417_v25  ;;  %v1419_v27 = vpop.eup %1418 }
  0x95   :  { %v306_v28 = vadd.f32 1.0, %v1419_v27 }
  0x96   :  { %1420 = vrcp.f32 %v233_v26  ;;  %v245_v37 = vand.u32 2147483648, %v233_v26  ;;  %vm239_vm3 = vweird.f32 %v233_v26  ;;  %v243_v38 = vand.u32 2147483647, %v233_v26 }
  0x97   :  { %1422 = vrcp.f32 %v306_v28  ;;  %vm312_vm6 = vweird.f32 %v306_v28  ;;  %v318_v46 = vand.u32 2147483648, %v306_v28  ;;  %v316_v47 = vand.u32 2147483647, %v306_v28 }
  0x98   :  { %v246_v41 = vor.u32 1.1754944e-38, %v245_v37  ;;  %vm244_vm5 = vcmp.eq.f32.partialorder %v243_v38, 8.507059e+37 }
  0x99   :  { %329 = vrot.lane.b32.xlu0 %v1415_v22, %s1542_s12  ;;  %v319_v49 = vor.u32 1.1754944e-38, %v318_v46  ;;  %vm317_vm9 = vcmp.eq.f32.partialorder %v316_v47, 8.507059e+37 }
  0x9c   :  { %v1421_v29 = vpop.eup %1420 }
  0x9d   :  { %v235_v30 = vmul.f32 %v1421_v29, %v233_v26  ;;  %v1423_v32 = vpop.eup %1422  ;;  %vm240_vm2 = vweird.f32 %v1421_v29 }
  0x9e   :  { %v308_v34 = vmul.f32 %v1423_v32, %v306_v28  ;;  %vm241_vm4 = vmor %vm239_vm3, %vm240_vm2  ;;  %vm313_vm7 = vweird.f32 %v1423_v32 }
  0x9f   :  { %v236_v31 = vsub.f32 1.0, %v235_v30  ;;  %vm314_vm8 = vmor %vm312_vm6, %vm313_vm7 }
  0xa0   :  { %v309_v36 = vsub.f32 1.0, %v308_v34 }
  0xa1   :  { %v237_v33 = vmul.f32 %v1421_v29, %v236_v31 }
  0xa2   :  { %v310_v40 = vmul.f32 %v1423_v32, %v309_v36 }
  0xa3   :  { %v238_v35 = vadd.f32 %v1421_v29, %v237_v33 }
  0xa4   :  { %v311_v44 = vadd.f32 %v1423_v32, %v310_v40 }
  0xa5   :  { %v242_v39 = vsel %vm241_vm4, %v1421_v29, %v238_v35 }
  0xa6   :  { %v247_v42 = vsel %vm244_vm5, %v246_v41, %v242_v39  ;;  %v315_v48 = vsel %vm314_vm8, %v1423_v32, %v311_v44 }
  0xa7   :  { %v320_v50 = vsel %vm317_vm9, %v319_v49, %v315_v48  ;;  %v254_v54 = vmul.f32 %v252_v53, %v247_v42 }
  0xa8   :  { %v327_v58 = vmul.f32 %v325_v57, %v320_v50 }
 0x103   :  { %v257_v43 = vpop.permute.xlu0 %256 }
 0x104   :  { %v259_v45 = vmul.f32 %v257_v43, %v247_v42 }
 0x106   :  { %261 = vrot.lane.b32.xlu2 %v259_v45, %s1541_s2 }
 0x10b   :  { %v330_v51 = vpop.permute.xlu0 %329 }
 0x10c   :  { %v332_v52 = vmul.f32 %v330_v51, %v320_v50 }
 0x10e   :  { %334 = vrot.lane.b32.xlu2 %v332_v52, %s1541_s2 }
 0x160   :  { %v262_v55 = vpop.permute.xlu2 %261 }
 0x161   :  { %v1672_v56 = vadd.f32 %v262_v55, %v254_v54 }
 0x163   :  { %1424 = vtanh.f32 %v1672_v56 }
 0x168   :  { %v335_v59 = vpop.permute.xlu2 %334 }
 0x169   :  { %v1425_v60 = vpop.eup %1424  ;;  %v1675_v61 = vadd.f32 %v335_v59, %v327_v58 }
 0x16a   :  { %267 = vrot.lane.b32.xlu0 %v1425_v60, %s1542_s12 }
 0x16b   :  { %1426 = vtanh.f32 %v1675_v61 }
 0x171   :  { %v1427_v62 = vpop.eup %1426 }
 0x172   :  { %340 = vrot.lane.b32.xlu1 %v1427_v62, %s1542_s12 }
 0x1dc   :  { %v268_v63 = vpop.permute.xlu0 %267 }
 0x1dd   :  { %v270_v4 = vmul.f32 %v268_v63, %v247_v42 }
 0x1df   :  { %272 = vrot.lane.b32.xlu2 %v270_v4, %s1541_s2 }
 0x1e4   :  { %v341_v7 = vpop.permute.xlu1 %340 }
 0x1e5   :  { %v343_v10 = vmul.f32 %v341_v7, %v320_v50 }
 0x1e7   :  { %345 = vrot.lane.b32.xlu0 %v343_v10, %s1541_s2 }
 0x239   :  { %v273_v11 = vpop.permute.xlu2 %272 }
 0x23a   :  { %276 = vst.msk [vmem:[%s1940_s4] sm:$0x3] %vm187_vm0, %v273_v11  ;;  %1367 = vmatmul.msk.f32.vlgmr.msra.gmra.mxu2 %vm205_vm1, %v273_v11 }
 0x23b   :  { %910 = vmatpush.msra.mxu2 %v1577_v0 }
 0x23d   :  { %911 = vmatpush.msra.mxu2 %v1587_v2 }
 0x23f   :  { %912 = vmatpush.msra.mxu2 %v1600_v5 }
 0x241   :  { %913 = vmatpush.msra.mxu2 %v1619_v8 }
 0x259   :  { %v346_v13 = vpop.permute.xlu0 %345 }
 0x25a   :  { %1366 = vst.msk [vmem:[%s1941_s5 + $0xe] sm:$0x3] %vm187_vm0, %v346_v13  ;;  %1370 = vmatmul.msk.f32.vlgmr.msra.gmra.mxu3 %vm205_vm1, %v346_v13 }
 0x25b   :  { %978 = vmatpush.msra.mxu3 %v1582_v1 }
 0x25d   :  { %979 = vmatpush.msra.mxu3 %v1594_v3 }
 0x25f   :  { %980 = vmatpush.msra.mxu3 %v1605_v6 }
 0x261   :  { %981 = vmatpush.msra.mxu3 %v1624_v9 }
 0x2bd   :  { %v371_v16 = vpop.f32.mrf.mxu2 }
 0x2be   :  { %v374_v17 = vadd.f32 %v371_v16, %v351_v15  ;;  %v555_v16 = vld [vmem:[#allocation7 + $0xa] sm:$0x3] }
 0x2c0   :  { %1428 = vtanh.f32 %v374_v17  ;;  %v1368_v23 = vmul.f32 -1.442695, %v374_v17 }
 0x2c6   :  { %v1429_v18 = vpop.eup %1428 }
 0x2c7   :  { %397 = vrot.lane.b32.xlu1 %v1429_v18, %s1542_s12 }
 0x2dd   :  { %v439_v20 = vpop.f32.mrf.mxu3 }
 0x2de   :  { %v442_v21 = vadd.f32 %v439_v20, %v419_v19 }
 0x2e0   :  { %1430 = vtanh.f32 %v442_v21  ;;  %v1371_v24 = vmul.f32 -1.442695, %v442_v21 }
 0x2e1   :  { %1432 = vpow2.f32 %v1368_v23 }
 0x2e2   :  { %1434 = vpow2.f32 %v1371_v24 }
 0x2e6   :  { %v1431_v22 = vpop.eup %1430 }
 0x2e7   :  { %465 = vrot.lane.b32.xlu2 %v1431_v22, %s1542_s12  ;;  %v1433_v25 = vpop.eup %1432 }
 0x2e8   :  { %v378_v26 = vadd.f32 1.0, %v1433_v25  ;;  %v1435_v27 = vpop.eup %1434 }
 0x2e9   :  { %v446_v28 = vadd.f32 1.0, %v1435_v27 }
 0x2ea   :  { %1436 = vrcp.f32 %v378_v26  ;;  %v390_v37 = vand.u32 2147483648, %v378_v26  ;;  %vm384_vm11 = vweird.f32 %v378_v26  ;;  %v388_v38 = vand.u32 2147483647, %v378_v26 }
 0x2eb   :  { %1438 = vrcp.f32 %v446_v28  ;;  %v458_v46 = vand.u32 2147483648, %v446_v28  ;;  %vm452_vm15 = vweird.f32 %v446_v28  ;;  %v456_v47 = vand.u32 2147483647, %v446_v28 }
 0x2ec   :  { %v391_v41 = vor.u32 1.1754944e-38, %v390_v37  ;;  %vm389_vm13 = vcmp.eq.f32.partialorder %v388_v38, 8.507059e+37 }
 0x2ed   :  { %v459_v49 = vor.u32 1.1754944e-38, %v458_v46  ;;  %vm457_vm3 = vcmp.eq.f32.partialorder %v456_v47, 8.507059e+37 }
 0x2f0   :  { %v1437_v29 = vpop.eup %1436 }
 0x2f1   :  { %v380_v30 = vmul.f32 %v1437_v29, %v378_v26  ;;  %v1439_v32 = vpop.eup %1438  ;;  %vm385_vm10 = vweird.f32 %v1437_v29 }
 0x2f2   :  { %v448_v34 = vmul.f32 %v1439_v32, %v446_v28  ;;  %vm386_vm12 = vmor %vm384_vm11, %vm385_vm10  ;;  %vm453_vm14 = vweird.f32 %v1439_v32 }
 0x2f3   :  { %v381_v31 = vsub.f32 1.0, %v380_v30  ;;  %vm454_vm2 = vmor %vm452_vm15, %vm453_vm14 }
 0x2f4   :  { %v449_v36 = vsub.f32 1.0, %v448_v34 }
 0x2f5   :  { %v382_v33 = vmul.f32 %v1437_v29, %v381_v31 }
 0x2f6   :  { %v450_v40 = vmul.f32 %v1439_v32, %v449_v36 }
 0x2f7   :  { %v383_v35 = vadd.f32 %v1437_v29, %v382_v33 }
 0x2f8   :  { %v451_v45 = vadd.f32 %v1439_v32, %v450_v40 }
 0x2f9   :  { %v387_v39 = vsel %vm386_vm12, %v1437_v29, %v383_v35 }
 0x2fa   :  { %v392_v43 = vsel %vm389_vm13, %v391_v41, %v387_v39  ;;  %v455_v48 = vsel %vm454_vm2, %v1439_v32, %v451_v45 }
 0x2fb   :  { %v460_v51 = vsel %vm457_vm3, %v459_v49, %v455_v48  ;;  %v395_v53 = vmul.f32 %v392_v43, %v1672_v56 }
 0x2fc   :  { %v463_v57 = vmul.f32 %v460_v51, %v1675_v61  ;;  %v33_v61 = vld [vmem:[%s1936_s0 + $0x8] sm:$0x3] }
 0x2fd   :  { %34 = vst [vmem:[#allocation6 + $0x4] sm:$0x3] %v33_v61 }
 0x304   :  { %v487_v13 = vld [vmem:[#allocation6 + $0x4] sm:$0x3] }
 0x339   :  { %v398_v42 = vpop.permute.xlu1 %397 }
 0x33a   :  { %v400_v44 = vmul.f32 %v398_v42, %v392_v43 }
 0x33c   :  { %402 = vrot.lane.b32.xlu0 %v400_v44, %s1541_s2 }
 0x341   :  { %v466_v50 = vpop.permute.xlu2 %465 }
 0x342   :  { %v468_v52 = vmul.f32 %v466_v50, %v460_v51 }
 0x344   :  { %470 = vrot.lane.b32.xlu1 %v468_v52, %s1541_s2 }
 0x3ae   :  { %v403_v54 = vpop.permute.xlu0 %402 }
 0x3af   :  { %v1711_v55 = vadd.f32 %v403_v54, %v395_v53 }
 0x3b1   :  { %1440 = vtanh.f32 %v1711_v55 }
 0x3b6   :  { %v471_v58 = vpop.permute.xlu1 %470 }
 0x3b7   :  { %v1441_v59 = vpop.eup %1440  ;;  %v1715_v60 = vadd.f32 %v471_v58, %v463_v57 }
 0x3b8   :  { %408 = vrot.lane.b32.xlu2 %v1441_v59, %s1542_s12 }
 0x3b9   :  { %1442 = vtanh.f32 %v1715_v60 }
 0x3bf   :  { %v1443_v62 = vpop.eup %1442 }
 0x3c0   :  { %476 = vrot.lane.b32.xlu0 %v1443_v62, %s1542_s12 }
 0x412   :  { %v409_v63 = vpop.permute.xlu2 %408 }
 0x413   :  { %v411_v56 = vmul.f32 %v409_v63, %v392_v43 }
 0x415   :  { %413 = vrot.lane.b32.xlu1 %v411_v56, %s1541_s2 }
 0x432   :  { %v477_v4 = vpop.permute.xlu0 %476 }
 0x433   :  { %v479_v7 = vmul.f32 %v477_v4, %v460_v51 }
 0x435   :  { %481 = vrot.lane.b32.xlu2 %v479_v7, %s1541_s2 }
 0x487   :  { %v414_v10 = vpop.permute.xlu1 %413 }
 0x488   :  { %1369 = vst.msk [vmem:[%s1940_s4 + $0x2] sm:$0x3] %vm187_vm0, %v414_v10  ;;  %1373 = vmatmul.msk.f32.vlgmr.msrb.gmra.mxu0 %vm205_vm1, %v414_v10 }
 0x489   :  { %1046 = vmatpush.msrb.mxu0 %v1577_v0 }
 0x48b   :  { %1047 = vmatpush.msrb.mxu0 %v1587_v2 }
 0x48d   :  { %1048 = vmatpush.msrb.mxu0 %v1600_v5 }
 0x48f   :  { %v482_v11 = vpop.permute.xlu2 %481  ;;  %1049 = vmatpush.msrb.mxu0 %v1619_v8 }
 0x490   :  { %1372 = vst.msk [vmem:[%s1941_s5 + $0xc] sm:$0x3] %vm187_vm0, %v482_v11  ;;  %1376 = vmatmul.msk.f32.vlgmr.msrb.gmra.mxu1 %vm205_vm1, %v482_v11 }
 0x491   :  { %1114 = vmatpush.msrb.mxu1 %v1582_v1 }
 0x493   :  { %1115 = vmatpush.msrb.mxu1 %v1594_v3 }
 0x495   :  { %1116 = vmatpush.msrb.mxu1 %v1605_v6 }
 0x497   :  { %1117 = vmatpush.msrb.mxu1 %v1624_v9 }
 0x505   :  { %v507_v14 = vpop.f32.mrf.mxu0 }
 0x506   :  { %v510_v15 = vadd.f32 %v507_v14, %v487_v13 }
 0x508   :  { %1444 = vtanh.f32 %v510_v15  ;;  %v1374_v21 = vmul.f32 -1.442695, %v510_v15 }
 0x50d   :  { %v575_v17 = vpop.f32.mrf.mxu1 }
 0x50e   :  { %v1445_v18 = vpop.eup %1444  ;;  %v578_v19 = vadd.f32 %v575_v17, %v555_v16 }
 0x50f   :  { %533 = vrot.lane.b32.xlu0 %v1445_v18, %s1542_s12 }
 0x510   :  { %1446 = vtanh.f32 %v578_v19  ;;  %v1377_v22 = vmul.f32 -1.442695, %v578_v19 }
 0x511   :  { %1448 = vpow2.f32 %v1374_v21 }
 0x512   :  { %1450 = vpow2.f32 %v1377_v22 }
 0x516   :  { %v1447_v20 = vpop.eup %1446 }
 0x517   :  { %601 = vrot.lane.b32.xlu1 %v1447_v20, %s1542_s12  ;;  %v1449_v23 = vpop.eup %1448 }
 0x518   :  { %v514_v24 = vadd.f32 1.0, %v1449_v23  ;;  %v1451_v25 = vpop.eup %1450 }
 0x519   :  { %v582_v26 = vadd.f32 1.0, %v1451_v25 }
 0x51a   :  { %1452 = vrcp.f32 %v514_v24  ;;  %v526_v35 = vand.u32 2147483648, %v514_v24  ;;  %vm520_vm5 = vweird.f32 %v514_v24  ;;  %v524_v36 = vand.u32 2147483647, %v514_v24 }
 0x51b   :  { %1454 = vrcp.f32 %v582_v26  ;;  %v594_v44 = vand.u32 2147483648, %v582_v26  ;;  %vm588_vm9 = vweird.f32 %v582_v26  ;;  %v592_v45 = vand.u32 2147483647, %v582_v26 }
 0x51c   :  { %v527_v39 = vor.u32 1.1754944e-38, %v526_v35  ;;  %vm525_vm7 = vcmp.eq.f32.partialorder %v524_v36, 8.507059e+37 }
 0x51d   :  { %v595_v47 = vor.u32 1.1754944e-38, %v594_v44  ;;  %vm593_vm11 = vcmp.eq.f32.partialorder %v592_v45, 8.507059e+37 }
 0x520   :  { %v1453_v27 = vpop.eup %1452 }
 0x521   :  { %v516_v28 = vmul.f32 %v1453_v27, %v514_v24  ;;  %v1455_v30 = vpop.eup %1454  ;;  %vm521_vm4 = vweird.f32 %v1453_v27 }
 0x522   :  { %v584_v32 = vmul.f32 %v1455_v30, %v582_v26  ;;  %vm522_vm6 = vmor %vm520_vm5, %vm521_vm4  ;;  %vm589_vm8 = vweird.f32 %v1455_v30 }
 0x523   :  { %v517_v29 = vsub.f32 1.0, %v516_v28  ;;  %vm590_vm10 = vmor %vm588_vm9, %vm589_vm8 }
 0x524   :  { %v585_v34 = vsub.f32 1.0, %v584_v32 }
 0x525   :  { %v518_v31 = vmul.f32 %v1453_v27, %v517_v29 }
 0x526   :  { %v586_v38 = vmul.f32 %v1455_v30, %v585_v34 }
 0x527   :  { %v519_v33 = vadd.f32 %v1453_v27, %v518_v31 }
 0x528   :  { %v587_v43 = vadd.f32 %v1455_v30, %v586_v38 }
 0x529   :  { %v523_v37 = vsel %vm522_vm6, %v1453_v27, %v519_v33 }
 0x52a   :  { %v528_v40 = vsel %vm525_vm7, %v527_v39, %v523_v37  ;;  %v591_v46 = vsel %vm590_vm10, %v1455_v30, %v587_v43 }
 0x52b   :  { %v596_v49 = vsel %vm593_vm11, %v595_v47, %v591_v46  ;;  %v531_v51 = vmul.f32 %v528_v40, %v1711_v55 }
 0x52c   :  { %v599_v57 = vmul.f32 %v596_v49, %v1715_v60  ;;  %v35_v60 = vld [vmem:[%s1936_s0 + $0xc] sm:$0x3] }
 0x52d   :  { %36 = vst [vmem:[#allocation6 + $0x6] sm:$0x3] %v35_v60 }
 0x581   :  { %v534_v41 = vpop.permute.xlu0 %533 }
 0x582   :  { %v536_v42 = vmul.f32 %v534_v41, %v528_v40 }
 0x584   :  { %538 = vrot.lane.b32.xlu2 %v536_v42, %s1541_s2 }
 0x589   :  { %v602_v48 = vpop.permute.xlu1 %601 }
 0x58a   :  { %v604_v50 = vmul.f32 %v602_v48, %v596_v49 }
 0x58c   :  { %606 = vrot.lane.b32.xlu0 %v604_v50, %s1541_s2 }
 0x5de   :  { %v539_v52 = vpop.permute.xlu2 %538 }
 0x5df   :  { %v1751_v53 = vadd.f32 %v539_v52, %v531_v51 }
 0x5e1   :  { %1456 = vtanh.f32 %v1751_v53 }
 0x5e7   :  { %v1457_v54 = vpop.eup %1456 }
 0x5e8   :  { %544 = vrot.lane.b32.xlu1 %v1457_v54, %s1542_s12  ;;  %v37_v54 = vld [vmem:[%s1936_s0 + $0x10] sm:$0x3] }
 0x5e9   :  { %38 = vst [vmem:[#allocation6 + $0x8] sm:$0x3] %v37_v54 }
 0x5fe   :  { %v607_v58 = vpop.permute.xlu0 %606 }
 0x5ff   :  { %v1756_v59 = vadd.f32 %v607_v58, %v599_v57  ;;  %v1357_v58 = vld [vmem:[%s1937_s1 + $0xe] sm:$0x3] }
 0x600   :  { %113 = vst [vmem:[#allocation7 + $0x6] sm:$0x3] %v1357_v58 }
 0x601   :  { %1458 = vtanh.f32 %v1756_v59 }
 0x607   :  { %v1459_v62 = vpop.eup %1458 }
 0x608   :  { %612 = vrot.lane.b32.xlu2 %v1459_v62, %s1542_s12 }
 0x65a   :  { %v545_v63 = vpop.permute.xlu1 %544 }
 0x65b   :  { %v547_v55 = vmul.f32 %v545_v63, %v528_v40 }
 0x65d   :  { %549 = vrot.lane.b32.xlu0 %v547_v55, %s1541_s2 }
 0x662   :  { %v613_v56 = vpop.permute.xlu2 %612 }
 0x663   :  { %v615_v4 = vmul.f32 %v613_v56, %v596_v49  ;;  %v827_v56 = vld [vmem:[#allocation7 + $0x6] sm:$0x3] }
 0x665   :  { %617 = vrot.lane.b32.xlu1 %v615_v4, %s1541_s2 }
 0x6cf   :  { %v550_v7 = vpop.permute.xlu0 %549 }
 0x6d0   :  { %1375 = vst.msk [vmem:[%s1940_s4 + $0x4] sm:$0x3] %vm187_vm0, %v550_v7  ;;  %1379 = vmatmul.msk.f32.vlgmr.msrb.gmra.mxu2 %vm205_vm1, %v550_v7 }
 0x6d1   :  { %1182 = vmatpush.msrb.mxu2 %v1577_v0  ;;  %v1358_v0 = vld [vmem:[%s1937_s1 + $0x12] sm:$0x3] }
 0x6d2   :  { %115 = vst [vmem:[#allocation7 + $0x8] sm:$0x3] %v1358_v0 }
 0x6d3   :  { %1183 = vmatpush.msrb.mxu2 %v1587_v2  ;;  %v623_v2 = vld [vmem:[#allocation6 + $0x6] sm:$0x3] }
 0x6d5   :  { %1184 = vmatpush.msrb.mxu2 %v1600_v5 }
 0x6d7   :  { %v618_v61 = vpop.permute.xlu1 %617  ;;  %1185 = vmatpush.msrb.mxu2 %v1619_v8 }
 0x6d8   :  { %1378 = vst.msk [vmem:[%s1941_s5 + $0xa] sm:$0x3] %vm187_vm0, %v618_v61  ;;  %1382 = vmatmul.msk.f32.vlgmr.msrb.gmra.mxu3 %vm205_vm1, %v618_v61 }
 0x6d9   :  { %1249 = vmatpush.msrb.mxu3 %v1582_v1  ;;  %v691_v10 = vld [vmem:[#allocation7 + $0x8] sm:$0x3] }
 0x6db   :  { %1250 = vmatpush.msrb.mxu3 %v1594_v3 }
 0x6dd   :  { %1251 = vmatpush.msrb.mxu3 %v1605_v6 }
 0x6df   :  { %1252 = vmatpush.msrb.mxu3 %v1624_v9 }
 0x753   :  { %v643_v5 = vpop.f32.mrf.mxu2 }
 0x754   :  { %v646_v8 = vadd.f32 %v643_v5, %v623_v2 }
 0x756   :  { %1460 = vtanh.f32 %v646_v8  ;;  %v1380_v3 = vmul.f32 -1.442695, %v646_v8 }
 0x75b   :  { %v711_v11 = vpop.f32.mrf.mxu3 }
 0x75c   :  { %v1461_v12 = vpop.eup %1460  ;;  %v714_v13 = vadd.f32 %v711_v11, %v691_v10 }
 0x75d   :  { %669 = vrot.lane.b32.xlu2 %v1461_v12, %s1542_s12 }
 0x75e   :  { %1462 = vtanh.f32 %v714_v13  ;;  %v1383_v17 = vmul.f32 -1.442695, %v714_v13 }
 0x75f   :  { %1464 = vpow2.f32 %v1380_v3 }
 0x764   :  { %v1463_v1 = vpop.eup %1462 }
 0x765   :  { %737 = vrot.lane.b32.xlu0 %v1463_v1, %s1542_s12  ;;  %v1465_v6 = vpop.eup %1464 }
 0x766   :  { %v650_v9 = vadd.f32 1.0, %v1465_v6 }
 0x768   :  { %1466 = vrcp.f32 %v650_v9  ;;  %v662_v20 = vand.u32 2147483648, %v650_v9  ;;  %vm656_vm13 = vweird.f32 %v650_v9  ;;  %v660_v21 = vand.u32 2147483647, %v650_v9 }
 0x769   :  { %1468 = vpow2.f32 %v1383_v17 }
 0x76a   :  { %v663_v24 = vor.u32 1.1754944e-38, %v662_v20  ;;  %vm661_vm15 = vcmp.eq.f32.partialorder %v660_v21, 8.507059e+37 }
 0x76e   :  { %v1467_v14 = vpop.eup %1466 }
 0x76f   :  { %v652_v15 = vmul.f32 %v1467_v14, %v650_v9  ;;  %vm657_vm12 = vweird.f32 %v1467_v14  ;;  %v1469_v22 = vpop.eup %1468 }
 0x770   :  { %vm658_vm14 = vmor %vm656_vm13, %vm657_vm12  ;;  %v718_v25 = vadd.f32 1.0, %v1469_v22 }
 0x771   :  { %v653_v16 = vsub.f32 1.0, %v652_v15 }
 0x772   :  { %1470 = vrcp.f32 %v718_v25  ;;  %v730_v34 = vand.u32 2147483648, %v718_v25  ;;  %vm724_vm3 = vweird.f32 %v718_v25  ;;  %v728_v35 = vand.u32 2147483647, %v718_v25 }
 0x773   :  { %v654_v18 = vmul.f32 %v1467_v14, %v653_v16 }
 0x774   :  { %v731_v37 = vor.u32 1.1754944e-38, %v730_v34  ;;  %vm729_vm5 = vcmp.eq.f32.partialorder %v728_v35, 8.507059e+37 }
 0x775   :  { %v655_v19 = vadd.f32 %v1467_v14, %v654_v18 }
 0x777   :  { %v659_v23 = vsel %vm658_vm14, %v1467_v14, %v655_v19 }
 0x778   :  { %v664_v27 = vsel %vm661_vm15, %v663_v24, %v659_v23  ;;  %v1471_v29 = vpop.eup %1470 }
 0x779   :  { %v720_v30 = vmul.f32 %v1471_v29, %v718_v25  ;;  %vm725_vm2 = vweird.f32 %v1471_v29  ;;  %v667_v41 = vmul.f32 %v664_v27, %v1751_v53 }
 0x77a   :  { %vm726_vm4 = vmor %vm724_vm3, %vm725_vm2 }
 0x77b   :  { %v721_v31 = vsub.f32 1.0, %v720_v30 }
 0x77d   :  { %v722_v32 = vmul.f32 %v1471_v29, %v721_v31 }
 0x77f   :  { %v723_v33 = vadd.f32 %v1471_v29, %v722_v32 }
 0x781   :  { %v727_v36 = vsel %vm726_vm4, %v1471_v29, %v723_v33 }
 0x782   :  { %v732_v38 = vsel %vm729_vm5, %v731_v37, %v727_v36 }
 0x783   :  { %v735_v44 = vmul.f32 %v732_v38, %v1756_v59  ;;  %v759_v59 = vld [vmem:[#allocation6 + $0x8] sm:$0x3] }
 0x7b7   :  { %v670_v26 = vpop.permute.xlu2 %669 }
 0x7b8   :  { %v672_v28 = vmul.f32 %v670_v26, %v664_v27 }
 0x7ba   :  { %674 = vrot.lane.b32.xlu1 %v672_v28, %s1541_s2 }
 0x7d7   :  { %v738_v39 = vpop.permute.xlu0 %737 }
 0x7d8   :  { %v740_v40 = vmul.f32 %v738_v39, %v732_v38 }
 0x7da   :  { %742 = vrot.lane.b32.xlu2 %v740_v40, %s1541_s2 }
 0x82c   :  { %v675_v42 = vpop.permute.xlu1 %674 }
 0x82d   :  { %v1791_v43 = vadd.f32 %v675_v42, %v667_v41 }
 0x82f   :  { %1472 = vtanh.f32 %v1791_v43 }
 0x834   :  { %v743_v45 = vpop.permute.xlu2 %742 }
 0x835   :  { %v1473_v46 = vpop.eup %1472  ;;  %v1795_v47 = vadd.f32 %v743_v45, %v735_v44 }
 0x836   :  { %680 = vrot.lane.b32.xlu0 %v1473_v46, %s1542_s12  ;;  %v1356_v46 = vld [vmem:[%s1937_s1 + $0xa] sm:$0x3] }
 0x837   :  { %1474 = vtanh.f32 %v1795_v47  ;;  %111 = vst [vmem:[#allocation7 + $0x4] sm:$0x3] %v1356_v46 }
 0x83d   :  { %v1475_v48 = vpop.eup %1474 }
 0x83e   :  { %748 = vrot.lane.b32.xlu1 %v1475_v48, %s1542_s12 }
 0x8a8   :  { %v681_v49 = vpop.permute.xlu0 %680 }
 0x8a9   :  { %v683_v50 = vmul.f32 %v681_v49, %v664_v27 }
 0x8ab   :  { %685 = vrot.lane.b32.xlu2 %v683_v50, %s1541_s2  ;;  %v963_v50 = vld [vmem:[#allocation7 + $0x4] sm:$0x3] }
 0x8b0   :  { %v749_v51 = vpop.permute.xlu1 %748 }
 0x8b1   :  { %v751_v52 = vmul.f32 %v749_v51, %v732_v38 }
 0x8b3   :  { %753 = vrot.lane.b32.xlu0 %v751_v52, %s1541_s2 }
 0x905   :  { %v686_v53 = vpop.permute.xlu2 %685 }
 0x906   :  { %1381 = vst.msk [vmem:[%s1940_s4 + $0x6] sm:$0x3] %vm187_vm0, %v686_v53  ;;  %1385 = vmatmul.msk.f32.vlgmr.msra.gmra.mxu0 %vm205_vm1, %v686_v53 }
 0x925   :  { %v754_v57 = vpop.permute.xlu0 %753 }
 0x926   :  { %1384 = vst.msk [vmem:[%s1941_s5 + $0x8] sm:$0x3] %vm187_vm0, %v754_v57  ;;  %1388 = vmatmul.msk.f32.vlgmr.msra.gmra.mxu1 %vm205_vm1, %v754_v57 }
 0x983   :  { %v779_v62 = vpop.f32.mrf.mxu0 }
 0x984   :  { %v782_v63 = vadd.f32 %v779_v62, %v759_v59 }
 0x986   :  { %1476 = vtanh.f32 %v782_v63  ;;  %v1386_v61 = vmul.f32 -1.442695, %v782_v63 }
 0x98c   :  { %v1477_v55 = vpop.eup %1476 }
 0x98d   :  { %805 = vrot.lane.b32.xlu1 %v1477_v55, %s1542_s12 }
 0x9a3   :  { %v847_v4 = vpop.f32.mrf.mxu1 }
 0x9a4   :  { %v850_v60 = vadd.f32 %v847_v4, %v827_v56 }
 0x9a6   :  { %1478 = vtanh.f32 %v850_v60  ;;  %v1389_v0 = vmul.f32 -1.442695, %v850_v60 }
 0x9a7   :  { %1480 = vpow2.f32 %v1386_v61 }
 0x9a8   :  { %1482 = vpow2.f32 %v1389_v0 }
 0x9ac   :  { %v1479_v7 = vpop.eup %1478 }
 0x9ad   :  { %873 = vrot.lane.b32.xlu2 %v1479_v7, %s1542_s12  ;;  %v1481_v2 = vpop.eup %1480 }
 0x9ae   :  { %v786_v5 = vadd.f32 1.0, %v1481_v2  ;;  %v1483_v8 = vpop.eup %1482 }
 0x9af   :  { %v854_v10 = vadd.f32 1.0, %v1483_v8 }
 0x9b0   :  { %1484 = vrcp.f32 %v786_v5  ;;  %v798_v15 = vand.u32 2147483648, %v786_v5  ;;  %vm792_vm7 = vweird.f32 %v786_v5  ;;  %v796_v16 = vand.u32 2147483647, %v786_v5 }
 0x9b1   :  { %1486 = vrcp.f32 %v854_v10  ;;  %v866_v24 = vand.u32 2147483648, %v854_v10  ;;  %vm860_vm11 = vweird.f32 %v854_v10  ;;  %v864_v25 = vand.u32 2147483647, %v854_v10 }
 0x9b2   :  { %v799_v19 = vor.u32 1.1754944e-38, %v798_v15  ;;  %vm797_vm9 = vcmp.eq.f32.partialorder %v796_v16, 8.507059e+37 }
 0x9b3   :  { %v867_v27 = vor.u32 1.1754944e-38, %v866_v24  ;;  %vm865_vm13 = vcmp.eq.f32.partialorder %v864_v25, 8.507059e+37 }
 0x9b6   :  { %v1485_v11 = vpop.eup %1484 }
 0x9b7   :  { %v788_v12 = vmul.f32 %v1485_v11, %v786_v5  ;;  %v1487_v1 = vpop.eup %1486  ;;  %vm793_vm6 = vweird.f32 %v1485_v11 }
 0x9b8   :  { %v856_v6 = vmul.f32 %v1487_v1, %v854_v10  ;;  %vm794_vm8 = vmor %vm792_vm7, %vm793_vm6  ;;  %vm861_vm10 = vweird.f32 %v1487_v1 }
 0x9b9   :  { %v789_v13 = vsub.f32 1.0, %v788_v12  ;;  %vm862_vm12 = vmor %vm860_vm11, %vm861_vm10 }
 0x9ba   :  { %v857_v14 = vsub.f32 1.0, %v856_v6 }
 0x9bb   :  { %v790_v3 = vmul.f32 %v1485_v11, %v789_v13 }
 0x9bc   :  { %v858_v18 = vmul.f32 %v1487_v1, %v857_v14 }
 0x9bd   :  { %v791_v9 = vadd.f32 %v1485_v11, %v790_v3 }
 0x9be   :  { %v859_v23 = vadd.f32 %v1487_v1, %v858_v18 }
 0x9bf   :  { %v795_v17 = vsel %vm794_vm8, %v1485_v11, %v791_v9 }
 0x9c0   :  { %v800_v21 = vsel %vm797_vm9, %v799_v19, %v795_v17  ;;  %v863_v26 = vsel %vm862_vm12, %v1487_v1, %v859_v23 }
 0x9c1   :  { %v868_v29 = vsel %vm865_vm13, %v867_v27, %v863_v26  ;;  %v803_v31 = vmul.f32 %v800_v21, %v1791_v43  ;;  %v39_v43 = vld [vmem:[%s1936_s0 + $0x14] sm:$0x3] }
 0x9c2   :  { %v871_v34 = vmul.f32 %v868_v29, %v1795_v47  ;;  %40 = vst [vmem:[#allocation6 + $0xa] sm:$0x3] %v39_v43 }
 0x9c9   :  { %v895_v47 = vld [vmem:[#allocation6 + $0xa] sm:$0x3] }
 0x9ff   :  { %v806_v20 = vpop.permute.xlu1 %805 }
 0xa00   :  { %v808_v22 = vmul.f32 %v806_v20, %v800_v21 }
 0xa02   :  { %810 = vrot.lane.b32.xlu0 %v808_v22, %s1541_s2 }
 0xa07   :  { %v874_v28 = vpop.permute.xlu2 %873 }
 0xa08   :  { %v876_v30 = vmul.f32 %v874_v28, %v868_v29 }
 0xa0a   :  { %878 = vrot.lane.b32.xlu1 %v876_v30, %s1541_s2 }
 0xa74   :  { %v811_v32 = vpop.permute.xlu0 %810 }
 0xa75   :  { %v1823_v33 = vadd.f32 %v811_v32, %v803_v31 }
 0xa77   :  { %1488 = vtanh.f32 %v1823_v33 }
 0xa7c   :  { %v879_v35 = vpop.permute.xlu1 %878 }
 0xa7d   :  { %v1489_v36 = vpop.eup %1488  ;;  %v1827_v37 = vadd.f32 %v879_v35, %v871_v34 }
 0xa7e   :  { %816 = vrot.lane.b32.xlu2 %v1489_v36, %s1542_s12  ;;  %v1355_v36 = vld [vmem:[%s1937_s1 + $0x6] sm:$0x3] }
 0xa7f   :  { %1490 = vtanh.f32 %v1827_v37  ;;  %109 = vst [vmem:[#allocation7 + $0x2] sm:$0x3] %v1355_v36 }
 0xa85   :  { %v1491_v38 = vpop.eup %1490 }
 0xa86   :  { %884 = vrot.lane.b32.xlu0 %v1491_v38, %s1542_s12 }
 0xad8   :  { %v817_v39 = vpop.permute.xlu2 %816 }
 0xad9   :  { %v819_v40 = vmul.f32 %v817_v39, %v800_v21 }
 0xadb   :  { %821 = vrot.lane.b32.xlu1 %v819_v40, %s1541_s2  ;;  %v1099_v40 = vld [vmem:[#allocation7 + $0x2] sm:$0x3] }
 0xaf8   :  { %v885_v41 = vpop.permute.xlu0 %884 }
 0xaf9   :  { %v887_v42 = vmul.f32 %v885_v41, %v868_v29 }
 0xafb   :  { %889 = vrot.lane.b32.xlu2 %v887_v42, %s1541_s2 }
 0xb4d   :  { %v822_v44 = vpop.permute.xlu1 %821 }
 0xb4e   :  { %1387 = vst.msk [vmem:[%s1940_s4 + $0x8] sm:$0x3] %vm187_vm0, %v822_v44  ;;  %1391 = vmatmul.msk.f32.vlgmr.msra.gmra.mxu2 %vm205_vm1, %v822_v44 }
 0xb55   :  { %v890_v45 = vpop.permute.xlu2 %889 }
 0xb56   :  { %1390 = vst.msk [vmem:[%s1941_s5 + $0x6] sm:$0x3] %vm187_vm0, %v890_v45  ;;  %1394 = vmatmul.msk.f32.vlgmr.msra.gmra.mxu3 %vm205_vm1, %v890_v45 }
 0xbd1   :  { %v915_v48 = vpop.f32.mrf.mxu2 }
 0xbd2   :  { %v918_v49 = vadd.f32 %v915_v48, %v895_v47 }
 0xbd4   :  { %1492 = vtanh.f32 %v918_v49  ;;  %v1392_v57 = vmul.f32 -1.442695, %v918_v49 }
 0xbd9   :  { %v983_v51 = vpop.f32.mrf.mxu3 }
 0xbda   :  { %v1493_v52 = vpop.eup %1492  ;;  %v986_v53 = vadd.f32 %v983_v51, %v963_v50 }
 0xbdb   :  { %941 = vrot.lane.b32.xlu0 %v1493_v52, %s1542_s12 }
 0xbdc   :  { %1494 = vtanh.f32 %v986_v53  ;;  %v1395_v58 = vmul.f32 -1.442695, %v986_v53 }
 0xbdd   :  { %1496 = vpow2.f32 %v1392_v57 }
 0xbde   :  { %1498 = vpow2.f32 %v1395_v58 }
 0xbe2   :  { %v1495_v54 = vpop.eup %1494 }
 0xbe3   :  { %1009 = vrot.lane.b32.xlu1 %v1495_v54, %s1542_s12  ;;  %v1497_v59 = vpop.eup %1496 }
 0xbe4   :  { %v922_v62 = vadd.f32 1.0, %v1497_v59  ;;  %v1499_v63 = vpop.eup %1498 }
 0xbe5   :  { %v990_v55 = vadd.f32 1.0, %v1499_v63 }
 0xbe6   :  { %1500 = vrcp.f32 %v922_v62  ;;  %v934_v8 = vand.u32 2147483648, %v922_v62  ;;  %vm928_vm15 = vweird.f32 %v922_v62  ;;  %v932_v10 = vand.u32 2147483647, %v922_v62 }
 0xbe7   :  { %1502 = vrcp.f32 %v990_v55  ;;  %v1002_v14 = vand.u32 2147483648, %v990_v55  ;;  %vm996_vm5 = vweird.f32 %v990_v55  ;;  %v1000_v15 = vand.u32 2147483647, %v990_v55 }
 0xbe8   :  { %v935_v13 = vor.u32 1.1754944e-38, %v934_v8  ;;  %vm933_vm3 = vcmp.eq.f32.partialorder %v932_v10, 8.507059e+37 }
 0xbe9   :  { %v1003_v17 = vor.u32 1.1754944e-38, %v1002_v14  ;;  %vm1001_vm7 = vcmp.eq.f32.partialorder %v1000_v15, 8.507059e+37 }
 0xbec   :  { %v1501_v56 = vpop.eup %1500 }
 0xbed   :  { %v924_v4 = vmul.f32 %v1501_v56, %v922_v62  ;;  %v1503_v7 = vpop.eup %1502  ;;  %vm929_vm14 = vweird.f32 %v1501_v56 }
 0xbee   :  { %v992_v0 = vmul.f32 %v1503_v7, %v990_v55  ;;  %vm930_vm2 = vmor %vm928_vm15, %vm929_vm14  ;;  %vm997_vm4 = vweird.f32 %v1503_v7 }
 0xbef   :  { %v925_v60 = vsub.f32 1.0, %v924_v4  ;;  %vm998_vm6 = vmor %vm996_vm5, %vm997_vm4 }
 0xbf0   :  { %v993_v5 = vsub.f32 1.0, %v992_v0 }
 0xbf1   :  { %v926_v61 = vmul.f32 %v1501_v56, %v925_v60 }
 0xbf2   :  { %v994_v12 = vmul.f32 %v1503_v7, %v993_v5 }
 0xbf3   :  { %v927_v2 = vadd.f32 %v1501_v56, %v926_v61 }
 0xbf4   :  { %v995_v9 = vadd.f32 %v1503_v7, %v994_v12 }
 0xbf5   :  { %v931_v11 = vsel %vm930_vm2, %v1501_v56, %v927_v2 }
 0xbf6   :  { %v936_v1 = vsel %vm933_vm3, %v935_v13, %v931_v11  ;;  %v999_v16 = vsel %vm998_vm6, %v1503_v7, %v995_v9 }
 0xbf7   :  { %v1004_v19 = vsel %vm1001_vm7, %v1003_v17, %v999_v16  ;;  %v939_v21 = vmul.f32 %v936_v1, %v1823_v33  ;;  %v41_v33 = vld [vmem:[%s1936_s0 + $0x18] sm:$0x3] }
 0xbf8   :  { %v1007_v25 = vmul.f32 %v1004_v19, %v1827_v37  ;;  %42 = vst [vmem:[#allocation6 + $0xc] sm:$0x3] %v41_v33 }
 0xbff   :  { %v1031_v37 = vld [vmem:[#allocation6 + $0xc] sm:$0x3] }
 0xc4d   :  { %v942_v3 = vpop.permute.xlu0 %941 }
 0xc4e   :  { %v944_v6 = vmul.f32 %v942_v3, %v936_v1 }
 0xc50   :  { %946 = vrot.lane.b32.xlu2 %v944_v6, %s1541_s2 }
 0xc55   :  { %v1010_v18 = vpop.permute.xlu1 %1009 }
 0xc56   :  { %v1012_v20 = vmul.f32 %v1010_v18, %v1004_v19 }
 0xc58   :  { %1014 = vrot.lane.b32.xlu0 %v1012_v20, %s1541_s2 }
 0xcaa   :  { %v947_v22 = vpop.permute.xlu2 %946 }
 0xcab   :  { %v1855_v23 = vadd.f32 %v947_v22, %v939_v21 }
 0xcad   :  { %1504 = vtanh.f32 %v1855_v23 }
 0xcb3   :  { %v1505_v24 = vpop.eup %1504 }
 0xcb4   :  { %952 = vrot.lane.b32.xlu1 %v1505_v24, %s1542_s12  ;;  %v43_v24 = vld [vmem:[%s1936_s0 + $0x1c] sm:$0x3]  ;;  %s1543_s0 = smov 96  }
 0xcb5   :  { %44 = vst [vmem:[#allocation6 + $0xe] sm:$0x3] %v43_v24 }
 0xcca   :  { %v1015_v26 = vpop.permute.xlu0 %1014 }
 0xccb   :  { %v1860_v27 = vadd.f32 %v1015_v26, %v1007_v25  ;;  %v1354_v26 = vld [vmem:[%s1937_s1 + $0x2] sm:$0x3] }
 0xccc   :  { %107 = vst [vmem:[#allocation7] sm:$0x3] %v1354_v26 }
 0xccd   :  { %1506 = vtanh.f32 %v1860_v27 }
 0xcd3   :  { %v1507_v28 = vpop.eup %1506 }
 0xcd4   :  { %1020 = vrot.lane.b32.xlu2 %v1507_v28, %s1542_s12 }
 0xd26   :  { %v953_v29 = vpop.permute.xlu1 %952 }
 0xd27   :  { %v955_v30 = vmul.f32 %v953_v29, %v936_v1 }
 0xd29   :  { %957 = vrot.lane.b32.xlu0 %v955_v30, %s1541_s2 }
 0xd2e   :  { %v1021_v31 = vpop.permute.xlu2 %1020 }
 0xd2f   :  { %v1023_v32 = vmul.f32 %v1021_v31, %v1004_v19  ;;  %v1234_v31 = vld [vmem:[#allocation7] sm:$0x3] }
 0xd31   :  { %1025 = vrot.lane.b32.xlu1 %v1023_v32, %s1541_s2 }
 0xd9b   :  { %v958_v34 = vpop.permute.xlu0 %957 }
 0xd9c   :  { %1393 = vst.msk [vmem:[%s1940_s4 + $0xa] sm:$0x3] %vm187_vm0, %v958_v34  ;;  %1397 = vmatmul.msk.f32.vlgmr.msrb.gmra.mxu0 %vm205_vm1, %v958_v34 }
 0xda3   :  { %v1026_v35 = vpop.permute.xlu1 %1025 }
 0xda4   :  { %1396 = vst.msk [vmem:[%s1941_s5 + $0x4] sm:$0x3] %vm187_vm0, %v1026_v35  ;;  %1400 = vmatmul.msk.f32.vlgmr.msrb.gmra.mxu1 %vm205_vm1, %v1026_v35 }
 0xe19   :  { %v1051_v38 = vpop.f32.mrf.mxu0 }
 0xe1a   :  { %v1054_v39 = vadd.f32 %v1051_v38, %v1031_v37 }
 0xe1c   :  { %1508 = vtanh.f32 %v1054_v39  ;;  %v1398_v45 = vmul.f32 -1.442695, %v1054_v39 }
 0xe21   :  { %v1119_v41 = vpop.f32.mrf.mxu1 }
 0xe22   :  { %v1509_v42 = vpop.eup %1508  ;;  %v1122_v43 = vadd.f32 %v1119_v41, %v1099_v40 }
 0xe23   :  { %1077 = vrot.lane.b32.xlu2 %v1509_v42, %s1542_s12 }
 0xe24   :  { %1510 = vtanh.f32 %v1122_v43  ;;  %v1401_v51 = vmul.f32 -1.442695, %v1122_v43 }
 0xe25   :  { %1512 = vpow2.f32 %v1398_v45 }
 0xe2a   :  { %v1511_v44 = vpop.eup %1510 }
 0xe2b   :  { %1145 = vrot.lane.b32.xlu0 %v1511_v44, %s1542_s12  ;;  %v1513_v46 = vpop.eup %1512 }
 0xe2c   :  { %v1058_v47 = vadd.f32 1.0, %v1513_v46 }
 0xe2e   :  { %1514 = vrcp.f32 %v1058_v47  ;;  %v1070_v54 = vand.u32 2147483648, %v1058_v47  ;;  %vm1064_vm9 = vweird.f32 %v1058_v47  ;;  %v1068_v57 = vand.u32 2147483647, %v1058_v47 }
 0xe2f   :  { %1516 = vpow2.f32 %v1401_v51 }
 0xe30   :  { %v1071_v62 = vor.u32 1.1754944e-38, %v1070_v54  ;;  %vm1069_vm11 = vcmp.eq.f32.partialorder %v1068_v57, 8.507059e+37 }
 0xe34   :  { %v1515_v48 = vpop.eup %1514 }
 0xe35   :  { %v1060_v49 = vmul.f32 %v1515_v48, %v1058_v47  ;;  %vm1065_vm8 = vweird.f32 %v1515_v48  ;;  %v1517_v58 = vpop.eup %1516 }
 0xe36   :  { %vm1066_vm10 = vmor %vm1064_vm9, %vm1065_vm8  ;;  %v1126_v63 = vadd.f32 1.0, %v1517_v58 }
 0xe37   :  { %v1061_v50 = vsub.f32 1.0, %v1060_v49 }
 0xe38   :  { %1518 = vrcp.f32 %v1126_v63  ;;  %v1138_v5 = vand.u32 2147483648, %v1126_v63  ;;  %vm1132_vm13 = vweird.f32 %v1126_v63  ;;  %v1136_v8 = vand.u32 2147483647, %v1126_v63 }
 0xe39   :  { %v1062_v52 = vmul.f32 %v1515_v48, %v1061_v50 }
 0xe3a   :  { %v1139_v11 = vor.u32 1.1754944e-38, %v1138_v5  ;;  %vm1137_vm15 = vcmp.eq.f32.partialorder %v1136_v8, 8.507059e+37 }
 0xe3b   :  { %v1063_v53 = vadd.f32 %v1515_v48, %v1062_v52 }
 0xe3d   :  { %v1067_v59 = vsel %vm1066_vm10, %v1515_v48, %v1063_v53 }
 0xe3e   :  { %v1072_v56 = vsel %vm1069_vm11, %v1071_v62, %v1067_v59  ;;  %v1519_v60 = vpop.eup %1518 }
 0xe3f   :  { %v1128_v7 = vmul.f32 %v1519_v60, %v1126_v63  ;;  %vm1133_vm12 = vweird.f32 %v1519_v60  ;;  %v1075_v3 = vmul.f32 %v1072_v56, %v1855_v23 }
 0xe40   :  { %vm1134_vm14 = vmor %vm1132_vm13, %vm1133_vm12 }
 0xe41   :  { %v1129_v61 = vsub.f32 1.0, %v1128_v7 }
 0xe43   :  { %v1130_v0 = vmul.f32 %v1519_v60, %v1129_v61 }
 0xe45   :  { %v1131_v2 = vadd.f32 %v1519_v60, %v1130_v0 }
 0xe47   :  { %v1135_v10 = vsel %vm1134_vm14, %v1519_v60, %v1131_v2 }
 0xe48   :  { %v1140_v12 = vsel %vm1137_vm15, %v1139_v11, %v1135_v10 }
 0xe49   :  { %v1143_v14 = vmul.f32 %v1140_v12, %v1860_v27  ;;  %v1167_v27 = vld [vmem:[#allocation6 + $0xe] sm:$0x3] }
 0xe7d   :  { %v1078_v55 = vpop.permute.xlu2 %1077 }
 0xe7e   :  { %v1080_v4 = vmul.f32 %v1078_v55, %v1072_v56 }
 0xe80   :  { %1082 = vrot.lane.b32.xlu1 %v1080_v4, %s1541_s2 }
 0xe9d   :  { %v1146_v13 = vpop.permute.xlu0 %1145 }
 0xe9e   :  { %v1148_v1 = vmul.f32 %v1146_v13, %v1140_v12 }
 0xea0   :  { %1150 = vrot.lane.b32.xlu2 %v1148_v1, %s1541_s2 }
 0xef2   :  { %v1083_v6 = vpop.permute.xlu1 %1082 }
 0xef3   :  { %v1887_v9 = vadd.f32 %v1083_v6, %v1075_v3 }
 0xef5   :  { %1520 = vtanh.f32 %v1887_v9 }
 0xefa   :  { %v1151_v15 = vpop.permute.xlu2 %1150 }
 0xefb   :  { %v1521_v16 = vpop.eup %1520  ;;  %v1891_v17 = vadd.f32 %v1151_v15, %v1143_v14 }
 0xefc   :  { %1088 = vrot.lane.b32.xlu0 %v1521_v16, %s1542_s12 }
 0xefd   :  { %1522 = vtanh.f32 %v1891_v17 }
 0xf03   :  { %v1523_v18 = vpop.eup %1522 }
 0xf04   :  { %1156 = vrot.lane.b32.xlu1 %v1523_v18, %s1542_s12 }
 0xf6e   :  { %v1089_v19 = vpop.permute.xlu0 %1088 }
 0xf6f   :  { %v1091_v20 = vmul.f32 %v1089_v19, %v1072_v56 }
 0xf71   :  { %1093 = vrot.lane.b32.xlu2 %v1091_v20, %s1541_s2 }
 0xf76   :  { %v1157_v21 = vpop.permute.xlu1 %1156 }
 0xf77   :  { %v1159_v22 = vmul.f32 %v1157_v21, %v1140_v12 }
 0xf79   :  { %1161 = vrot.lane.b32.xlu0 %v1159_v22, %s1541_s2 }
 0xfcb   :  { %v1094_v23 = vpop.permute.xlu2 %1093 }
 0xfcc   :  { %1399 = vst.msk [vmem:[%s1940_s4 + $0xc] sm:$0x3] %vm187_vm0, %v1094_v23  ;;  %1403 = vmatmul.msk.f32.vlgmr.msrb.gmra.mxu2 %vm205_vm1, %v1094_v23 }
 0xfeb   :  { %v1162_v25 = vpop.permute.xlu0 %1161 }
 0xfec   :  { %1402 = vst.msk [vmem:[%s1941_s5 + $0x2] sm:$0x3] %vm187_vm0, %v1162_v25  ;;  %1406 = vmatmul.msk.f32.vlgmr.msrb.gmra.mxu3 %vm205_vm1, %v1162_v25 }
0x104f   :  { %v1187_v28 = vpop.f32.mrf.mxu2 }
0x1050   :  { %v1190_v29 = vadd.f32 %v1187_v28, %v1167_v27 }
0x1052   :  { %1524 = vtanh.f32 %v1190_v29  ;;  %v1404_v35 = vmul.f32 -1.442695, %v1190_v29 }
0x1058   :  { %v1525_v30 = vpop.eup %1524 }
0x1059   :  { %1213 = vrot.lane.b32.xlu1 %v1525_v30, %s1542_s12 }
0x106f   :  { %v1254_v32 = vpop.f32.mrf.mxu3 }
0x1070   :  { %v1257_v33 = vadd.f32 %v1254_v32, %v1234_v31 }
0x1072   :  { %1526 = vtanh.f32 %v1257_v33  ;;  %v1407_v36 = vmul.f32 -1.442695, %v1257_v33 }
0x1073   :  { %1528 = vpow2.f32 %v1404_v35 }
0x1074   :  { %1530 = vpow2.f32 %v1407_v36 }
0x1078   :  { %v1527_v34 = vpop.eup %1526 }
0x1079   :  { %1280 = vrot.lane.b32.xlu2 %v1527_v34, %s1542_s12  ;;  %v1529_v37 = vpop.eup %1528 }
0x107a   :  { %v1194_v38 = vadd.f32 1.0, %v1529_v37  ;;  %v1531_v39 = vpop.eup %1530 }
0x107b   :  { %v1261_v40 = vadd.f32 1.0, %v1531_v39 }
0x107c   :  { %1532 = vrcp.f32 %v1194_v38  ;;  %v1206_v49 = vand.u32 2147483648, %v1194_v38  ;;  %vm1200_vm2 = vweird.f32 %v1194_v38  ;;  %v1204_v50 = vand.u32 2147483647, %v1194_v38 }
0x107d   :  { %1534 = vrcp.f32 %v1261_v40  ;;  %v1273_v62 = vand.u32 2147483648, %v1261_v40  ;;  %vm1267_vm6 = vweird.f32 %v1261_v40  ;;  %v1271_v63 = vand.u32 2147483647, %v1261_v40 }
0x107e   :  { %v1207_v53 = vor.u32 1.1754944e-38, %v1206_v49  ;;  %vm1205_vm4 = vcmp.eq.f32.partialorder %v1204_v50, 8.507059e+37 }
0x107f   :  { %v1274_v56 = vor.u32 1.1754944e-38, %v1273_v62  ;;  %vm1272_vm8 = vcmp.eq.f32.partialorder %v1271_v63, 8.507059e+37 }
0x1082   :  { %v1533_v41 = vpop.eup %1532 }
0x1083   :  { %v1196_v42 = vmul.f32 %v1533_v41, %v1194_v38  ;;  %v1535_v44 = vpop.eup %1534  ;;  %vm1201_vm1 = vweird.f32 %v1533_v41 }
0x1084   :  { %v1263_v46 = vmul.f32 %v1535_v44, %v1261_v40  ;;  %vm1202_vm3 = vmor %vm1200_vm2, %vm1201_vm1  ;;  %vm1268_vm5 = vweird.f32 %v1535_v44 }
0x1085   :  { %v1197_v43 = vsub.f32 1.0, %v1196_v42  ;;  %vm1269_vm7 = vmor %vm1267_vm6, %vm1268_vm5 }
0x1086   :  { %v1264_v48 = vsub.f32 1.0, %v1263_v46 }
0x1087   :  { %v1198_v45 = vmul.f32 %v1533_v41, %v1197_v43 }
0x1088   :  { %v1265_v52 = vmul.f32 %v1535_v44, %v1264_v48 }
0x1089   :  { %v1199_v47 = vadd.f32 %v1533_v41, %v1198_v45 }
0x108a   :  { %v1266_v59 = vadd.f32 %v1535_v44, %v1265_v52 }
0x108b   :  { %v1203_v51 = vsel %vm1202_vm3, %v1533_v41, %v1199_v47 }
0x108c   :  { %v1208_v57 = vsel %vm1205_vm4, %v1207_v53, %v1203_v51  ;;  %v1270_v55 = vsel %vm1269_vm7, %v1535_v44, %v1266_v59 }
0x108d   :  { %v1275_v60 = vsel %vm1272_vm8, %v1274_v56, %v1270_v55  ;;  %v1211_v61 = vmul.f32 %v1208_v57, %v1887_v9 }
0x108e   :  { %v1278_v5 = vmul.f32 %v1275_v60, %v1891_v17 }
0x10cb   :  { %v1214_v54 = vpop.permute.xlu1 %1213 }
0x10cc   :  { %v1216_v58 = vmul.f32 %v1214_v54, %v1208_v57 }
0x10ce   :  { %1218 = vrot.lane.b32.xlu0 %v1216_v58, %s1541_s2 }
0x10d3   :  { %v1281_v4 = vpop.permute.xlu2 %1280 }
0x10d4   :  { %v1283_v7 = vmul.f32 %v1281_v4, %v1275_v60 }
0x10d6   :  { %1285 = vrot.lane.b32.xlu1 %v1283_v7, %s1541_s2 }
0x1140   :  { %v1219_v0 = vpop.permute.xlu0 %1218 }
0x1141   :  { %v1221_v2 = vadd.f32 %v1219_v0, %v1211_v61 }
0x1143   :  { %1536 = vtanh.f32 %v1221_v2 }
0x1148   :  { %v1286_v8 = vpop.permute.xlu1 %1285 }
0x1149   :  { %v1537_v10 = vpop.eup %1536  ;;  %v1288_v11 = vadd.f32 %v1286_v8, %v1278_v5 }
0x114a   :  { %1224 = vrot.lane.b32.xlu2 %v1537_v10, %s1542_s12 }
0x114b   :  { %1538 = vtanh.f32 %v1288_v11 }
0x1151   :  { %v1539_v12 = vpop.eup %1538 }
0x1152   :  { %1291 = vrot.lane.b32.xlu0 %v1539_v12, %s1542_s12 }
0x115a   :  { %1302 = vrot.lane.b32.xlu0 %v1221_v2, %s1543_s0 }
0x11a4   :  { %v1225_v13 = vpop.permute.xlu2 %1224 }
0x11a5   :  { %v1227_v1 = vmul.f32 %v1225_v13, %v1208_v57 }
0x11a7   :  { %1229 = vrot.lane.b32.xlu1 %v1227_v1, %s1541_s2 }
0x11af   :  { %1308 = vrot.lane.b32.xlu1 %v1288_v11, %s1543_s0 }
0x11c4   :  { %v1292_v3 = vpop.permute.xlu0 %1291 }
0x11c5   :  { %v1294_v6 = vmul.f32 %v1292_v3, %v1275_v60 }
0x11c7   :  { %1296 = vrot.lane.b32.xlu2 %v1294_v6, %s1541_s2 }
0x11cc   :  { %v1303_v9 = vpop.permute.xlu0 %1302 }
0x11cd   :  { %1305 = vst.msk [vmem:[#allocation3] sm:$0x3] %vm187_vm0, %v1303_v9 }
0x1219   :  { %v1230_v14 = vpop.permute.xlu1 %1229 }
0x121a   :  { %1405 = vst.msk [vmem:[%s1940_s4 + $0xe] sm:$0x3] %vm187_vm0, %v1230_v14 }
0x121b   :  { %1300 = vst.msk [vmem:[#allocation2] sm:$0x3] %vm187_vm0, %v1230_v14 }
0x1221   :  { %v1309_v15 = vpop.permute.xlu1 %1308  ;;  %v1297_v16 = vpop.permute.xlu2 %1296 }
0x1222   :  { %1311 = vst.msk [vmem:[#allocation5] sm:$0x3] %vm187_vm0, %v1309_v15 }
0x1223   :  { %1299 = vst.msk [vmem:[%s1941_s5] sm:$0x3] %vm187_vm0, %v1297_v16 }
0x1224   :  { %1306 = vst.msk [vmem:[#allocation4] sm:$0x3] %vm187_vm0, %v1297_v16 }

</bundles_post_ra>
